<compile_context>
chip_gen: v7x
topology: tpu7x:2x2x1
jax: 0.10.0
libtpu: 0.0.40
codegen_flags: <defaults>
</compile_context>

<pallas_src>
import jax
import jax.numpy as jnp
from jax.experimental import pallas as pl
from jax.experimental.pallas import tpu as pltpu

STATE_DIM = 4        # CartPole-v1 observation dim
STATE_PAD = 8        # layer-1 K padded to the 8-sublane granularity
ACTION_DIM = 2       # CartPole-v1 action dim
HIDDEN = 256
OUT_SMALL = 8        # packed layer-3 output width (actor logits 0-1, critic value 2)
OUT_LANES = 128      # lane-dense output slab width (single unmasked store)
BATCH_TILE = 128     # M tile: fills the smallest MXU (v5e 4x128^2); fine on v6e/v7x

_HIGHEST = jax.lax.Precision.HIGHEST


def _round_up(n, m):
    return ((n + m - 1) // m) * m


def _ppo_kernel(x_ref, w1b_ref, w2_ref, w3_ref, out_ref):
    x = x_ref[...]                              # (TB, 8)  cols 4-7 are zero padding
    w1b = w1b_ref[...]                          # (16, 512)

    w1 = w1b[0:STATE_PAD, :]                    # (8, 512)  rows 4-7 are zeros
    b1 = w1b[8:9, :]                            # (1, 512)  layer-1 bias [actor|critic]
    b2 = w1b[9:10, :]                           # (1, 512)  layer-2 bias [actor|critic]
    b3 = w1b[10:11, 0:OUT_SMALL]                # (1, 8)    layer-3 bias (lanes 0-2)

    # ---- layer 1: single MXU dot (K=8 after padding); MXU is otherwise idle here ----
    h1 = jnp.dot(x, w1, preferred_element_type=jnp.float32, precision=_HIGHEST) + b1
    h1 = jnp.maximum(h1, 0.0)                   # (TB, 512): actor cols 0:256, critic 256:512

    # ---- layer 2: two independent 256x256 MXU dots (kept un-fused on purpose) ----
    h_a = jnp.dot(h1[:, :HIDDEN], w2_ref[0],
                  preferred_element_type=jnp.float32, precision=_HIGHEST) + b2[:, :HIDDEN]
    h_a = jnp.maximum(h_a, 0.0)
    h_c = jnp.dot(h1[:, HIDDEN:], w2_ref[1],
                  preferred_element_type=jnp.float32, precision=_HIGHEST) + b2[:, HIDDEN:]
    h_c = jnp.maximum(h_c, 0.0)

    # ---- layer 3: block-diagonal packed heads -> narrow (TB, 8) result ----
    # w3_ref[:256, 0:2] = actor head, w3_ref[256:, 2:3] = critic head, rest zeros.
    small = (jnp.dot(h_a, w3_ref[0:HIDDEN, :],
                     preferred_element_type=jnp.float32, precision=_HIGHEST)
             + jnp.dot(h_c, w3_ref[HIDDEN:, :],
                       preferred_element_type=jnp.float32, precision=_HIGHEST)
             + b3)                              # (TB, 8): lanes 0,1 logits; lane 2 value

    # ---- 2-way softmax == sigmoid of the logit difference (no XLU reductions) ----
    d = small[:, 0:1] - small[:, 1:2]           # (TB, 1)
    p0 = 1.0 / (1.0 + jnp.exp(-d))
    p1 = 1.0 - p0                               # exactly normalized; saves one EUP exp
    value = small[:, 2:3]

    # Rebuild the lane-dense (TB, 128) slab -> single unmasked lane-dense store.
    lane = jax.lax.broadcasted_iota(jnp.int32, out_ref.shape, 1)
    out = jnp.where(lane == 0, p0,
          jnp.where(lane == 1, p1,
          jnp.where(lane == 2, value, 0.0)))
    out_ref[...] = out.astype(out_ref.dtype)


@jax.jit
def ppo_forward(x, packed_params):
    """Returns (action_probs [B, action_dim], state_value [B, 1]).

    The whole step (pad -> kernel -> slice) lives inside one jit; for a tight
    rollout loop the caller should also jit-fuse sampling on top of this.
    """
    w1b, w2s, w3p = packed_params
    batch = x.shape[0]

    # Static (shape-derived) tiling: small batches run as one grid step; larger
    # batches tile the M dimension and shard the grid across TensorCores (v7x).
    tile = min(BATCH_TILE, max(8, _round_up(batch, 8)))
    padded = _round_up(batch, tile)
    x = jnp.pad(x, ((0, padded - batch), (0, STATE_PAD - STATE_DIM)))

    slab = pl.pallas_call(
        _ppo_kernel,
        out_shape=jax.ShapeDtypeStruct((padded, OUT_LANES), jnp.float32),
        grid_spec=pltpu.PrefetchScalarGridSpec(
            num_scalar_prefetch=0,
            grid=(padded // tile,),
            in_specs=[
                pl.BlockSpec((tile, STATE_PAD), lambda i: (i, 0)),
                # constant index_maps: weights DMA'd once per call, grid-resident
                pl.BlockSpec((16, 2 * HIDDEN), lambda i: (0, 0)),
                pl.BlockSpec((2, HIDDEN, HIDDEN), lambda i: (0, 0, 0)),
                pl.BlockSpec((2 * HIDDEN, OUT_SMALL), lambda i: (0, 0)),
            ],
            out_specs=pl.BlockSpec((tile, OUT_LANES), lambda i: (i, 0)),
        ),
        compiler_params=pltpu.CompilerParams(
            dimension_semantics=("parallel",)),
    )(x, w1b, w2s, w3p)

    # TODO(synk): for a fully fused rollout step, return the packed slab and let the
    # (jitted) sampler consume lanes 0-2 directly instead of slicing here.
    probs = slab[:batch, :ACTION_DIM]
    value = slab[:batch, ACTION_DIM:ACTION_DIM + 1]
    return probs, value


def init_params(key):
    """Deterministic init mimicking PyTorch's default Linear init (U(-1/sqrt(fan_in), ..))."""
    def linear(key, fan_in, fan_out):
        kw, kb = jax.random.split(key)
        bound = 1.0 / jnp.sqrt(jnp.float32(fan_in))
        w = jax.random.uniform(kw, (fan_in, fan_out), jnp.float32, -bound, bound)
        b = jax.random.uniform(kb, (1, fan_out), jnp.float32, -bound, bound)
        return w, b

    keys = jax.random.split(key, 6)
    aw1, ab1 = linear(keys[0], STATE_DIM, HIDDEN)
    aw2, ab2 = linear(keys[1], HIDDEN, HIDDEN)
    aw3, ab3 = linear(keys[2], HIDDEN, ACTION_DIM)
    cw1, cb1 = linear(keys[3], STATE_DIM, HIDDEN)
    cw2, cb2 = linear(keys[4], HIDDEN, HIDDEN)
    cw3, cb3 = linear(keys[5], HIDDEN, 1)
    return (aw1, ab1, aw2, ab2, aw3, ab3, cw1, cb1, cw2, cb2, cw3, cb3)


def pack_params(params):
    """One-time packing: 12 PyTorch-style tensors -> 3 DMA-friendly arrays (~560 KiB)."""
    (aw1, ab1, aw2, ab2, aw3, ab3, cw1, cb1, cw2, cb2, cw3, cb3) = params

    # (16, 512): rows 0-3 layer-1 weights [actor|critic], rows 4-7 zero K-padding,
    # row 8 = b1, row 9 = b2, row 10 = b3 (lanes 0-2), rows 11-15 zeros.
    w1b = jnp.zeros((16, 2 * HIDDEN), jnp.float32)
    w1b = w1b.at[0:STATE_DIM, :].set(jnp.concatenate([aw1, cw1], axis=1))
    w1b = w1b.at[8:9, :].set(jnp.concatenate([ab1, cb1], axis=1))
    w1b = w1b.at[9:10, :].set(jnp.concatenate([ab2, cb2], axis=1))
    w1b = w1b.at[10, 0:ACTION_DIM].set(ab3[0])
    w1b = w1b.at[10, ACTION_DIM].set(cb3[0, 0])

    w2s = jnp.stack([aw2, cw2], axis=0)                      # (2, 256, 256)

    # (512, 8) block-diagonal layer-3 weights (was (512,128) of mostly zeros).
    w3p = jnp.zeros((2 * HIDDEN, OUT_SMALL), jnp.float32)
    w3p = w3p.at[:HIDDEN, :ACTION_DIM].set(aw3)
    w3p = w3p.at[HIDDEN:, ACTION_DIM:ACTION_DIM + 1].set(cw3)

    return (w1b, w2s, w3p)


def _reference_forward(x, params):
    (aw1, ab1, aw2, ab2, aw3, ab3, cw1, cb1, cw2, cb2, cw3, cb3) = params
    dot = lambda a, b: jnp.dot(a, b, precision=_HIGHEST)
    h = jnp.maximum(dot(x, aw1) + ab1, 0.0)
    h = jnp.maximum(dot(h, aw2) + ab2, 0.0)
    logits = dot(h, aw3) + ab3
    probs = jax.nn.softmax(logits, axis=-1)
    g = jnp.maximum(dot(x, cw1) + cb1, 0.0)
    g = jnp.maximum(dot(g, cw2) + cb2, 0.0)
    value = dot(g, cw3) + cb3
    return probs, value


if __name__ == "__main__":
    key = jax.random.PRNGKey(0)
    k_params, k_x = jax.random.split(key)

    params = init_params(k_params)
    packed = jax.tree_util.tree_map(jax.block_until_ready, pack_params(params))

    # --- small-batch (single-step get_action style) path: one grid step ---
    batch = 8
    x = jax.random.normal(k_x, (batch, STATE_DIM), dtype=jnp.float32)
    probs, value = ppo_forward(x, packed)
    jax.block_until_ready((probs, value))

    ref_probs, ref_value = _reference_forward(x, params)
    assert probs.shape == (batch, ACTION_DIM)
    assert value.shape == (batch, 1)
    assert jnp.allclose(probs, ref_probs, atol=1e-5, rtol=1e-5)
    assert jnp.allclose(value, ref_value, atol=1e-5, rtol=1e-5)
    assert jnp.allclose(jnp.sum(probs, axis=-1), 1.0, atol=1e-6)

    # --- batched rollout path: exercises batch padding + multi-tile parallel grid ---
    big = 200
    xb = jax.random.normal(jax.random.PRNGKey(1), (big, STATE_DIM), dtype=jnp.float32)
    probs_b, value_b = ppo_forward(xb, packed)
    jax.block_until_ready((probs_b, value_b))

    ref_probs_b, ref_value_b = _reference_forward(xb, params)
    assert probs_b.shape == (big, ACTION_DIM)
    assert value_b.shape == (big, 1)
    assert jnp.allclose(probs_b, ref_probs_b, atol=1e-5, rtol=1e-5)
    assert jnp.allclose(value_b, ref_value_b, atol=1e-5, rtol=1e-5)

    print("KERNEL_OK")
</pallas_src>

<mosaic_0001>
module attributes {stable_mosaic.version = 11 : i64} {
  func.func @_ppo_kernel(%arg0: i32, %arg1: memref<8x8xf32, #tpu.memory_space<vmem>>, %arg2: memref<16x512xf32, #tpu.memory_space<vmem>>, %arg3: memref<2x256x256xf32, #tpu.memory_space<vmem>>, %arg4: memref<512x8xf32, #tpu.memory_space<vmem>>, %arg5: memref<8x128xf32, #tpu.memory_space<vmem>>) attributes {dimension_semantics = [#tpu.dimension_semantics<parallel>], iteration_bounds = array<i64: 1>, scalar_prefetch = 0 : i64, scratch_operands = 0 : i64, tpu.core_type = #tpu.core_type<tc>, window_params = [{transform_indices = @transform_0, window_bounds = array<i64: 8, 8>}, {pipeline_mode = #tpu.pipeline_mode<synchronous>, transform_indices = @transform_1, window_bounds = array<i64: 16, 512>}, {pipeline_mode = #tpu.pipeline_mode<synchronous>, transform_indices = @transform_2, window_bounds = array<i64: 2, 256, 256>}, {pipeline_mode = #tpu.pipeline_mode<synchronous>, transform_indices = @transform_3, window_bounds = array<i64: 512, 8>}, {transform_indices = @transform_4, window_bounds = array<i64: 8, 128>}]} {
    %c0 = arith.constant 0 : index
    %c0_0 = arith.constant 0 : index
    %0 = vector.load %arg1[%c0, %c0_0] : memref<8x8xf32, #tpu.memory_space<vmem>>, vector<8x8xf32>
    %c0_1 = arith.constant 0 : index
    %c0_2 = arith.constant 0 : index
    %1 = vector.load %arg2[%c0_1, %c0_2] : memref<16x512xf32, #tpu.memory_space<vmem>>, vector<16x512xf32>
    %2 = vector.extract_strided_slice %1 {offsets = [0, 0], sizes = [8, 512], strides = [1, 1]} : vector<16x512xf32> to vector<8x512xf32>
    %3 = vector.extract_strided_slice %1 {offsets = [8, 0], sizes = [1, 512], strides = [1, 1]} : vector<16x512xf32> to vector<1x512xf32>
    %4 = vector.extract_strided_slice %1 {offsets = [9, 0], sizes = [1, 512], strides = [1, 1]} : vector<16x512xf32> to vector<1x512xf32>
    %5 = vector.extract_strided_slice %1 {offsets = [10, 0], sizes = [1, 8], strides = [1, 1]} : vector<16x512xf32> to vector<1x8xf32>
    %cst = arith.constant dense<0.000000e+00> : vector<8x512xf32>
    %6 = tpu.matmul %0, %2, %cst {dimension_numbers = #tpu.dot_dimension_numbers<[1], [0], [0], [1], [0, 0, 1, 1], [], []>, precision = #tpu.contract_precision<fp32>} : vector<8x8xf32>, vector<8x512xf32>, vector<8x512xf32> -> vector<8x512xf32>
    %7 = vector.broadcast %3 : vector<1x512xf32> to vector<8x512xf32>
    %8 = arith.addf %6, %7 : vector<8x512xf32>
    %cst_3 = arith.constant 0.000000e+00 : f32
    %9 = vector.broadcast %cst_3 : f32 to vector<8x512xf32>
    %10 = arith.maximumf %8, %9 : vector<8x512xf32>
    %11 = vector.extract_strided_slice %10 {offsets = [0, 0], sizes = [8, 256], strides = [1, 1]} : vector<8x512xf32> to vector<8x256xf32>
    %c0_4 = arith.constant 0 : index
    %c0_5 = arith.constant 0 : index
    %c0_6 = arith.constant 0 : index
    %12 = vector.load %arg3[%c0_4, %c0_5, %c0_6] : memref<2x256x256xf32, #tpu.memory_space<vmem>>, vector<1x256x256xf32>
    %13 = vector.shape_cast %12 : vector<1x256x256xf32> to vector<256x256xf32>
    %cst_7 = arith.constant dense<0.000000e+00> : vector<8x256xf32>
    %14 = tpu.matmul %11, %13, %cst_7 {dimension_numbers = #tpu.dot_dimension_numbers<[1], [0], [0], [1], [0, 0, 1, 1], [], []>, precision = #tpu.contract_precision<fp32>} : vector<8x256xf32>, vector<256x256xf32>, vector<8x256xf32> -> vector<8x256xf32>
    %15 = vector.extract_strided_slice %4 {offsets = [0, 0], sizes = [1, 256], strides = [1, 1]} : vector<1x512xf32> to vector<1x256xf32>
    %16 = vector.broadcast %15 : vector<1x256xf32> to vector<8x256xf32>
    %17 = arith.addf %14, %16 : vector<8x256xf32>
    %cst_8 = arith.constant 0.000000e+00 : f32
    %18 = vector.broadcast %cst_8 : f32 to vector<8x256xf32>
    %19 = arith.maximumf %17, %18 : vector<8x256xf32>
    %20 = vector.extract_strided_slice %10 {offsets = [0, 256], sizes = [8, 256], strides = [1, 1]} : vector<8x512xf32> to vector<8x256xf32>
    %c1 = arith.constant 1 : index
    %c0_9 = arith.constant 0 : index
    %c0_10 = arith.constant 0 : index
    %21 = vector.load %arg3[%c1, %c0_9, %c0_10] : memref<2x256x256xf32, #tpu.memory_space<vmem>>, vector<1x256x256xf32>
    %22 = vector.shape_cast %21 : vector<1x256x256xf32> to vector<256x256xf32>
    %cst_11 = arith.constant dense<0.000000e+00> : vector<8x256xf32>
    %23 = tpu.matmul %20, %22, %cst_11 {dimension_numbers = #tpu.dot_dimension_numbers<[1], [0], [0], [1], [0, 0, 1, 1], [], []>, precision = #tpu.contract_precision<fp32>} : vector<8x256xf32>, vector<256x256xf32>, vector<8x256xf32> -> vector<8x256xf32>
    %24 = vector.extract_strided_slice %4 {offsets = [0, 256], sizes = [1, 256], strides = [1, 1]} : vector<1x512xf32> to vector<1x256xf32>
    %25 = vector.broadcast %24 : vector<1x256xf32> to vector<8x256xf32>
    %26 = arith.addf %23, %25 : vector<8x256xf32>
    %cst_12 = arith.constant 0.000000e+00 : f32
    %27 = vector.broadcast %cst_12 : f32 to vector<8x256xf32>
    %28 = arith.maximumf %26, %27 : vector<8x256xf32>
    %c0_13 = arith.constant 0 : index
    %c0_14 = arith.constant 0 : index
    %29 = vector.load %arg4[%c0_13, %c0_14] : memref<512x8xf32, #tpu.memory_space<vmem>>, vector<256x8xf32>
    %cst_15 = arith.constant dense<0.000000e+00> : vector<8x8xf32>
    %30 = tpu.matmul %19, %29, %cst_15 {dimension_numbers = #tpu.dot_dimension_numbers<[1], [0], [0], [1], [0, 0, 1, 1], [], []>, precision = #tpu.contract_precision<fp32>} : vector<8x256xf32>, vector<256x8xf32>, vector<8x8xf32> -> vector<8x8xf32>
    %c256 = arith.constant 256 : index
    %c0_16 = arith.constant 0 : index
    %31 = vector.load %arg4[%c256, %c0_16] : memref<512x8xf32, #tpu.memory_space<vmem>>, vector<256x8xf32>
    %cst_17 = arith.constant dense<0.000000e+00> : vector<8x8xf32>
    %32 = tpu.matmul %28, %31, %cst_17 {dimension_numbers = #tpu.dot_dimension_numbers<[1], [0], [0], [1], [0, 0, 1, 1], [], []>, precision = #tpu.contract_precision<fp32>} : vector<8x256xf32>, vector<256x8xf32>, vector<8x8xf32> -> vector<8x8xf32>
    %33 = arith.addf %30, %32 : vector<8x8xf32>
    %34 = vector.broadcast %5 : vector<1x8xf32> to vector<8x8xf32>
    %35 = arith.addf %33, %34 : vector<8x8xf32>
    %36 = vector.extract_strided_slice %35 {offsets = [0, 0], sizes = [8, 1], strides = [1, 1]} : vector<8x8xf32> to vector<8x1xf32>
    %37 = vector.extract_strided_slice %35 {offsets = [0, 1], sizes = [8, 1], strides = [1, 1]} : vector<8x8xf32> to vector<8x1xf32>
    %38 = arith.subf %36, %37 : vector<8x1xf32>
    %cst_18 = arith.constant 0.000000e+00 : f32
    %39 = vector.broadcast %cst_18 : f32 to vector<8x1xf32>
    %40 = arith.subf %39, %38 : vector<8x1xf32>
    %41 = math.exp %40 : vector<8x1xf32>
    %cst_19 = arith.constant 1.000000e+00 : f32
    %42 = vector.broadcast %cst_19 : f32 to vector<8x1xf32>
    %43 = arith.addf %42, %41 : vector<8x1xf32>
    %cst_20 = arith.constant 1.000000e+00 : f32
    %44 = vector.broadcast %cst_20 : f32 to vector<8x1xf32>
    %45 = arith.divf %44, %43 : vector<8x1xf32>
    %cst_21 = arith.constant 1.000000e+00 : f32
    %46 = vector.broadcast %cst_21 : f32 to vector<8x1xf32>
    %47 = arith.subf %46, %45 : vector<8x1xf32>
    %48 = vector.extract_strided_slice %35 {offsets = [0, 2], sizes = [8, 1], strides = [1, 1]} : vector<8x8xf32> to vector<8x1xf32>
    %49 = tpu.iota {dimensions = array<i32: 1>} : vector<8x128xi32>
    %c0_i32 = arith.constant 0 : i32
    %50 = vector.broadcast %c0_i32 : i32 to vector<8x128xi32>
    %51 = arith.cmpi eq, %49, %50 : vector<8x128xi32>
    %c1_i32 = arith.constant 1 : i32
    %52 = vector.broadcast %c1_i32 : i32 to vector<8x128xi32>
    %53 = arith.cmpi eq, %49, %52 : vector<8x128xi32>
    %c2_i32 = arith.constant 2 : i32
    %54 = vector.broadcast %c2_i32 : i32 to vector<8x128xi32>
    %55 = arith.cmpi eq, %49, %54 : vector<8x128xi32>
    %cst_22 = arith.constant 0.000000e+00 : f32
    %56 = vector.shape_cast %48 : vector<8x1xf32> to vector<8x1xf32>
    %57 = vector.broadcast %56 : vector<8x1xf32> to vector<8x128xf32>
    %58 = vector.broadcast %cst_22 : f32 to vector<8x128xf32>
    %59 = arith.select %55, %57, %58 : vector<8x128xi1>, vector<8x128xf32>
    %60 = vector.shape_cast %47 : vector<8x1xf32> to vector<8x1xf32>
    %61 = vector.broadcast %60 : vector<8x1xf32> to vector<8x128xf32>
    %62 = arith.select %53, %61, %59 : vector<8x128xi1>, vector<8x128xf32>
    %63 = vector.shape_cast %45 : vector<8x1xf32> to vector<8x1xf32>
    %64 = vector.broadcast %63 : vector<8x1xf32> to vector<8x128xf32>
    %65 = arith.select %51, %64, %62 : vector<8x128xi1>, vector<8x128xf32>
    %c0_23 = arith.constant 0 : index
    %c0_24 = arith.constant 0 : index
    %66 = vector.load %arg5[%c0_23, %c0_24] : memref<8x128xf32, #tpu.memory_space<vmem>>, vector<8x128xf32>
    tpu.vector_store %arg5[%c0_23, %c0_24], %65 {strides = array<i32>} : memref<8x128xf32, #tpu.memory_space<vmem>>, vector<8x128xf32>,
    return
  }
  func.func @transform_0(%arg0: i32) -> (i32, i32) {
    %c0_i32 = arith.constant 0 : i32
    %c0_i32_0 = arith.constant 0 : i32
    return %arg0, %c0_i32 : i32, i32
  }
  func.func @transform_1(%arg0: i32) -> (i32, i32) {
    %c0_i32 = arith.constant 0 : i32
    %c0_i32_0 = arith.constant 0 : i32
    %c0_i32_1 = arith.constant 0 : i32
    return %c0_i32, %c0_i32_0 : i32, i32
  }
  func.func @transform_2(%arg0: i32) -> (i32, i32, i32) {
    %c0_i32 = arith.constant 0 : i32
    %c0_i32_0 = arith.constant 0 : i32
    %c0_i32_1 = arith.constant 0 : i32
    %c0_i32_2 = arith.constant 0 : i32
    return %c0_i32, %c0_i32_0, %c0_i32_1 : i32, i32, i32
  }
  func.func @transform_3(%arg0: i32) -> (i32, i32) {
    %c0_i32 = arith.constant 0 : i32
    %c0_i32_0 = arith.constant 0 : i32
    %c0_i32_1 = arith.constant 0 : i32
    return %c0_i32, %c0_i32_0 : i32, i32
  }
  func.func @transform_4(%arg0: i32) -> (i32, i32) {
    %c0_i32 = arith.constant 0 : i32
    %c0_i32_0 = arith.constant 0 : i32
    return %arg0, %c0_i32 : i32, i32
  }
}

</mosaic_0001>

<bundles_post_ra>
// kernel: ppo_forward.1
= control target key start
LH: loop header
LB: loop body
LE: loop exit
PB: predicated region body
PF: predicated region fallthrough
CT: control target
= control target key end

     0   :  { %9 = vsyncpa [#allocation3], 0  ;;  %s7206_s15 = smov [#allocation2]   ;;  %s11661_s0 = inlined_call_operand.vmem [shape: f32[8,8], index: 0, kind: input, shape index: {}]   ;;  %s11662_s1 = inlined_call_operand.vmem [shape: f32[16,512], index: 1, kind: input, shape index: {}]   ;;  %s11663_s2 = inlined_call_operand.hbm [shape: f32[2,256,256], index: 2, kind: input, shape index: {}]   ;;  %s11664_s3 = inlined_call_operand.vmem [shape: f32[512,8], index: 3, kind: input, shape index: {}]   ;;  %s11665_s4 = inlined_call_operand.vmem [shape: f32[8,128], index: 4, kind: output, shape index: {}]  }
   0x1   :  { %s19_s16 = sshll.u32 %s7206_s15, 4  ;;  %s7182_s19 = scalar_lea.hbm %s11663_s2, 16384  ;;  %s20_s16 = int_to_ptr.vmem [resolvable:$true] %s19_s16 }
   0x2   :  { %p7183_p0 = scmp.ne.s32.totalorder %s11663_s2, %s7182_s19  ;;  %p7186_p1 = scmp.lt.u32.totalorder %s7182_s19, %s11663_s2 }
   0x4   :  { %p7188_p2 = pnand %p7186_p1, %p7183_p0 }
   0x6   :  { %7191 = shalt.err (!%p7188_p2)
}
   0x7   :  { %s7192_s24 = scalar_lea.vmem %s20_s16, 16384  ;;  %p7197_p4 = scmp.lt.s32.totalorder %s20_s16, %s20_s16 }
   0x8   :  { %p7193_p3 = scmp.ne.s32.totalorder %s20_s16, %s7192_s24  ;;  %p7198_p5 = scmp.lt.s32.totalorder %s7192_s24, %s7192_s24 }
   0xa   :  { %p7199_p6 = por %p7198_p5, %p7197_p4 }
   0xc   :  { %p7200_p7 = pnand %p7199_p6, %p7193_p3 }
   0xe   :  { %7203 = shalt.err (!%p7200_p7)
}
   0xf   :  { %s7207_s25 = smov 256   ;;  %s7208_s26 = smov 16  }
  0x10   :  { %25 = dma.hbm_to_vmem [thread:$0]  %s11663_s2, 16384, %s20_s16, [#allocation3], %s7207_s25, %s7207_s25, %s7208_s26  }
  0x11   :  { %7204 = dma.done.wait [#allocation3], 16384  }
  0x12   :  { %7205 = vsyncadd [#allocation3], 4294950912  ;;  %v11689_v0 = vmov 0.0   ;;  %vm56_vm0 = vcmask 64512   ;;  %v35_v1 = vld [vmem:[%s11662_s1 + $0x18] sm:$0xff]  ;;  %v33_v2 = vld [vmem:[%s11662_s1 + $0x8] sm:$0xff] }
  0x13   :  { %126 = vmatprep.mubr.f32.mxu0 %v11689_v0  ;;  %591 = vmatprep.mubr.f32.mxu1 %v11689_v0  ;;  %v34_v3 = vld [vmem:[%s11662_s1 + $0x10] sm:$0xff]  ;;  %v7261_v4 = vand.u32 4294901760, %v35_v1  ;;  %v7263_v5 = vand.u32 4294901760, %v33_v2  ;;  %v32_v7 = vld [vmem:[%s11662_s1] sm:$0xff]  ;;  %v7273_v9 = vld [vmem:[#allocation2 + $0x8] sm:$0xff] }
  0x14   :  { %v7265_v6 = vand.u32 4294901760, %v34_v3  ;;  %v31_v8 = vld [vmem:[%s11661_s0] sm:$0xff]  ;;  %v7275_v10 = vand.u32 4294901760, %v32_v7  ;;  %v7277_v12 = vld [vmem:[#allocation2 + $0x18] sm:$0xff]  ;;  %v11680_v13 = vand.u32 4294901760, %v7273_v9  ;;  %v7293_v18 = vld [vmem:[#allocation2 + $0x208] sm:$0xff] }
  0x15   :  { %v58_v11 = vsel %vm56_vm0, %v31_v8, 0  ;;  %526 = vmatprep.subr.mxu1 %v7261_v4  ;;  %61 = vmatprep.subr.mxu0 %v7263_v5  ;;  %v7286_v15 = vsub.f32 %v35_v1, %v7261_v4  ;;  %v7291_v17 = vsub.f32 %v33_v2, %v7263_v5  ;;  %v7295_v19 = vld [vmem:[#allocation2 + $0x218] sm:$0xff]  ;;  %v11679_v21 = vand.u32 4294901760, %v7277_v12  ;;  %v7334_v35 = vld [vmem:[#allocation2] sm:$0xff]  ;;  %v7336_v36 = vld [vmem:[#allocation2 + $0x10] sm:$0xff] }
  0x16   :  { %v7283_v14 = vsub.f32 %v34_v3, %v7265_v6  ;;  %v7288_v16 = vand.u32 4294901760, %v58_v11  ;;  %528 = vmatpush1.msra.mxu1 %v7265_v6  ;;  %63 = vmatpush1.msra.mxu0 %v7275_v10  ;;  %v7300_v20 = vsub.f32 %v32_v7, %v7275_v10  ;;  %v7306_v22 = vsub.f32 %v7273_v9, %v11680_v13  ;;  %v7338_v37 = vld [vmem:[#allocation2 + $0x200] sm:$0xff]  ;;  %v7353_v41 = vld [vmem:[#allocation2 + $0x210] sm:$0xff]  ;;  %v7355_v42 = vld [vmem:[#allocation2 + $0x28] sm:$0xff] }
  0x17   :  { %v11687_v23 = vand.u32 4294901760, %v7286_v15  ;;  %v11685_v26 = vand.u32 4294901760, %v7291_v17  ;;  %v7318_v28 = vsub.f32 %v7277_v12, %v11679_v21  ;;  %v11678_v29 = vand.u32 4294901760, %v7293_v18  ;;  %v7359_v47 = vld [vmem:[#allocation2 + $0x38] sm:$0xff]  ;;  %v7364_v52 = vld [vmem:[#allocation2 + $0x228] sm:$0xff]  ;;  %v7370_v57 = vld [vmem:[#allocation2 + $0x20] sm:$0xff] }
  0x18   :  { %12310 = vst [vmem:[#allocation5_spill] sm:$0xff] %v7306_v22  ;;  %v7310_v24 = vsub.f32 %v58_v11, %v7288_v16  ;;  %v11684_v25 = vand.u32 4294901760, %v7283_v14  ;;  %v11683_v27 = vand.u32 4294901760, %v7300_v20  ;;  %v11677_v30 = vand.u32 4294901760, %v7295_v19  ;;  %v7368_v56 = vld [vmem:[#allocation2 + $0x238] sm:$0xff]  ;;  %v7388_v62 = vld [vmem:[#allocation2 + $0x30] sm:$0xff] }
  0x19   :  { %12311 = vst [vmem:[#allocation6_spill] sm:$0xff] %v7318_v28  ;;  %v606_v31 = vsub.f32 %v7286_v15, %v11687_v23  ;;  %v141_v34 = vsub.f32 %v7291_v17, %v11685_v26  ;;  %v7346_v39 = vsub.f32 %v7293_v18, %v11678_v29  ;;  %v11675_v49 = vand.u32 4294901760, %v7334_v35  ;;  %v7390_v63 = vld [vmem:[#allocation2 + $0x220] sm:$0xff]  ;;  %v7398_v3 = vld [vmem:[#allocation2 + $0x230] sm:$0xff]  ;;  %v7400_v7 = vld [vmem:[#allocation2 + $0x48] sm:$0xff] }
  0x1a   :  { %v7326_v32 = vand.u32 4294901760, %v7310_v24  ;;  %v612_v33 = vsub.f32 %v7283_v14, %v11684_v25  ;;  %v147_v38 = vsub.f32 %v7300_v20, %v11683_v27  ;;  %v7351_v40 = vsub.f32 %v7295_v19, %v11677_v30  ;;  %v7471_v30 = vld [vmem:[#allocation2 + $0x250] sm:$0xff]  ;;  %v7473_v29 = vld [vmem:[#allocation2 + $0x68] sm:$0xff]  ;;  %v7476_v13 = vld [vmem:[#allocation2 + $0x78] sm:$0xff] }
  0x1b   :  { %12312 = vst [vmem:[#allocation7_spill] sm:$0xff] %v7346_v39  ;;  %v607_v43 = vand.u32 4294901760, %v606_v31  ;;  %v142_v46 = vand.u32 4294901760, %v141_v34  ;;  %v11673_v50 = vand.u32 4294901760, %v7336_v36  ;;  %v11672_v51 = vand.u32 4294901760, %v7338_v37  ;;  %v7490_v26 = vld [vmem:[#allocation2 + $0x268] sm:$0xff] }
  0x1c   :  { %12313 = vst [vmem:[#allocation8_spill] sm:$0xff] %v7351_v40  ;;  %v130_v44 = vsub.f32 %v7310_v24, %v7326_v32  ;;  %v613_v45 = vand.u32 4294901760, %v612_v33  ;;  %v148_v48 = vand.u32 4294901760, %v147_v38  ;;  %v11670_v54 = vand.u32 4294901760, %v7353_v41  ;;  %v7502_v27 = vld [vmem:[#allocation2 + $0x278] sm:$0xff]  ;;  %v7504_v25 = vld [vmem:[#allocation2 + $0x60] sm:$0xff] }
  0x1d   :  { %608 = vmatprep.subr.mxu1 %v607_v43  ;;  %143 = vmatprep.subr.mxu0 %v142_v46  ;;  %v11668_v55 = vand.u32 4294901760, %v7355_v42  ;;  %v7375_v58 = vsub.f32 %v7334_v35, %v11675_v49  ;;  %v7380_v59 = vsub.f32 %v7336_v36, %v11673_v50  ;;  %v7385_v60 = vsub.f32 %v7338_v37, %v11672_v51 }
  0x1e   :  { %v131_v53 = vand.u32 4294901760, %v130_v44  ;;  %v11667_v61 = vand.u32 4294901760, %v7359_v47  ;;  %v7395_v1 = vsub.f32 %v7353_v41, %v11670_v54  ;;  %v11666_v2 = vand.u32 4294901760, %v7364_v52  ;;  %v7423_v44 = vld [vmem:[#allocation2 + $0x58] sm:$0xff]  ;;  %v7453_v54 = vld [vmem:[#allocation2 + $0x40] sm:$0xff] }
  0x1f   :  { %12314 = vst [vmem:[#allocation9_spill] sm:$0xff] %v7375_v58  ;;  %12315 = vst [vmem:[#allocation10_spill] sm:$0xff] %v7380_v59  ;;  %v7405_v8 = vsub.f32 %v7355_v42, %v11668_v55  ;;  %v11669_v31 = vand.u32 4294901760, %v7368_v56  ;;  %v11671_v33 = vand.u32 4294901760, %v7370_v57  ;;  %v11674_v38 = vand.u32 4294901760, %v7388_v62  ;;  %v7609_v59 = vld [vmem:[#allocation2 + $0xa8] sm:$0xff] }
  0x20   :  { %12316 = vst [vmem:[#allocation11_spill] sm:$0xff] %v7385_v60  ;;  %132 = vmatmul.mubr.f32.vlgmr.msra.gmra.mrb[0].mxu0 %v131_v53  ;;  %597 = vmatmul.mubr.f32.vlgmr.msra.gmra.mrb[0].mxu1 %v131_v53  ;;  %12317 = vst [vmem:[#allocation12_spill] sm:$0xff] %v7395_v1  ;;  %v7410_v11 = vsub.f32 %v7359_v47, %v11667_v61  ;;  %v7419_v34 = vsub.f32 %v7364_v52, %v11666_v2  ;;  %v11676_v43 = vand.u32 4294901760, %v7390_v63  ;;  %v7441_v61 = vld [vmem:[#allocation2 + $0x258] sm:$0xff]  ;;  %v7630_v58 = vld [vmem:[#allocation2 + $0x2a8] sm:$0xff] }
  0x21   :  { %614 = vmatpush1.msra.mxu1 %v613_v45  ;;  %149 = vmatpush1.msra.mxu0 %v148_v48  ;;  %12318 = vst [vmem:[#allocation13_spill] sm:$0xff] %v7405_v8  ;;  %v7425_v45 = vld [vmem:[#allocation2 + $0x248] sm:$0xff]  ;;  %v7432_v46 = vsub.f32 %v7368_v56, %v11669_v31  ;;  %v7437_v48 = vsub.f32 %v7370_v57, %v11671_v33  ;;  %v11681_v53 = vand.u32 4294901760, %v7398_v3  ;;  %v11682_v2 = vand.u32 4294901760, %v7400_v7  ;;  %v7455_v33 = vld [vmem:[#allocation2 + $0x50] sm:$0xff] }
  0x22   :  { %12319 = vst [vmem:[#allocation14_spill] sm:$0xff] %v7410_v11  ;;  %212 = vmatprep.mubr.f32.mxu0 %v11689_v0  ;;  %677 = vmatprep.mubr.f32.mxu1 %v11689_v0  ;;  %12320 = vst [vmem:[#allocation15_spill] sm:$0xff] %v7419_v34  ;;  %v7446_v55 = vsub.f32 %v7388_v62, %v11674_v38  ;;  %v7451_v31 = vsub.f32 %v7390_v63, %v11676_v43  ;;  %v11686_v50 = vand.u32 4294901760, %v7423_v44  ;;  %v7469_v43 = vld [vmem:[#allocation2 + $0x240] sm:$0xff]  ;;  %v7561_v34 = vld [vmem:[#allocation2 + $0x98] sm:$0xff] }
  0x23   :  { %687 = vmatprep.subr.mxu1 %v7286_v15  ;;  %222 = vmatprep.subr.mxu0 %v7291_v17  ;;  %12321 = vst [vmem:[#allocation16_spill] sm:$0xff] %v7432_v46  ;;  %12322 = vst [vmem:[#allocation17_spill] sm:$0xff] %v7437_v48  ;;  %v7460_v51 = vsub.f32 %v7398_v3, %v11681_v53  ;;  %v7466_v38 = vsub.f32 %v7400_v7, %v11682_v2  ;;  %v11688_v49 = vand.u32 4294901760, %v7425_v45  ;;  %v7543_v48 = vld [vmem:[#allocation2 + $0x88] sm:$0xff] }
  0x24   :  { %12323 = vst [vmem:[#allocation18_spill] sm:$0xff] %v7446_v55  ;;  %12324 = vst [vmem:[#allocation19_spill] sm:$0xff] %v7451_v31  ;;  %v11693_v21 = vand.u32 4294901760, %v7441_v61  ;;  %v7481_v53 = vsub.f32 %v7423_v44, %v11686_v50  ;;  %v12339_v0 = vand.u32 4294901760, %v7473_v29  ;;  %v11709_v31 = vand.u32 4294901760, %v7490_v26  ;;  %v7541_v55 = vld [vmem:[#allocation2 + $0x270] sm:$0xff] }
  0x25   :  { %12325 = vst [vmem:[#allocation20_spill] sm:$0xff] %v7460_v51  ;;  %12326 = vst [vmem:[#allocation21_spill] sm:$0xff] %v7466_v38  ;;  %v7486_v2 = vsub.f32 %v7425_v45, %v11688_v49  ;;  %v7519_v49 = vld [vmem:[#allocation2 + $0x70] sm:$0xff]  ;;  %v12334_v38 = vmov 0.0   ;;  %v12335_v51 = vand.u32 4294901760, %v7469_v43  ;;  %v7563_v11 = vld [vmem:[#allocation2 + $0x288] sm:$0xff] }
  0x26   :  { %12327 = vst [vmem:[#allocation22_spill] sm:$0xff] %v7481_v53  ;;  %v7497_v50 = vsub.f32 %v7441_v61, %v11693_v21  ;;  %v12332_v21 = vand.u32 4294901760, %v7455_v33  ;;  %v12347_v46 = vand.u32 4294901760, %v7519_v49  ;;  %v12353_v60 = vand.u32 4294901760, %v7543_v48  ;;  %12356 = vst [vmem:[#allocation41_spill] sm:$0xff] %v7609_v59 }
  0x27   :  { %12328 = vst [vmem:[#allocation23_spill] sm:$0xff] %v7486_v2  ;;  %v12330_v2 = vand.u32 4294901760, %v7453_v54  ;;  %v12365_v39 = vand.u32 4294901760, %v7286_v15  ;;  %v12366_v28 = vand.u32 4294901760, %v7291_v17 }
  0x28   :  { %214 = vmatmul.mubr.f32.vlgmr.msra.gmra.mrb[0].mxu0 %v7288_v16  ;;  %679 = vmatmul.mubr.f32.vlgmr.msra.gmra.mrb[0].mxu1 %v7288_v16  ;;  %12329 = vst [vmem:[#allocation24_spill] sm:$0xff] %v7497_v50  ;;  %v7516_v23 = vsub.f32 %v7455_v33, %v12332_v21  ;;  %v7521_v50 = vld [vmem:[#allocation2 + $0x260] sm:$0xff]  ;;  %v7582_v8 = vsub.f32 %v7519_v49, %v12347_v46 }
  0x29   :  { %690 = vmatpush1.msra.mxu1 %v7283_v14  ;;  %225 = vmatpush1.msra.mxu0 %v7300_v20  ;;  %v7511_v53 = vsub.f32 %v7453_v54, %v12330_v2  ;;  %v7528_v2 = vsub.f32 %v7469_v43, %v12335_v51  ;;  %v12341_v51 = vand.u32 4294901760, %v7476_v13  ;;  %v12349_v1 = vand.u32 4294901760, %v7521_v50 }
  0x2a   :  { %12333 = vst [vmem:[#allocation26_spill] sm:$0xff] %v7516_v23  ;;  %288 = vmatprep.mubr.f32.mxu0 %v12334_v38  ;;  %753 = vmatprep.mubr.f32.mxu1 %v12334_v38  ;;  %v7538_v23 = vsub.f32 %v7473_v29, %v12339_v0  ;;  %v11715_v0 = vand.u32 4294901760, %v7504_v25  ;;  %12348 = vst [vmem:[#allocation35_spill] sm:$0xff] %v7582_v8  ;;  %v7602_v46 = vsub.f32 %v7543_v48, %v12353_v60 }
  0x2b   :  { %12331 = vst [vmem:[#allocation25_spill] sm:$0xff] %v7511_v53  ;;  %12336 = vst [vmem:[#allocation27_spill] sm:$0xff] %v7528_v2  ;;  %v12337_v53 = vand.u32 4294901760, %v7471_v30  ;;  %763 = vmatprep.subr.mxu1 %v7261_v4  ;;  %298 = vmatprep.subr.mxu0 %v7263_v5  ;;  %v12358_v60 = vand.u32 4294901760, %v7561_v34 }
  0x2c   :  { %12340 = vst [vmem:[#allocation29_spill] sm:$0xff] %v7538_v23  ;;  %v7557_v23 = vsub.f32 %v7490_v26, %v11709_v31  ;;  %v11721_v31 = vand.u32 4294901760, %v7541_v55  ;;  %12354 = vst [vmem:[#allocation39_spill] sm:$0xff] %v7602_v46  ;;  %v12360_v46 = vand.u32 4294901760, %v7563_v11 }
  0x2d   :  { %v7533_v21 = vsub.f32 %v7471_v30, %v12337_v53  ;;  %v7550_v53 = vsub.f32 %v7476_v13, %v12341_v51  ;;  %v7621_v8 = vsub.f32 %v7561_v34, %v12358_v60 }
  0x2e   :  { %12343 = vst [vmem:[#allocation31_spill] sm:$0xff] %v7557_v23  ;;  %v7577_v23 = vld [vmem:[#allocation2 + $0x298] sm:$0xff]  ;;  %v7596_v2 = vsub.f32 %v7541_v55, %v11721_v31  ;;  %v7644_v31 = vld [vmem:[#allocation2 + $0xa0] sm:$0xff] }
  0x2f   :  { %12338 = vst [vmem:[#allocation28_spill] sm:$0xff] %v7533_v21  ;;  %12342 = vst [vmem:[#allocation30_spill] sm:$0xff] %v7550_v53  ;;  %v11713_v21 = vand.u32 4294901760, %v7502_v27  ;;  %v7573_v53 = vsub.f32 %v7504_v25, %v11715_v0  ;;  %v7591_v0 = vld [vmem:[#allocation2 + $0x90] sm:$0xff]  ;;  %v12362_v40 = vand.u32 4294901760, %v7577_v23 }
  0x30   :  { %12346 = vst [vmem:[#allocation34_spill] sm:$0xff] %v7577_v23  ;;  %12351 = vst [vmem:[#allocation37_spill] sm:$0xff] %v7591_v0  ;;  %291 = vmatmul.mubr.f32.vlgmr.msra.gmra.mrb[0].mxu0 %v7310_v24  ;;  %756 = vmatmul.mubr.f32.vlgmr.msra.gmra.mrb[0].mxu1 %v7310_v24  ;;  %v7642_v24 = vld [vmem:[#allocation2 + $0x2b8] sm:$0xff] }
  0x31   :  { %v7568_v51 = vsub.f32 %v7502_v27, %v11713_v21  ;;  %12345 = vst [vmem:[#allocation33_spill] sm:$0xff] %v7573_v53  ;;  %v7587_v21 = vsub.f32 %v7521_v50, %v12349_v1  ;;  %12352 = vst [vmem:[#allocation38_spill] sm:$0xff] %v7596_v2  ;;  %v7605_v1 = vld [vmem:[#allocation2 + $0x280] sm:$0xff]  ;;  %v7614_v53 = vld [vmem:[#allocation2 + $0xb8] sm:$0xff]  ;;  %765 = vmatpush1.msra.mxu1 %v7265_v6  ;;  %300 = vmatpush1.msra.mxu0 %v7275_v10 }
  0x32   :  { %12357 = vst [vmem:[#allocation42_spill] sm:$0xff] %v7614_v53  ;;  %12359 = vst [vmem:[#allocation43_spill] sm:$0xff] %v7621_v8  ;;  %v7626_v2 = vsub.f32 %v7563_v11, %v12360_v46  ;;  %363 = vmatprep.mubr.f32.mxu0 %v12334_v38  ;;  %828 = vmatprep.mubr.f32.mxu1 %v12334_v38  ;;  %v7637_v60 = vsub.f32 %v7577_v23, %v12362_v40  ;;  %v12369_v8 = vand.u32 4294901760, %v7591_v0  ;;  %v7663_v23 = vld [vmem:[#allocation2 + $0x2a0] sm:$0xff] }
  0x33   :  { %12344 = vst [vmem:[#allocation32_spill] sm:$0xff] %v7568_v51  ;;  %12350 = vst [vmem:[#allocation36_spill] sm:$0xff] %v7587_v21  ;;  %v7589_v51 = vld [vmem:[#allocation2 + $0x80] sm:$0xff]  ;;  %v7607_v21 = vld [vmem:[#allocation2 + $0x290] sm:$0xff]  ;;  %841 = vmatprep.subr.mxu1 %v12365_v39  ;;  %376 = vmatprep.subr.mxu0 %v12366_v28  ;;  %v12372_v15 = vand.u32 4294901760, %v7605_v1  ;;  %v12376_v39 = vand.u32 4294901760, %v7609_v59 }
  0x34   :  { %12355 = vst [vmem:[#allocation40_spill] sm:$0xff] %v7607_v21  ;;  %12361 = vst [vmem:[#allocation44_spill] sm:$0xff] %v7626_v2  ;;  %v12367_v22 = vand.u32 4294901760, %v7589_v51  ;;  %v7658_v46 = vsub.f32 %v7591_v0, %v12369_v8  ;;  %v12374_v28 = vand.u32 4294901760, %v7607_v21  ;;  %v11743_v2 = vand.u32 4294901760, %v7630_v58 }
  0x35   :  { %12363 = vst [vmem:[#allocation45_spill] sm:$0xff] %v7637_v60  ;;  %12364 = vst [vmem:[#allocation46_spill] sm:$0xff] %v7644_v31  ;;  %v7661_v60 = vld [vmem:[#allocation2 + $0xb0] sm:$0xff]  ;;  %v7668_v17 = vsub.f32 %v7605_v1, %v12372_v15  ;;  %v7678_v8 = vsub.f32 %v7609_v59, %v12376_v39  ;;  %v12379_v0 = vand.u32 4294901760, %v7614_v53 }
  0x36   :  { %v7653_v40 = vsub.f32 %v7589_v51, %v12367_v22  ;;  %12370 = vst [vmem:[#allocation48_spill] sm:$0xff] %v7658_v46  ;;  %12371 = vst [vmem:[#allocation49_spill] sm:$0xff] %v7661_v60  ;;  %v7673_v22 = vsub.f32 %v7607_v21, %v12374_v28  ;;  %v7681_v46 = vld [vmem:[#allocation2 + $0x2b0] sm:$0xff]  ;;  %v11746_v28 = vand.u32 4294901760, %v7644_v31  ;;  %v7697_v39 = vsub.f32 %v7630_v58, %v11743_v2  ;;  %v7701_v21 = vld [vmem:[#allocation2 + $0x2c8] sm:$0xff] }
  0x37   :  { %12373 = vst [vmem:[#allocation50_spill] sm:$0xff] %v7668_v17  ;;  %12377 = vst [vmem:[#allocation52_spill] sm:$0xff] %v7678_v8  ;;  %v7688_v15 = vsub.f32 %v7614_v53, %v12379_v0  ;;  %v11745_v17 = vand.u32 4294901760, %v7642_v24  ;;  %v7717_v8 = vld [vmem:[#allocation2 + $0xc0] sm:$0xff]  ;;  %v12390_v2 = vand.u32 4294901760, %v7283_v14  ;;  %v11756_v14 = vand.u32 4294901760, %v7701_v21 }
  0x38   :  { %12368 = vst [vmem:[#allocation47_spill] sm:$0xff] %v7653_v40  ;;  %12375 = vst [vmem:[#allocation51_spill] sm:$0xff] %v7673_v22  ;;  %v7683_v40 = vld [vmem:[#allocation2 + $0xc8] sm:$0xff]  ;;  %v7692_v22 = vld [vmem:[#allocation2 + $0xd8] sm:$0xff]  ;;  %367 = vmatmul.mubr.f32.vlgmr.msra.gmra.mrb[0].mxu0 %v7326_v32  ;;  %832 = vmatmul.mubr.f32.vlgmr.msra.gmra.mrb[0].mxu1 %v7326_v32 }
  0x39   :  { %12378 = vst [vmem:[#allocation53_spill] sm:$0xff] %v7683_v40  ;;  %12380 = vst [vmem:[#allocation54_spill] sm:$0xff] %v7688_v15  ;;  %v7706_v0 = vsub.f32 %v7642_v24, %v11745_v17  ;;  %v7711_v15 = vsub.f32 %v7644_v31, %v11746_v28  ;;  %v12386_v17 = vand.u32 4294901760, %v7661_v60  ;;  %v7729_v53 = vld [vmem:[#allocation2 + $0x2c0] sm:$0xff]  ;;  %845 = vmatpush1.msra.mxu1 %v12390_v2  ;;  %v12392_v31 = vand.u32 4294901760, %v7663_v23  ;;  %v7751_v2 = vld [vmem:[#allocation2 + $0x2d0] sm:$0xff] }
  0x3a   :  { %12381 = vst [vmem:[#allocation55_spill] sm:$0xff] %v7697_v39  ;;  %12382 = vst [vmem:[#allocation56_spill] sm:$0xff] %v7701_v21  ;;  %v7715_v39 = vld [vmem:[#allocation2 + $0x2d8] sm:$0xff]  ;;  %v12396_v28 = vand.u32 4294901760, %v7683_v40  ;;  %443 = vmatprep.mubr.f32.mxu0 %v12334_v38  ;;  %908 = vmatprep.mubr.f32.mxu1 %v12334_v38 }
  0x3b   :  { %12383 = vst [vmem:[#allocation57_spill] sm:$0xff] %v7706_v0  ;;  %12384 = vst [vmem:[#allocation58_spill] sm:$0xff] %v7711_v15  ;;  %v7724_v59 = vsub.f32 %v7661_v60, %v12386_v17  ;;  %v7727_v15 = vld [vmem:[#allocation2 + $0xd0] sm:$0xff]  ;;  %v12391_v0 = vand.u32 4294901760, %v7300_v20  ;;  %v7738_v32 = vsub.f32 %v7663_v23, %v12392_v31  ;;  %v12394_v17 = vand.u32 4294901760, %v7681_v46  ;;  %v7753_v20 = vld [vmem:[#allocation2 + $0xe8] sm:$0xff]  ;;  %917 = vmatprep.subr.mxu1 %v7261_v4 }
  0x3c   :  { %12385 = vst [vmem:[#allocation59_spill] sm:$0xff] %v7715_v39  ;;  %12388 = vst [vmem:[#allocation61_spill] sm:$0xff] %v7727_v15  ;;  %v7748_v60 = vsub.f32 %v7683_v40, %v12396_v28  ;;  %v12400_v31 = vand.u32 4294901760, %v7692_v22  ;;  %v7773_v40 = vld [vmem:[#allocation2 + $0xf8] sm:$0xff]  ;;  %v12404_v4 = vand.u32 4294901760, %v7717_v8 }
  0x3d   :  { %12387 = vst [vmem:[#allocation60_spill] sm:$0xff] %v7724_v59  ;;  %12389 = vst [vmem:[#allocation62_spill] sm:$0xff] %v7729_v53  ;;  %380 = vmatpush1.msra.mxu0 %v12391_v0  ;;  %v7743_v59 = vsub.f32 %v7681_v46, %v12394_v17  ;;  %v11760_v17 = vand.u32 4294901760, %v7715_v39 }
  0x3e   :  { %12393 = vst [vmem:[#allocation63_spill] sm:$0xff] %v7738_v32  ;;  %12397 = vst [vmem:[#allocation65_spill] sm:$0xff] %v7748_v60  ;;  %v7760_v0 = vsub.f32 %v7692_v22, %v12400_v31  ;;  %452 = vmatprep.subr.mxu0 %v7263_v5  ;;  %v7769_v60 = vsub.f32 %v7701_v21, %v11756_v14  ;;  %v7775_v31 = vld [vmem:[#allocation2 + $0x2e8] sm:$0xff]  ;;  %v7785_v5 = vsub.f32 %v7717_v8, %v12404_v4 }
  0x3f   :  { %12395 = vst [vmem:[#allocation64_spill] sm:$0xff] %v7743_v59  ;;  %12398 = vst [vmem:[#allocation66_spill] sm:$0xff] %v7751_v2  ;;  %v7780_v28 = vsub.f32 %v7715_v39, %v11760_v17  ;;  %v12406_v32 = vand.u32 4294901760, %v7273_v9  ;;  %v12409_v17 = vand.u32 4294901760, %v7293_v18  ;;  %v12412_v4 = vand.u32 4294901760, %v7727_v15  ;;  %v7813_v9 = vld [vmem:[#allocation2 + $0xe0] sm:$0xff] }
  0x40   :  { %12399 = vst [vmem:[#allocation67_spill] sm:$0xff] %v7753_v20  ;;  %12401 = vst [vmem:[#allocation68_spill] sm:$0xff] %v7760_v0  ;;  %v12407_v0 = vand.u32 4294901760, %v7277_v12  ;;  %v12414_v59 = vand.u32 4294901760, %v7729_v53  ;;  %v7815_v12 = vld [vmem:[#allocation2 + $0xf0] sm:$0xff]  ;;  %v12416_v18 = vand.u32 4294901760, %v7751_v2  ;;  %445 = vmatmul.mubr.f32.vlgmr.msra.gmra.mrb[0].mxu0 %v7288_v16  ;;  %910 = vmatmul.mubr.f32.vlgmr.msra.gmra.mrb[0].mxu1 %v7288_v16 }
  0x41   :  { %12402 = vst [vmem:[#allocation69_spill] sm:$0xff] %v7769_v60  ;;  %12403 = vst [vmem:[#allocation70_spill] sm:$0xff] %v7780_v28  ;;  %v7789_v60 = vld [vmem:[#allocation2 + $0x2f8] sm:$0xff]  ;;  %v12410_v28 = vand.u32 4294901760, %v7295_v19  ;;  %v7806_v14 = vsub.f32 %v7727_v15, %v12412_v4  ;;  %v7831_v4 = vld [vmem:[#allocation2 + $0x2f0] sm:$0xff]  ;;  %919 = vmatpush1.msra.mxu1 %v7265_v6  ;;  %454 = vmatpush1.msra.mxu0 %v7275_v10  ;;  %v12435_v6 = vand.u32 4294901760, %v7364_v52 }
  0x42   :  { %12405 = vst [vmem:[#allocation71_spill] sm:$0xff] %v7785_v5  ;;  %v7795_v21 = vpack.c.bf16 %v12407_v0, %v12406_v32  ;;  %v7811_v5 = vsub.f32 %v7729_v53, %v12414_v59  ;;  %v7820_v19 = vsub.f32 %v7751_v2, %v12416_v18  ;;  %v12418_v0 = vand.u32 4294901760, %v7753_v20  ;;  %v7829_v59 = vld [vmem:[#allocation2 + $0x2e0] sm:$0xff]  ;;  %v7854_v15 = vld [vmem:[#allocation2 + $0x118] sm:$0xff]  ;;  %517 = vmatprep.mubr.f32.mxu0 %v12334_v38 }
  0x43   :  { %v7801_v39 = vpack.c.bf16 %v12410_v28, %v12409_v17  ;;  %12413 = vst [vmem:[#allocation74_spill] sm:$0xff] %v7806_v14  ;;  %v12420_v14 = vand.u32 4294901760, %v7334_v35  ;;  %v12421_v18 = vand.u32 4294901760, %v7336_v36  ;;  %v12423_v32 = vand.u32 4294901760, %v7338_v37  ;;  %982 = vmatprep.mubr.f32.mxu1 %v12334_v38  ;;  %v7907_v38 = vld [vmem:[#allocation2 + $0x300] sm:$0xff] }
  0x44   :  { %12408 = vst [vmem:[#allocation72_spill] sm:$0xff] %v7795_v21  ;;  %12415 = vst [vmem:[#allocation75_spill] sm:$0xff] %v7811_v5  ;;  %v7826_v17 = vsub.f32 %v7753_v20, %v12418_v0  ;;  %v7833_v5 = vld [vmem:[#allocation2 + $0x108] sm:$0xff]  ;;  %v12424_v2 = vand.u32 4294901760, %v7353_v41  ;;  %v12426_v28 = vand.u32 4294901760, %v7355_v42  ;;  %v11772_v53 = vand.u32 4294901760, %v7789_v60  ;;  %5965 = vmatprep.subr.bf16.mxu0 %v7795_v21 }
  0x45   :  { %12411 = vst [vmem:[#allocation73_spill] sm:$0xff] %v7801_v39  ;;  %12417 = vst [vmem:[#allocation76_spill] sm:$0xff] %v7820_v19  ;;  %v7839_v19 = vpack.c.bf16 %v12421_v18, %v12420_v14  ;;  %v12429_v35 = vand.u32 4294901760, %v7773_v40  ;;  %v12431_v37 = vand.u32 4294901760, %v7775_v31  ;;  %v11774_v42 = vand.u32 4294901760, %v7813_v9  ;;  %v7870_v14 = vld [vmem:[#allocation2 + $0x308] sm:$0xff]  ;;  %6349 = vmatprep.subr.bf16.mxu1 %v7801_v39 }
  0x46   :  { %12419 = vst [vmem:[#allocation77_spill] sm:$0xff] %v7826_v17  ;;  %v7845_v0 = vpack.c.bf16 %v12424_v2, %v12423_v32  ;;  %v12427_v17 = vand.u32 4294901760, %v7359_v47  ;;  %v11773_v47 = vand.u32 4294901760, %v7815_v12  ;;  %v7877_v2 = vsub.f32 %v7789_v60, %v11772_v53  ;;  %v7882_v18 = vld [vmem:[#allocation2 + $0x318] sm:$0xff]  ;;  %v7905_v32 = vld [vmem:[#allocation2 + $0x110] sm:$0xff]  ;;  %v7929_v39 = vld [vmem:[#allocation2 + $0x128] sm:$0xff] }
  0x47   :  { %12422 = vst [vmem:[#allocation78_spill] sm:$0xff] %v7839_v19  ;;  %v7861_v36 = vsub.f32 %v7773_v40, %v12429_v35  ;;  %v7866_v41 = vsub.f32 %v7775_v31, %v12431_v37  ;;  %v7884_v35 = vld [vmem:[#allocation2 + $0x100] sm:$0xff]  ;;  %v12436_v10 = vand.u32 4294901760, %v7368_v56  ;;  %v7897_v53 = vsub.f32 %v7813_v9, %v11774_v42  ;;  %v7927_v21 = vld [vmem:[#allocation2 + $0x310] sm:$0xff] }
  0x48   :  { %12425 = vst [vmem:[#allocation79_spill] sm:$0xff] %v7845_v0  ;;  %v7851_v20 = vpack.c.bf16 %v12427_v17, %v12426_v28  ;;  %12433 = vst [vmem:[#allocation83_spill] sm:$0xff] %v7877_v2  ;;  %v7902_v28 = vsub.f32 %v7815_v12, %v11773_v47  ;;  %v12440_v52 = vand.u32 4294901760, %v7829_v59  ;;  %v12444_v47 = vand.u32 4294901760, %v7833_v5  ;;  %519 = vmatmul.mubr.f32.vlgmr.msra.gmra.mrb[0].mxu0 %v7288_v16 }
  0x49   :  { %12430 = vst [vmem:[#allocation81_spill] sm:$0xff] %v7861_v36  ;;  %12432 = vst [vmem:[#allocation82_spill] sm:$0xff] %v7866_v41  ;;  %v7892_v37 = vpack.c.bf16 %v12436_v10, %v12435_v6  ;;  %v12442_v6 = vand.u32 4294901760, %v7831_v4  ;;  %v12451_v17 = vand.u32 4294901760, %v7390_v63  ;;  %v12463_v41 = vand.u32 4294901760, %v7425_v45  ;;  %984 = vmatmul.mubr.f32.vlgmr.msra.gmra.mrb[0].mxu1 %v7288_v16  ;;  %5967 = vmatpush1.bf16.msra.mxu0 %v7839_v19 }
  0x4a   :  { %12428 = vst [vmem:[#allocation80_spill] sm:$0xff] %v7851_v20  ;;  %12434 = vst [vmem:[#allocation84_spill] sm:$0xff] %v7884_v35  ;;  %v7914_v56 = vsub.f32 %v7829_v59, %v12440_v52  ;;  %v7924_v42 = vsub.f32 %v7833_v5, %v12444_v47  ;;  %v12447_v52 = vand.u32 4294901760, %v7388_v62  ;;  %v7959_v47 = vld [vmem:[#allocation2 + $0x328] sm:$0xff]  ;;  %v12468_v36 = vand.u32 4294901760, %v7907_v38  ;;  %6351 = vmatpush1.bf16.msra.mxu1 %v7845_v0 }
  0x4b   :  { %12437 = vst [vmem:[#allocation85_spill] sm:$0xff] %v7892_v37  ;;  %12438 = vst [vmem:[#allocation86_spill] sm:$0xff] %v7897_v53  ;;  %v7919_v10 = vsub.f32 %v7831_v4, %v12442_v6  ;;  %v12449_v6 = vand.u32 4294901760, %v7854_v15  ;;  %v12452_v53 = vand.u32 4294901760, %v7398_v3  ;;  %v12458_v3 = vand.u32 4294901760, %v7884_v35  ;;  %5969 = vmatprep.subr.bf16.mxu0 %v7851_v20  ;;  %6353 = vmatprep.subr.bf16.mxu1 %v7892_v37 }
  0x4c   :  { %12439 = vst [vmem:[#allocation87_spill] sm:$0xff] %v7902_v28  ;;  %12441 = vst [vmem:[#allocation88_spill] sm:$0xff] %v7914_v56  ;;  %v12446_v28 = vand.u32 4294901760, %v7370_v57  ;;  %v12454_v57 = vand.u32 4294901760, %v7870_v14  ;;  %v12474_v16 = vand.u32 4294901760, %v7453_v54  ;;  %v12479_v54 = vand.u32 4294901760, %v7959_v47 }
  0x4d   :  { %12443 = vst [vmem:[#allocation89_spill] sm:$0xff] %v7919_v10  ;;  %12445 = vst [vmem:[#allocation90_spill] sm:$0xff] %v7924_v42  ;;  %v7940_v10 = vsub.f32 %v7854_v15, %v12449_v6  ;;  %v7948_v2 = vpack.c.bf16 %v12452_v53, %v12451_v17  ;;  %v7957_v6 = vld [vmem:[#allocation2 + $0x138] sm:$0xff]  ;;  %v12456_v42 = vand.u32 4294901760, %v7882_v18  ;;  %v7969_v53 = vsub.f32 %v7884_v35, %v12458_v3 }
  0x4e   :  { %v7935_v56 = vpack.c.bf16 %v12447_v52, %v12446_v28  ;;  %v7953_v62 = vsub.f32 %v7870_v14, %v12454_v57  ;;  %v7973_v28 = vld [vmem:[#allocation2 + $0x338] sm:$0xff]  ;;  %v7975_v52 = vld [vmem:[#allocation2 + $0x120] sm:$0xff]  ;;  %v12464_v3 = vand.u32 4294901760, %v7441_v61  ;;  %v12466_v57 = vand.u32 4294901760, %v7905_v32 }
  0x4f   :  { %12450 = vst [vmem:[#allocation92_spill] sm:$0xff] %v7940_v10  ;;  %12453 = vst [vmem:[#allocation93_spill] sm:$0xff] %v7948_v2  ;;  %v7964_v63 = vsub.f32 %v7882_v18, %v12456_v42  ;;  %v12460_v10 = vand.u32 4294901760, %v7400_v7  ;;  %v12461_v42 = vand.u32 4294901760, %v7423_v44  ;;  %v7999_v35 = vsub.f32 %v7907_v38, %v12468_v36  ;;  %v8001_v7 = vld [vmem:[#allocation2 + $0x320] sm:$0xff]  ;;  %v8003_v44 = vld [vmem:[#allocation2 + $0x330] sm:$0xff]  ;;  %6355 = vmatpush1.bf16.msra.mxu1 %v7948_v2 }
  0x50   :  { %12448 = vst [vmem:[#allocation91_spill] sm:$0xff] %v7935_v56  ;;  %12455 = vst [vmem:[#allocation94_spill] sm:$0xff] %v7953_v62  ;;  %v7977_v62 = vld [vmem:[#allocation2 + $0x130] sm:$0xff]  ;;  %v7994_v17 = vsub.f32 %v7905_v32, %v12466_v57  ;;  %v12470_v61 = vand.u32 4294901760, %v7927_v21  ;;  %v12482_v37 = vand.u32 4294901760, %v7471_v30  ;;  %v12485_v0 = vand.u32 4294901760, %v7476_v13  ;;  %5971 = vmatpush1.bf16.msra.mxu0 %v7935_v56 }
  0x51   :  { %12457 = vst [vmem:[#allocation95_spill] sm:$0xff] %v7964_v63  ;;  %12459 = vst [vmem:[#allocation96_spill] sm:$0xff] %v7969_v53  ;;  %v7983_v63 = vpack.c.bf16 %v12461_v42, %v12460_v10  ;;  %v7989_v53 = vpack.c.bf16 %v12464_v3, %v12463_v41  ;;  %v12472_v10 = vand.u32 4294901760, %v7929_v39  ;;  %v12475_v42 = vand.u32 4294901760, %v7455_v33  ;;  %v8044_v41 = vld [vmem:[#allocation2 + $0x148] sm:$0xff]  ;;  %v8072_v30 = vld [vmem:[#allocation2 + $0x358] sm:$0xff] }
  0x52   :  { %12467 = vst [vmem:[#allocation99_spill] sm:$0xff] %v7994_v17  ;;  %12469 = vst [vmem:[#allocation100_spill] sm:$0xff] %v7999_v35  ;;  %v8010_v45 = vsub.f32 %v7927_v21, %v12470_v61  ;;  %v8040_v33 = vsub.f32 %v7959_v47, %v12479_v54  ;;  %v12481_v61 = vand.u32 4294901760, %v7469_v43  ;;  %v12489_v19 = vand.u32 4294901760, %v7975_v52  ;;  %v8070_v43 = vld [vmem:[#allocation2 + $0x348] sm:$0xff]  ;;  %v8117_v35 = vld [vmem:[#allocation2 + $0x350] sm:$0xff] }
  0x53   :  { %12462 = vst [vmem:[#allocation97_spill] sm:$0xff] %v7983_v63  ;;  %12465 = vst [vmem:[#allocation98_spill] sm:$0xff] %v7989_v53  ;;  %v8016_v36 = vsub.f32 %v7929_v39, %v12472_v10  ;;  %v8025_v3 = vpack.c.bf16 %v12475_v42, %v12474_v16  ;;  %v12477_v10 = vand.u32 4294901760, %v7957_v6  ;;  %v12487_v16 = vand.u32 4294901760, %v7973_v28  ;;  %5973 = vmatprep.subr.bf16.mxu0 %v7983_v63  ;;  %v8164_v63 = vld [vmem:[#allocation2 + $0x378] sm:$0xff]  ;;  %v8166_v2 = vld [vmem:[#allocation2 + $0x160] sm:$0xff] }
  0x54   :  { %12471 = vst [vmem:[#allocation101_spill] sm:$0xff] %v8010_v45  ;;  %12480 = vst [vmem:[#allocation105_spill] sm:$0xff] %v8040_v33  ;;  %v8046_v45 = vld [vmem:[#allocation2 + $0x158] sm:$0xff]  ;;  %v8052_v20 = vpack.c.bf16 %v12482_v37, %v12481_v61  ;;  %v8068_v33 = vsub.f32 %v7975_v52, %v12489_v19  ;;  %v8074_v37 = vld [vmem:[#allocation2 + $0x140] sm:$0xff]  ;;  %v12491_v13 = vand.u32 4294901760, %v7490_v26  ;;  %v12494_v61 = vand.u32 4294901760, %v7977_v62  ;;  %6357 = vmatprep.subr.bf16.mxu1 %v7989_v53 }
  0x55   :  { %12473 = vst [vmem:[#allocation102_spill] sm:$0xff] %v8016_v36  ;;  %12476 = vst [vmem:[#allocation103_spill] sm:$0xff] %v8025_v3  ;;  %v8035_v57 = vsub.f32 %v7957_v6, %v12477_v10  ;;  %v12484_v10 = vand.u32 4294901760, %v7473_v29  ;;  %v8063_v42 = vsub.f32 %v7973_v28, %v12487_v16  ;;  %v12492_v29 = vand.u32 4294901760, %v7502_v27  ;;  %v8097_v26 = vld [vmem:[#allocation2 + $0x150] sm:$0xff]  ;;  %v8099_v27 = vld [vmem:[#allocation2 + $0x340] sm:$0xff]  ;;  %5975 = vmatpush1.bf16.msra.mxu0 %v8025_v3 }
  0x56   :  { %12483 = vst [vmem:[#allocation106_spill] sm:$0xff] %v8052_v20  ;;  %12490 = vst [vmem:[#allocation109_spill] sm:$0xff] %v8068_v33  ;;  %v8085_v16 = vsub.f32 %v7977_v62, %v12494_v61  ;;  %v12496_v19 = vand.u32 4294901760, %v8001_v7  ;;  %v12497_v33 = vand.u32 4294901760, %v8003_v44  ;;  %v11811_v36 = vand.u32 4294901760, %v8046_v45  ;;  %6359 = vmatpush1.bf16.msra.mxu1 %v8052_v20  ;;  %v12515_v56 = vld [vmem:[#allocation34_spill] sm:$0xff] }
  0x57   :  { %12478 = vst [vmem:[#allocation104_spill] sm:$0xff] %v8035_v57  ;;  %v8058_v54 = vpack.c.bf16 %v12485_v0, %v12484_v10  ;;  %12488 = vst [vmem:[#allocation108_spill] sm:$0xff] %v8063_v42  ;;  %v8080_v0 = vpack.c.bf16 %v12492_v29, %v12491_v13  ;;  %v12498_v13 = vand.u32 4294901760, %v7504_v25  ;;  %v12499_v29 = vand.u32 4294901760, %v7519_v49  ;;  %v8189_v20 = vld [vmem:[#allocation2 + $0x360] sm:$0xff] }
  0x58   :  { %12495 = vst [vmem:[#allocation111_spill] sm:$0xff] %v8085_v16  ;;  %v8090_v10 = vsub.f32 %v8001_v7, %v12496_v19  ;;  %v8095_v42 = vsub.f32 %v8003_v44, %v12497_v33  ;;  %v12501_v19 = vand.u32 4294901760, %v7521_v50  ;;  %v12502_v16 = vand.u32 4294901760, %v7541_v55  ;;  %v8146_v55 = vld [vmem:[#allocation2 + $0x368] sm:$0xff] }
  0x59   :  { %12486 = vst [vmem:[#allocation107_spill] sm:$0xff] %v8058_v54  ;;  %12493 = vst [vmem:[#allocation110_spill] sm:$0xff] %v8080_v0  ;;  %v8107_v61 = vpack.c.bf16 %v12499_v29, %v12498_v13  ;;  %v11808_v57 = vand.u32 4294901760, %v8044_v41  ;;  %v12504_v25 = vand.u32 4294901760, %v7543_v48  ;;  %v12505_v49 = vand.u32 4294901760, %v7561_v34  ;;  %v8130_v29 = vld [vmem:[#allocation2 + $0x168] sm:$0xff]  ;;  %5977 = vmatprep.subr.bf16.mxu0 %v8058_v54  ;;  %6361 = vmatprep.subr.bf16.mxu1 %v8080_v0 }
  0x5a   :  { %v8113_v33 = vpack.c.bf16 %v12502_v16, %v12501_v19  ;;  %v11816_v50 = vand.u32 4294901760, %v8070_v43  ;;  %v8140_v48 = vsub.f32 %v8046_v45, %v11811_v36  ;;  %v12512_v36 = vand.u32 4294901760, %v8074_v37  ;;  %v12529_v0 = vld [vmem:[#allocation40_spill] sm:$0xff] }
  0x5b   :  { %12500 = vst [vmem:[#allocation112_spill] sm:$0xff] %v8107_v61  ;;  %v8125_v13 = vpack.c.bf16 %v12505_v49, %v12504_v25  ;;  %v8135_v19 = vsub.f32 %v8044_v41, %v11808_v57  ;;  %v8144_v49 = vld [vmem:[#allocation2 + $0x178] sm:$0xff]  ;;  %v12510_v57 = vand.u32 4294901760, %v8072_v30  ;;  %v12520_v25 = vand.u32 4294901760, %v8099_v27  ;;  %5979 = vmatpush1.bf16.msra.mxu0 %v8107_v61 }
  0x5c   :  { %12503 = vst [vmem:[#allocation113_spill] sm:$0xff] %v8113_v33  ;;  %12508 = vst [vmem:[#allocation116_spill] sm:$0xff] %v8140_v48  ;;  %v8151_v16 = vsub.f32 %v8070_v43, %v11816_v50  ;;  %v8161_v34 = vsub.f32 %v8074_v37, %v12512_v36  ;;  %v12514_v50 = vand.u32 4294901760, %v7563_v11  ;;  %v12522_v11 = vand.u32 4294901760, %v7589_v51  ;;  %6363 = vmatpush1.bf16.msra.mxu1 %v8113_v33 }
  0x5d   :  { %12506 = vst [vmem:[#allocation114_spill] sm:$0xff] %v8125_v13  ;;  %12507 = vst [vmem:[#allocation115_spill] sm:$0xff] %v8135_v19  ;;  %v8156_v53 = vsub.f32 %v8072_v30, %v12510_v57  ;;  %v12516_v57 = vand.u32 4294901760, %v12515_v56  ;;  %v12523_v56 = vld [vmem:[#allocation37_spill] sm:$0xff]  ;;  %v11836_v3 = vand.u32 4294901760, %v8144_v49  ;;  %v12528_v54 = vand.u32 4294901760, %v7605_v1  ;;  %5981 = vmatprep.subr.bf16.mxu0 %v8125_v13 }
  0x5e   :  { %12509 = vst [vmem:[#allocation117_spill] sm:$0xff] %v8151_v16  ;;  %12513 = vst [vmem:[#allocation119_spill] sm:$0xff] %v8161_v34  ;;  %v8184_v34 = vsub.f32 %v8099_v27, %v12520_v25  ;;  %v8187_v16 = vld [vmem:[#allocation2 + $0x170] sm:$0xff]  ;;  %v12530_v48 = vand.u32 4294901760, %v12529_v0  ;;  %v12535_v1 = vand.u32 4294901760, %v8146_v55  ;;  %v12560_v61 = vand.u32 4294901760, %v7681_v46 }
  0x5f   :  { %12511 = vst [vmem:[#allocation118_spill] sm:$0xff] %v8156_v53  ;;  %v8174_v17 = vpack.c.bf16 %v12516_v57, %v12514_v50  ;;  %v12518_v53 = vand.u32 4294901760, %v8097_v26  ;;  %v12526_v57 = vand.u32 4294901760, %v8117_v35  ;;  %v12572_v46 = vld [vmem:[#allocation61_spill] sm:$0xff] }
  0x60   :  { %12521 = vst [vmem:[#allocation121_spill] sm:$0xff] %v8184_v34  ;;  %v8212_v51 = vpack.c.bf16 %v12530_v48, %v12528_v54  ;;  %v8224_v34 = vsub.f32 %v8144_v49, %v11836_v3  ;;  %v8229_v0 = vsub.f32 %v8146_v55, %v12535_v1  ;;  %v12542_v3 = vand.u32 4294901760, %v8164_v63 }
  0x61   :  { %12517 = vst [vmem:[#allocation34_spill] sm:$0xff] %v8174_v17  ;;  %v8179_v36 = vsub.f32 %v8097_v26, %v12518_v53  ;;  %v12524_v53 = vand.u32 4294901760, %v12523_v56  ;;  %v8202_v25 = vsub.f32 %v8117_v35, %v12526_v57  ;;  %v12544_v1 = vand.u32 4294901760, %v8166_v2  ;;  %6365 = vmatprep.subr.bf16.mxu1 %v8174_v17 }
  0x62   :  { %12531 = vst [vmem:[#allocation40_spill] sm:$0xff] %v8212_v51  ;;  %12534 = vst [vmem:[#allocation124_spill] sm:$0xff] %v8224_v34  ;;  %v8244_v34 = vsub.f32 %v8164_v63, %v12542_v3  ;;  %v12549_v3 = vand.u32 4294901760, %v8187_v16  ;;  %6367 = vmatpush1.bf16.msra.mxu1 %v8212_v51  ;;  %v12564_v51 = vand.u32 4294901760, %v7692_v22 }
  0x63   :  { %12519 = vst [vmem:[#allocation120_spill] sm:$0xff] %v8179_v36  ;;  %v8197_v50 = vpack.c.bf16 %v12524_v53, %v12522_v11  ;;  %12527 = vst [vmem:[#allocation122_spill] sm:$0xff] %v8202_v25  ;;  %v8206_v36 = vld [vmem:[#allocation2 + $0x370] sm:$0xff]  ;;  %v12532_v11 = vand.u32 4294901760, %v8130_v29  ;;  %v12539_v53 = vld [vmem:[#allocation42_spill] sm:$0xff]  ;;  %v8249_v54 = vsub.f32 %v8166_v2, %v12544_v1  ;;  %v12551_v1 = vand.u32 4294901760, %v8189_v20 }
  0x64   :  { %12536 = vst [vmem:[#allocation125_spill] sm:$0xff] %v8229_v0  ;;  %12543 = vst [vmem:[#allocation42_spill] sm:$0xff] %v8244_v34  ;;  %v2519_v48 = vand.u32 4294901760, %v8206_v36 }
  0x65   :  { %12525 = vst [vmem:[#allocation37_spill] sm:$0xff] %v8197_v50  ;;  %v8217_v56 = vsub.f32 %v8130_v29, %v12532_v11  ;;  %v12537_v11 = vld [vmem:[#allocation41_spill] sm:$0xff]  ;;  %12545 = vst [vmem:[#allocation126_spill] sm:$0xff] %v8249_v54  ;;  %v8268_v33 = vsub.f32 %v8189_v20, %v12551_v1  ;;  %5983 = vmatpush1.bf16.msra.mxu0 %v8197_v50 }
  0x66   :  { %v12538_v57 = vand.u32 4294901760, %v12537_v11  ;;  %v8263_v11 = vsub.f32 %v8187_v16, %v12549_v3  ;;  %v8271_v13 = vsub.f32 %v8206_v36, %v2519_v48  ;;  %v12559_v3 = vand.u32 4294901760, %v7663_v23  ;;  %v12562_v36 = vld [vmem:[#allocation53_spill] sm:$0xff] }
  0x67   :  { %12533 = vst [vmem:[#allocation123_spill] sm:$0xff] %v8217_v56  ;;  %v12540_v56 = vand.u32 4294901760, %v12539_v53  ;;  %v12546_v53 = vand.u32 4294901760, %v7630_v58  ;;  %12552 = vst [vmem:[#allocation129_spill] sm:$0xff] %v8268_v33  ;;  %v12554_v58 = vld [vmem:[#allocation46_spill] sm:$0xff]  ;;  %v12563_v1 = vand.u32 4294901760, %v12562_v36 }
  0x68   :  { %12550 = vst [vmem:[#allocation128_spill] sm:$0xff] %v8263_v11  ;;  %12553 = vst [vmem:[#allocation130_spill] sm:$0xff] %v8271_v13  ;;  %v8285_v11 = vpack.c.bf16 %v12560_v61, %v12559_v3  ;;  %v12571_v23 = vand.u32 4294901760, %v7717_v8  ;;  %v12573_v61 = vand.u32 4294901760, %v12572_v46  ;;  %v12575_v36 = vld [vmem:[#allocation62_spill] sm:$0xff]  ;;  %v12584_v8 = vand.u32 4294901760, %v7775_v31 }
  0x69   :  { %v8239_v25 = vpack.c.bf16 %v12540_v56, %v12538_v57  ;;  %v12547_v56 = vand.u32 4294901760, %v7642_v24  ;;  %v12555_v24 = vand.u32 4294901760, %v12554_v58  ;;  %v8293_v50 = vpack.c.bf16 %v12564_v51, %v12563_v1  ;;  %v12566_v58 = vld [vmem:[#allocation56_spill] sm:$0xff]  ;;  %v12577_v51 = vld [vmem:[#allocation66_spill] sm:$0xff] }
  0x6a   :  { %v8307_v3 = vpack.c.bf16 %v12573_v61, %v12571_v23  ;;  %v12576_v22 = vand.u32 4294901760, %v12575_v36  ;;  %v12578_v1 = vand.u32 4294901760, %v12577_v51  ;;  %v12585_v23 = vand.u32 4294901760, %v7789_v60 }
  0x6b   :  { %12541 = vst [vmem:[#allocation41_spill] sm:$0xff] %v8239_v25  ;;  %v8258_v57 = vpack.c.bf16 %v12547_v56, %v12546_v53  ;;  %v12556_v53 = vld [vmem:[#allocation49_spill] sm:$0xff]  ;;  %5985 = vmatprep.subr.bf16.mxu0 %v8239_v25  ;;  %12565 = vst [vmem:[#allocation53_spill] sm:$0xff] %v8293_v50  ;;  %v12587_v61 = vand.u32 4294901760, %v7813_v9  ;;  %v12588_v36 = vand.u32 4294901760, %v7815_v12  ;;  %v12591_v51 = vand.u32 4294901760, %v7831_v4 }
  0x6c   :  { %v12557_v56 = vand.u32 4294901760, %v12556_v53  ;;  %12561 = vst [vmem:[#allocation49_spill] sm:$0xff] %v8285_v11  ;;  %v12567_v53 = vand.u32 4294901760, %v12566_v58  ;;  %v12580_v58 = vld [vmem:[#allocation67_spill] sm:$0xff]  ;;  %v8327_v46 = vpack.c.bf16 %v12585_v23, %v12584_v8  ;;  %v12593_v60 = vand.u32 4294901760, %v7833_v5 }
  0x6d   :  { %12548 = vst [vmem:[#allocation127_spill] sm:$0xff] %v8258_v57  ;;  %6369 = vmatprep.subr.bf16.mxu1 %v8258_v57  ;;  %v8313_v57 = vpack.c.bf16 %v12578_v1, %v12576_v22  ;;  %v8335_v22 = vpack.c.bf16 %v12588_v36, %v12587_v61  ;;  %v12594_v31 = vand.u32 4294901760, %v7854_v15  ;;  %v12596_v9 = vand.u32 4294901760, %v7870_v14 }
  0x6e   :  { %v8279_v17 = vpack.c.bf16 %v12557_v56, %v12555_v24  ;;  %v12568_v24 = vld [vmem:[#allocation59_spill] sm:$0xff]  ;;  %6371 = vmatpush1.bf16.msra.mxu1 %v8285_v11  ;;  %12586 = vst [vmem:[#allocation66_spill] sm:$0xff] %v8327_v46  ;;  %v12597_v12 = vand.u32 4294901760, %v7882_v18  ;;  %v12603_v15 = vand.u32 4294901760, %v7907_v38  ;;  %v12604_v5 = vand.u32 4294901760, %v7927_v21  ;;  %v12659_v11 = vld [vmem:[#allocation6_spill] sm:$0xff] }
  0x6f   :  { %v12569_v56 = vand.u32 4294901760, %v12568_v24  ;;  %12574 = vst [vmem:[#allocation59_spill] sm:$0xff] %v8307_v3  ;;  %12579 = vst [vmem:[#allocation61_spill] sm:$0xff] %v8313_v57  ;;  %v12582_v24 = vand.u32 4294901760, %v7773_v40  ;;  %v12590_v40 = vand.u32 4294901760, %v7829_v59  ;;  %v12599_v59 = vld [vmem:[#allocation84_spill] sm:$0xff] }
  0x70   :  { %12558 = vst [vmem:[#allocation46_spill] sm:$0xff] %v8279_v17  ;;  %5987 = vmatpush1.bf16.msra.mxu0 %v8279_v17  ;;  %12589 = vst [vmem:[#allocation67_spill] sm:$0xff] %v8335_v22  ;;  %v12600_v4 = vand.u32 4294901760, %v12599_v59  ;;  %v8369_v23 = vpack.c.bf16 %v12604_v5, %v12603_v15  ;;  %v12606_v14 = vand.u32 4294901760, %v7929_v39  ;;  %v12607_v18 = vand.u32 4294901760, %v7957_v6 }
  0x71   :  { %v8299_v13 = vpack.c.bf16 %v12569_v56, %v12567_v53  ;;  %5989 = vmatprep.subr.bf16.mxu0 %v8293_v50  ;;  %v12581_v53 = vand.u32 4294901760, %v12580_v58  ;;  %v8341_v1 = vpack.c.bf16 %v12591_v51, %v12590_v40  ;;  %v8349_v58 = vpack.c.bf16 %v12594_v31, %v12593_v60 }
  0x72   :  { %12605 = vst [vmem:[#allocation134_spill] sm:$0xff] %v8369_v23  ;;  %v8377_v61 = vpack.c.bf16 %v12607_v18, %v12606_v14  ;;  %v12610_v36 = vand.u32 4294901760, %v7973_v28  ;;  %v12612_v21 = vand.u32 4294901760, %v7975_v52  ;;  %v12613_v38 = vand.u32 4294901760, %v7977_v62  ;;  %v8468_v14 = vld [vmem:[#allocation2 + $0x180] sm:$0xff]  ;;  %v8470_v18 = vld [vmem:[#allocation2 + $0x190] sm:$0xff] }
  0x73   :  { %12570 = vst [vmem:[#allocation56_spill] sm:$0xff] %v8299_v13  ;;  %6373 = vmatprep.subr.bf16.mxu1 %v8299_v13  ;;  %v8321_v56 = vpack.c.bf16 %v12582_v24, %v12581_v53  ;;  %12592 = vst [vmem:[#allocation131_spill] sm:$0xff] %v8341_v1  ;;  %v8355_v53 = vpack.c.bf16 %v12597_v12, %v12596_v9  ;;  %v12601_v24 = vand.u32 4294901760, %v7905_v32  ;;  %v12609_v32 = vand.u32 4294901760, %v7959_v47 }
  0x74   :  { %5991 = vmatpush1.bf16.msra.mxu0 %v8307_v3  ;;  %6375 = vmatpush1.bf16.msra.mxu1 %v8313_v57  ;;  %12595 = vst [vmem:[#allocation132_spill] sm:$0xff] %v8349_v58  ;;  %12608 = vst [vmem:[#allocation135_spill] sm:$0xff] %v8377_v61  ;;  %v8391_v51 = vpack.c.bf16 %v12613_v38, %v12612_v21  ;;  %v12615_v39 = vand.u32 4294901760, %v8001_v7  ;;  %v12616_v6 = vand.u32 4294901760, %v8003_v44  ;;  %v12618_v47 = vand.u32 4294901760, %v8044_v41  ;;  %v8475_v38 = vld [vmem:[#allocation2 + $0x380] sm:$0xff] }
  0x75   :  { %12583 = vst [vmem:[#allocation62_spill] sm:$0xff] %v8321_v56  ;;  %5993 = vmatprep.subr.bf16.mxu0 %v8321_v56  ;;  %6377 = vmatprep.subr.bf16.mxu1 %v8327_v46  ;;  %12598 = vst [vmem:[#allocation133_spill] sm:$0xff] %v8355_v53  ;;  %v8363_v8 = vpack.c.bf16 %v12601_v24, %v12600_v4  ;;  %v8383_v40 = vpack.c.bf16 %v12610_v36, %v12609_v32  ;;  %v12619_v28 = vand.u32 4294901760, %v8046_v45  ;;  %v2413_v46 = vld [vmem:[#allocation2 + $0x3e0] sm:$0xff]  ;;  %v2415_v56 = vld [vmem:[#allocation2 + $0x3f0] sm:$0xff] }
  0x76   :  { %12614 = vst [vmem:[#allocation137_spill] sm:$0xff] %v8391_v51  ;;  %v8397_v60 = vpack.c.bf16 %v12616_v6, %v12615_v39  ;;  %v12621_v62 = vand.u32 4294901760, %v8070_v43  ;;  %v12622_v52 = vand.u32 4294901760, %v8072_v30  ;;  %v12624_v7 = vand.u32 4294901760, %v8074_v37  ;;  %v8477_v39 = vld [vmem:[#allocation2 + $0x390] sm:$0xff]  ;;  %v12657_v57 = vld [vmem:[#allocation5_spill] sm:$0xff] }
  0x77   :  { %12602 = vst [vmem:[#allocation84_spill] sm:$0xff] %v8363_v8  ;;  %12611 = vst [vmem:[#allocation136_spill] sm:$0xff] %v8383_v40  ;;  %v8405_v31 = vpack.c.bf16 %v12619_v28, %v12618_v47  ;;  %v12625_v44 = vand.u32 4294901760, %v8097_v26  ;;  %v12627_v45 = vand.u32 4294901760, %v8099_v27  ;;  %v12628_v41 = vand.u32 4294901760, %v8117_v35 }
  0x78   :  { %5995 = vmatpush1.bf16.msra.mxu0 %v8335_v22  ;;  %6379 = vmatpush1.bf16.msra.mxu1 %v8341_v1  ;;  %12617 = vst [vmem:[#allocation138_spill] sm:$0xff] %v8397_v60  ;;  %v8411_v9 = vpack.c.bf16 %v12622_v52, %v12621_v62  ;;  %v12630_v43 = vand.u32 4294901760, %v8130_v29  ;;  %v12631_v30 = vand.u32 4294901760, %v8144_v49  ;;  %v12633_v37 = vand.u32 4294901760, %v8146_v55  ;;  %v8459_v55 = vld [vmem:[#allocation2 + $0x198] sm:$0xff] }
  0x79   :  { %5997 = vmatprep.subr.bf16.mxu0 %v8349_v58  ;;  %6381 = vmatprep.subr.bf16.mxu1 %v8355_v53  ;;  %12620 = vst [vmem:[#allocation139_spill] sm:$0xff] %v8405_v31  ;;  %v8419_v12 = vpack.c.bf16 %v12625_v44, %v12624_v7  ;;  %v8425_v59 = vpack.c.bf16 %v12628_v41, %v12627_v45  ;;  %v12634_v26 = vand.u32 4294901760, %v8164_v63  ;;  %v12636_v35 = vand.u32 4294901760, %v8166_v2  ;;  %v8457_v63 = vld [vmem:[#allocation2 + $0x188] sm:$0xff]  ;;  %v8508_v45 = vld [vmem:[#allocation2 + $0x1b8] sm:$0xff]  ;;  %v1054_v53 = vld [vmem:[#allocation2 + $0x1e0] sm:$0xff] }
  0x7a   :  { %12623 = vst [vmem:[#allocation140_spill] sm:$0xff] %v8411_v9  ;;  %v8433_v4 = vpack.c.bf16 %v12631_v30, %v12630_v43  ;;  %v12637_v27 = vand.u32 4294901760, %v8187_v16  ;;  %v12639_v29 = vand.u32 4294901760, %v8189_v20  ;;  %v8461_v2 = vld [vmem:[#allocation2 + $0x388] sm:$0xff]  ;;  %v11861_v16 = vand.u32 4294901760, %v8457_v63  ;;  %v8513_v30 = vld [vmem:[#allocation2 + $0x3b8] sm:$0xff] }
  0x7b   :  { %12626 = vst [vmem:[#allocation141_spill] sm:$0xff] %v8419_v12  ;;  %12629 = vst [vmem:[#allocation142_spill] sm:$0xff] %v8425_v59  ;;  %v8439_v24 = vpack.c.bf16 %v12634_v26, %v12633_v37  ;;  %v11860_v20 = vand.u32 4294901760, %v8459_v55  ;;  %v11859_v5 = vand.u32 4294901760, %v8461_v2  ;;  %v11857_v36 = vand.u32 4294901760, %v8468_v14  ;;  %v8499_v7 = vld [vmem:[#allocation2 + $0x1a8] sm:$0xff] }
  0x7c   :  { %5999 = vmatpush1.bf16.msra.mxu0 %v8363_v8  ;;  %6383 = vmatpush1.bf16.msra.mxu1 %v8369_v23  ;;  %12632 = vst [vmem:[#allocation143_spill] sm:$0xff] %v8433_v4  ;;  %v8447_v15 = vpack.c.bf16 %v12637_v27, %v12636_v35  ;;  %v8451_v49 = vpack.c.bf16 %v2519_v48, %v12639_v29  ;;  %v8465_v48 = vld [vmem:[#allocation2 + $0x398] sm:$0xff]  ;;  %v11856_v21 = vand.u32 4294901760, %v8470_v18  ;;  %v11855_v47 = vand.u32 4294901760, %v8475_v38  ;;  %v8511_v43 = vld [vmem:[#allocation2 + $0x3a8] sm:$0xff]  ;;  %v8520_v27 = vld [vmem:[#allocation2 + $0x1a0] sm:$0xff] }
  0x7d   :  { %6001 = vmatprep.subr.bf16.mxu0 %v8377_v61  ;;  %6385 = vmatprep.subr.bf16.mxu1 %v8383_v40  ;;  %12635 = vst [vmem:[#allocation144_spill] sm:$0xff] %v8439_v24  ;;  %v11858_v32 = vand.u32 4294901760, %v8465_v48  ;;  %v8483_v6 = vpack.c.bf16 %v11860_v20, %v11861_v16  ;;  %v11854_v28 = vand.u32 4294901760, %v8477_v39  ;;  %v11867_v41 = vand.u32 4294901760, %v8499_v7  ;;  %v8522_v29 = vld [vmem:[#allocation2 + $0x1b0] sm:$0xff]  ;;  %v1050_v16 = vld [vmem:[#allocation2 + $0x1c0] sm:$0xff] }
  0x7e   :  { %12638 = vst [vmem:[#allocation145_spill] sm:$0xff] %v8447_v15  ;;  %12640 = vst [vmem:[#allocation146_spill] sm:$0xff] %v8451_v49  ;;  %v8497_v52 = vpack.c.bf16 %v11856_v21, %v11857_v36  ;;  %v11866_v37 = vand.u32 4294901760, %v8508_v45  ;;  %v11871_v26 = vand.u32 4294901760, %v8511_v43  ;;  %v11870_v35 = vand.u32 4294901760, %v8513_v30  ;;  %v8529_v36 = vld [vmem:[#allocation2 + $0x3b0] sm:$0xff] }
  0x7f   :  { %12641 = vst [vmem:[#allocation147_spill] sm:$0xff] %v8483_v6  ;;  %v8491_v62 = vpack.c.bf16 %v11858_v32, %v11859_v5  ;;  %v8506_v44 = vpack.c.bf16 %v11854_v28, %v11855_v47  ;;  %v8524_v28 = vld [vmem:[#allocation2 + $0x3a0] sm:$0xff]  ;;  %v8545_v47 = vld [vmem:[#allocation2 + $0x1c8] sm:$0xff]  ;;  %v8547_v21 = vld [vmem:[#allocation2 + $0x1d8] sm:$0xff]  ;;  %v12647_v32 = vand.u32 4294901760, %v8520_v27  ;;  %v1188_v1 = vand.u32 4294901760, %v1054_v53 }
  0x80   :  { %6003 = vmatpush1.bf16.msra.mxu0 %v8391_v51  ;;  %6387 = vmatpush1.bf16.msra.mxu1 %v8397_v60  ;;  %12643 = vst [vmem:[#allocation149_spill] sm:$0xff] %v8497_v52  ;;  %v8536_v5 = vpack.c.bf16 %v11866_v37, %v11867_v41  ;;  %v8542_v20 = vpack.c.bf16 %v11870_v35, %v11871_v26  ;;  %v1178_v41 = vand.u32 4294901760, %v8545_v47  ;;  %v8559_v35 = vld [vmem:[#allocation2 + $0x3d8] sm:$0xff]  ;;  %v2414_v51 = vld [vmem:[#allocation2 + $0x3e8] sm:$0xff]  ;;  %v1056_v58 = vld [vmem:[#allocation2 + $0x1f0] sm:$0xff]  ;;  %v2547_v13 = vand.u32 4294901760, %v2413_v46 }
  0x81   :  { %6005 = vmatprep.subr.bf16.mxu0 %v8405_v31  ;;  %6389 = vmatprep.subr.bf16.mxu1 %v8411_v9  ;;  %12642 = vst [vmem:[#allocation148_spill] sm:$0xff] %v8491_v62  ;;  %12644 = vst [vmem:[#allocation150_spill] sm:$0xff] %v8506_v44  ;;  %v2545_v8 = vand.u32 4294901760, %v2414_v51  ;;  %v1192_v22 = vand.u32 4294901760, %v1056_v58  ;;  %v2551_v50 = vand.u32 4294901760, %v2415_v56  ;;  %v12660_v25 = vand.u32 4294901760, %v8457_v63 }
  0x82   :  { %12645 = vst [vmem:[#allocation151_spill] sm:$0xff] %v8536_v5  ;;  %12646 = vst [vmem:[#allocation152_spill] sm:$0xff] %v8542_v20  ;;  %v12664_v3 = vand.u32 4294901760, %v8461_v2  ;;  %v12666_v34 = vand.u32 4294901760, %v8465_v48  ;;  %v12684_v17 = vand.u32 4294901760, %v8520_v27 }
  0x83   :  { %v8591_v33 = vsub.f32 %v8457_v63, %v12660_v25  ;;  %v12668_v25 = vand.u32 4294901760, %v8468_v14 }
  0x84   :  { %6007 = vmatpush1.bf16.msra.mxu0 %v8419_v12  ;;  %6391 = vmatpush1.bf16.msra.mxu1 %v8425_v59  ;;  %v2409_v59 = vld [vmem:[#allocation2 + $0x3c0] sm:$0xff]  ;;  %v2411_v12 = vld [vmem:[#allocation2 + $0x3d0] sm:$0xff]  ;;  %v8606_v0 = vsub.f32 %v8465_v48, %v12666_v34  ;;  %v12674_v34 = vand.u32 4294901760, %v8477_v39 }
  0x85   :  { %6009 = vmatprep.subr.bf16.mxu0 %v8433_v4  ;;  %6393 = vmatprep.subr.bf16.mxu1 %v8439_v24  ;;  %v1180_v24 = vand.u32 4294901760, %v1050_v16  ;;  %v2539_v31 = vand.u32 4294901760, %v2409_v59  ;;  %12661 = vst [vmem:[#allocation160_spill] sm:$0xff] %v8591_v33  ;;  %v8612_v63 = vsub.f32 %v8468_v14, %v12668_v25  ;;  %v12676_v14 = vand.u32 4294901760, %v8499_v7 }
  0x86   :  { %12667 = vst [vmem:[#allocation163_spill] sm:$0xff] %v8606_v0  ;;  %v8627_v48 = vsub.f32 %v8477_v39, %v12674_v34  ;;  %v12682_v39 = vand.u32 4294901760, %v8513_v30 }
  0x87   :  { %12669 = vst [vmem:[#allocation164_spill] sm:$0xff] %v8612_v63  ;;  %v8633_v25 = vsub.f32 %v8499_v7, %v12676_v14  ;;  %v8653_v7 = vsub.f32 %v8520_v27, %v12684_v17  ;;  %v12686_v14 = vand.u32 4294901760, %v8522_v29 }
  0x88   :  { %6011 = vmatpush1.bf16.msra.mxu0 %v8447_v15  ;;  %6395 = vmatpush1.bf16.msra.mxu1 %v8451_v49  ;;  %v12650_v49 = vand.u32 4294901760, %v8524_v28  ;;  %v12651_v15 = vand.u32 4294901760, %v8529_v36  ;;  %12675 = vst [vmem:[#allocation167_spill] sm:$0xff] %v8627_v48  ;;  %v8648_v34 = vsub.f32 %v8513_v30, %v12682_v39  ;;  %v8671_v39 = vsub.f32 %v8545_v47, %v1178_v41 }
  0x89   :  { %6013 = vmatprep.subr.bf16.mxu0 %v8483_v6  ;;  %6397 = vmatprep.subr.bf16.mxu1 %v8491_v62  ;;  %v1182_v62 = vand.u32 4294901760, %v8547_v21  ;;  %v1052_v6 = vld [vmem:[#allocation2 + $0x1d0] sm:$0xff]  ;;  %12677 = vst [vmem:[#allocation168_spill] sm:$0xff] %v8633_v25  ;;  %12685 = vst [vmem:[#allocation172_spill] sm:$0xff] %v8653_v7 }
  0x8a   :  { %v1184_v4 = vand.u32 4294901760, %v1052_v6  ;;  %12683 = vst [vmem:[#allocation171_spill] sm:$0xff] %v8648_v34  ;;  %12692 = vst [vmem:[#allocation176_spill] sm:$0xff] %v8671_v39 }
  0x8b   :  { %v8572_v9 = vpack.c.bf16 %v1182_v62, %v1178_v41  ;;  %v8674_v17 = vsub.f32 %v8547_v21, %v1182_v62  ;;  %v8696_v62 = vsub.f32 %v2414_v51, %v2545_v8  ;;  %v8700_v41 = vpack.c.bf16 %v1192_v22, %v1188_v1 }
  0x8c   :  { %6015 = vmatpush1.bf16.msra.mxu0 %v8497_v52  ;;  %6399 = vmatpush1.bf16.msra.mxu1 %v8506_v44  ;;  %v8549_v44 = vld [vmem:[#allocation2 + $0x3c8] sm:$0xff]  ;;  %v12648_v52 = vand.u32 4294901760, %v8522_v29  ;;  %v8577_v60 = vpack.c.bf16 %v1184_v4, %v1180_v24  ;;  %v12712_v51 = vand.u32 4294901760, %v12659_v11 }
  0x8d   :  { %v2537_v26 = vand.u32 4294901760, %v8549_v44  ;;  %6017 = vmatprep.subr.bf16.mxu0 %v8536_v5  ;;  %6401 = vmatprep.subr.bf16.mxu1 %v8542_v20  ;;  %12653 = vst [vmem:[#allocation155_spill] sm:$0xff] %v8572_v9  ;;  %v2543_v5 = vand.u32 4294901760, %v2411_v12  ;;  %12693 = vst [vmem:[#allocation177_spill] sm:$0xff] %v8674_v17 }
  0x8e   :  { %v8555_v37 = vpack.c.bf16 %v12648_v52, %v12647_v32  ;;  %v8568_v32 = vpack.c.bf16 %v12651_v15, %v12650_v49  ;;  %v2541_v52 = vand.u32 4294901760, %v8559_v35  ;;  %12655 = vst [vmem:[#allocation157_spill] sm:$0xff] %v8577_v60  ;;  %v1055_v15 = vld [vmem:[#allocation2 + $0x1e8] sm:$0xff]  ;;  %v1057_v49 = vld [vmem:[#allocation2 + $0x1f8] sm:$0xff]  ;;  %12703 = vst [vmem:[#allocation187_spill] sm:$0xff] %v8696_v62 }
  0x8f   :  { %v8580_v40 = vpack.c.bf16 %v2543_v5, %v2539_v31  ;;  %v1186_v61 = vand.u32 4294901760, %v1055_v15  ;;  %v1190_v23 = vand.u32 4294901760, %v1057_v49  ;;  %v8677_v27 = vsub.f32 %v8549_v44, %v2537_v26  ;;  %12705 = vst [vmem:[#allocation189_spill] sm:$0xff] %v8700_v41 }
  0x90   :  { %12649 = vst [vmem:[#allocation153_spill] sm:$0xff] %v8555_v37  ;;  %12652 = vst [vmem:[#allocation154_spill] sm:$0xff] %v8568_v32  ;;  %6019 = vmatpush1.bf16.msra.mxu0 %v8555_v37  ;;  %6403 = vmatpush1.bf16.msra.mxu1 %v8568_v32  ;;  %v8575_v20 = vpack.c.bf16 %v2541_v52, %v2537_v26  ;;  %v2416_v37 = vld [vmem:[#allocation2 + $0x3f8] sm:$0xff]  ;;  %v11946_v26 = vlaneseq }
  0x91   :  { %6021 = vmatprep.subr.bf16.mxu0 %v8572_v9  ;;  %12656 = vst [vmem:[#allocation158_spill] sm:$0xff] %v8580_v40  ;;  %v2549_v32 = vand.u32 4294901760, %v2416_v37  ;;  %v8585_v9 = vpack.c.bf16 %v1190_v23, %v1186_v61  ;;  %12694 = vst [vmem:[#allocation178_spill] sm:$0xff] %v8677_v27  ;;  %v8692_v47 = vsub.f32 %v1057_v49, %v1190_v23 }
  0x92   :  { %12654 = vst [vmem:[#allocation156_spill] sm:$0xff] %v8575_v20  ;;  %6405 = vmatprep.subr.bf16.mxu1 %v8575_v20  ;;  %v12662_v20 = vand.u32 4294901760, %v8459_v55  ;;  %v8711_v23 = vsub.f32 %v2415_v56, %v2551_v50 }
  0x93   :  { %12658 = vst [vmem:[#allocation159_spill] sm:$0xff] %v8585_v9  ;;  %12701 = vst [vmem:[#allocation185_spill] sm:$0xff] %v8692_v47  ;;  %v8694_v21 = vpack.c.bf16 %v2549_v32, %v2545_v8  ;;  %v8698_v44 = vsub.f32 %v2416_v37, %v2549_v32  ;;  %v12716_v32 = vld [vmem:[#allocation9_spill] sm:$0xff] }
  0x94   :  { %6023 = vmatpush1.bf16.msra.mxu0 %v8577_v60  ;;  %v8596_v54 = vsub.f32 %v8459_v55, %v12662_v20  ;;  %v8601_v60 = vsub.f32 %v8461_v2, %v12664_v3  ;;  %6407 = vmatpush1.bf16.msra.mxu1 %v8580_v40  ;;  %v12670_v55 = vand.u32 4294901760, %v8470_v18  ;;  %v12672_v3 = vand.u32 4294901760, %v8475_v38  ;;  %12710 = vst [vmem:[#allocation194_spill] sm:$0xff] %v8711_v23  ;;  %v12737_v40 = vld [vmem:[#allocation23_spill] sm:$0xff] }
  0x95   :  { %6025 = vmatprep.subr.bf16.mxu0 %v8585_v9  ;;  %12702 = vst [vmem:[#allocation186_spill] sm:$0xff] %v8694_v21  ;;  %12704 = vst [vmem:[#allocation188_spill] sm:$0xff] %v8698_v44  ;;  %6409 = vmatprep.subr.bf16.mxu1 %v8694_v21  ;;  %v12727_v21 = vld [vmem:[#allocation14_spill] sm:$0xff]  ;;  %v12728_v9 = vld [vmem:[#allocation15_spill] sm:$0xff] }
  0x96   :  { %12663 = vst [vmem:[#allocation161_spill] sm:$0xff] %v8596_v54  ;;  %12665 = vst [vmem:[#allocation162_spill] sm:$0xff] %v8601_v60  ;;  %v8617_v20 = vsub.f32 %v8470_v18, %v12670_v55  ;;  %v8622_v2 = vsub.f32 %v8475_v38, %v12672_v3  ;;  %v12678_v18 = vand.u32 4294901760, %v8508_v45  ;;  %v12680_v38 = vand.u32 4294901760, %v8511_v43 }
  0x98   :  { %12671 = vst [vmem:[#allocation165_spill] sm:$0xff] %v8617_v20  ;;  %12673 = vst [vmem:[#allocation166_spill] sm:$0xff] %v8622_v2  ;;  %v8638_v55 = vsub.f32 %v8508_v45, %v12678_v18  ;;  %v8643_v3 = vsub.f32 %v8511_v43, %v12680_v38  ;;  %v8658_v45 = vsub.f32 %v8522_v29, %v12686_v14  ;;  %v12688_v18 = vand.u32 4294901760, %v8524_v28 }
  0x99   :  { %v12690_v38 = vand.u32 4294901760, %v8529_v36  ;;  %v8680_v29 = vsub.f32 %v8559_v35, %v2541_v52  ;;  %v8682_v14 = vsub.f32 %v1050_v16, %v1180_v24  ;;  %v8702_v24 = vsub.f32 %v1054_v53, %v1188_v1  ;;  %6027 = vmatpush1.bf16.msra.mxu0 %v8700_v41  ;;  %v12714_v53 = vld [vmem:[#allocation8_spill] sm:$0xff] }
  0x9a   :  { %12679 = vst [vmem:[#allocation169_spill] sm:$0xff] %v8638_v55  ;;  %12681 = vst [vmem:[#allocation170_spill] sm:$0xff] %v8643_v3  ;;  %v8663_v43 = vsub.f32 %v8524_v28, %v12688_v18  ;;  %v8684_v28 = vsub.f32 %v1052_v6, %v1184_v4  ;;  %v8686_v18 = vsub.f32 %v2409_v59, %v2539_v31  ;;  %v11949_v59 = vand.u32 4294901760, %v12714_v53 }
  0x9b   :  { %12687 = vst [vmem:[#allocation173_spill] sm:$0xff] %v8658_v45  ;;  %v8668_v30 = vsub.f32 %v8529_v36, %v12690_v38  ;;  %12695 = vst [vmem:[#allocation179_spill] sm:$0xff] %v8680_v29  ;;  %v8688_v36 = vsub.f32 %v2411_v12, %v2543_v5  ;;  %v8690_v38 = vsub.f32 %v1055_v15, %v1186_v61  ;;  %v12711_v12 = vand.u32 4294901760, %v12657_v57  ;;  %v12717_v15 = vld [vmem:[#allocation10_spill] sm:$0xff] }
  0x9c   :  { %12689 = vst [vmem:[#allocation174_spill] sm:$0xff] %v8663_v43  ;;  %12696 = vst [vmem:[#allocation180_spill] sm:$0xff] %v8682_v14  ;;  %v8704_v4 = vsub.f32 %v1056_v58, %v1192_v22  ;;  %v8707_v31 = vpack.c.bf16 %v2551_v50, %v2547_v13  ;;  %v8709_v61 = vsub.f32 %v2413_v46, %v2547_v13  ;;  %v12713_v22 = vld [vmem:[#allocation7_spill] sm:$0xff]  ;;  %v8730_v35 = vshrl.u32 %v11946_v26, 7  ;;  %v12736_v26 = vld [vmem:[#allocation22_spill] sm:$0xff] }
  0x9d   :  { %12691 = vst [vmem:[#allocation175_spill] sm:$0xff] %v8668_v30  ;;  %12697 = vst [vmem:[#allocation181_spill] sm:$0xff] %v8684_v28  ;;  %v1214_v8 = vsub.f32 %v12657_v57, %v12711_v12  ;;  %v1226_v1 = vsub.f32 %v12659_v11, %v12712_v51  ;;  %v11950_v58 = vand.u32 4294901760, %v12713_v22  ;;  %v2585_v56 = vsub.f32 %v12714_v53, %v11949_v59  ;;  %v8737_v12 = vld [vmem:[%s11662_s1 + $0x20] sm:$0xff]  ;;  %v12720_v51 = vld [vmem:[#allocation11_spill] sm:$0xff] }
  0x9e   :  { %12698 = vst [vmem:[#allocation182_spill] sm:$0xff] %v8686_v18  ;;  %12699 = vst [vmem:[#allocation183_spill] sm:$0xff] %v8688_v36  ;;  %6411 = vmatpush1.bf16.msra.mxu1 %v8707_v31  ;;  %v11947_v52 = vand.u32 4294901760, %v12716_v32  ;;  %v11948_v49 = vand.u32 4294901760, %v12717_v15  ;;  %v12725_v59 = vld [vmem:[#allocation13_spill] sm:$0xff]  ;;  %v12733_v11 = vld [vmem:[#allocation20_spill] sm:$0xff] }
  0x9f   :  { %12700 = vst [vmem:[#allocation184_spill] sm:$0xff] %v8690_v38  ;;  %12706 = vst [vmem:[#allocation190_spill] sm:$0xff] %v8702_v24  ;;  %v1215_v13 = vand.u32 4294901760, %v1214_v8  ;;  %v1227_v46 = vand.u32 4294901760, %v1226_v1  ;;  %v2573_v50 = vsub.f32 %v12713_v22, %v11950_v58  ;;  %v2586_v6 = vand.u32 4294901760, %v2585_v56  ;;  %v12732_v58 = vld [vmem:[#allocation19_spill] sm:$0xff] }
  0xa0   :  { %12707 = vst [vmem:[#allocation191_spill] sm:$0xff] %v8704_v4  ;;  %12708 = vst [vmem:[#allocation192_spill] sm:$0xff] %v8707_v31  ;;  %v8740_v8 = vsub.s32 0, %v8730_v35  ;;  %v11966_v1 = vand.u32 4294901760, %v12720_v51  ;;  %v1232_v56 = vsub.f32 %v12717_v15, %v11948_v49 }
  0xa1   :  { %12709 = vst [vmem:[#allocation193_spill] sm:$0xff] %v8709_v61  ;;  %v6028_v16 = vpack.c.bf16 %v1227_v46, %v1215_v13  ;;  %v2574_v5 = vand.u32 4294901760, %v2573_v50  ;;  %12715 = vst [vmem:[#allocation195_spill] sm:$0xff] %v8730_v35  ;;  %v8746_v13 = vld [vmem:[%s11662_s1 + $0x30] sm:$0xff]  ;;  %v8751_v46 = vld [vmem:[%s11662_s1 + $0x28] sm:$0xff]  ;;  %v1220_v50 = vsub.f32 %v12716_v32, %v11947_v52 }
  0xa2   :  { %12718 = vst [vmem:[#allocation196_spill] sm:$0xff] %v8737_v12  ;;  %12719 = vst [vmem:[#allocation197_spill] sm:$0xff] %v8740_v8  ;;  %v2579_v49 = vsub.f32 %v12720_v51, %v11966_v1  ;;  %v1233_v31 = vand.u32 4294901760, %v1232_v56  ;;  %v12729_v52 = vld [vmem:[#allocation16_spill] sm:$0xff]  ;;  %v12730_v32 = vld [vmem:[#allocation17_spill] sm:$0xff] }
  0xa3   :  { %6029 = vmatprep.subr.bf16.mxu0 %v6028_v16  ;;  %v6412_v37 = vpack.c.bf16 %v2586_v6, %v2574_v5  ;;  %12721 = vst [vmem:[#allocation198_spill] sm:$0xff] %v8746_v13  ;;  %12722 = vst [vmem:[#allocation199_spill] sm:$0xff] %v8751_v46  ;;  %v12723_v16 = vld [vmem:[#allocation12_spill] sm:$0xff]  ;;  %v1221_v35 = vand.u32 4294901760, %v1220_v50  ;;  %v12731_v1 = vld [vmem:[#allocation18_spill] sm:$0xff]  ;;  %v12741_v5 = vand.u32 4294901760, %v12727_v21 }
  0xa4   :  { %v8763_v6 = vld [vmem:[%s11662_s1 + $0x38] sm:$0xff]  ;;  %v12726_v41 = vand.u32 4294901760, %v12723_v16  ;;  %v12734_v50 = vld [vmem:[#allocation21_spill] sm:$0xff]  ;;  %v2580_v57 = vand.u32 4294901760, %v2579_v49  ;;  %v12740_v12 = vld [vmem:[#allocation26_spill] sm:$0xff]  ;;  %v12742_v49 = vand.u32 4294901760, %v12728_v9 }
  0xa5   :  { %6413 = vmatprep.subr.bf16.mxu1 %v6412_v37  ;;  %12724 = vst [vmem:[#allocation200_spill] sm:$0xff] %v8763_v6  ;;  %v12735_v6 = vand.u32 4294901760, %v12725_v59  ;;  %v12738_v13 = vld [vmem:[#allocation24_spill] sm:$0xff]  ;;  %v12739_v8 = vld [vmem:[#allocation25_spill] sm:$0xff]  ;;  %v1250_v56 = vsub.f32 %v12727_v21, %v12741_v5  ;;  %v12745_v51 = vand.u32 4294901760, %v12731_v1  ;;  %v12746_v46 = vand.u32 4294901760, %v12732_v58 }
  0xa6   :  { %v2591_v37 = vsub.f32 %v12723_v16, %v12726_v41  ;;  %v2597_v23 = vsub.f32 %v12728_v9, %v12742_v49  ;;  %v12747_v21 = vand.u32 4294901760, %v12733_v11  ;;  %v12748_v9 = vand.u32 4294901760, %v12734_v50 }
  0xa7   :  { %v1238_v41 = vsub.f32 %v12725_v59, %v12735_v6  ;;  %v12743_v6 = vand.u32 4294901760, %v12729_v52  ;;  %v1256_v22 = vsub.f32 %v12731_v1, %v12745_v51  ;;  %v2603_v5 = vsub.f32 %v12732_v58, %v12746_v46  ;;  %v12751_v1 = vld [vmem:[#allocation27_spill] sm:$0xff] }
  0xa8   :  { %v2592_v15 = vand.u32 4294901760, %v2591_v37  ;;  %v12744_v37 = vand.u32 4294901760, %v12730_v32  ;;  %v2615_v49 = vsub.f32 %v12733_v11, %v12747_v21  ;;  %v12749_v59 = vand.u32 4294901760, %v12736_v26 }
  0xa9   :  { %v2609_v16 = vsub.f32 %v12729_v52, %v12743_v6  ;;  %v1262_v6 = vsub.f32 %v12734_v50, %v12748_v9  ;;  %v1239_v52 = vand.u32 4294901760, %v1238_v41  ;;  %v12752_v46 = vand.u32 4294901760, %v12738_v13  ;;  %v12755_v50 = vld [vmem:[#allocation28_spill] sm:$0xff] }
  0xaa   :  { %v1244_v53 = vsub.f32 %v12730_v32, %v12744_v37  ;;  %v1274_v37 = vsub.f32 %v12736_v26, %v12749_v59  ;;  %v12750_v32 = vand.u32 4294901760, %v12737_v40  ;;  %v12753_v21 = vand.u32 4294901760, %v12739_v8 }
  0xab   :  { %v2633_v58 = vsub.f32 %v12738_v13, %v12752_v46  ;;  %v12754_v9 = vand.u32 4294901760, %v12740_v12  ;;  %v1251_v26 = vand.u32 4294901760, %v1250_v56  ;;  %v2598_v4 = vand.u32 4294901760, %v2597_v23 }
  0xac   :  { %v2621_v51 = vsub.f32 %v12737_v40, %v12750_v32  ;;  %v1268_v11 = vsub.f32 %v12739_v8, %v12753_v21  ;;  %v2610_v24 = vand.u32 4294901760, %v2609_v16  ;;  %v1245_v32 = vand.u32 4294901760, %v1244_v53  ;;  %v12757_v8 = vld [vmem:[#allocation29_spill] sm:$0xff] }
  0xad   :  { %v1280_v41 = vsub.f32 %v12740_v12, %v12754_v9  ;;  %v1257_v40 = vand.u32 4294901760, %v1256_v22  ;;  %v2604_v61 = vand.u32 4294901760, %v2603_v5  ;;  %v2616_v44 = vand.u32 4294901760, %v2615_v49  ;;  %v12762_v5 = vld [vmem:[#allocation30_spill] sm:$0xff] }
  0xae   :  { %v1263_v62 = vand.u32 4294901760, %v1262_v6  ;;  %v1275_v47 = vand.u32 4294901760, %v1274_v37  ;;  %v2622_v46 = vand.u32 4294901760, %v2621_v51  ;;  %v12756_v13 = vand.u32 4294901760, %v12751_v1 }
  0xaf   :  { %v12000_v38 = vand.u32 4294901760, %v12757_v8  ;;  %v2634_v9 = vand.u32 4294901760, %v2633_v58  ;;  %v1269_v12 = vand.u32 4294901760, %v1268_v11  ;;  %v1281_v59 = vand.u32 4294901760, %v1280_v41  ;;  %v12766_v11 = vld [vmem:[#allocation31_spill] sm:$0xff] }
  0xb0   :  { %v8840_v21 = vsub.f32 %v12751_v1, %v12756_v13  ;;  %v12758_v23 = vand.u32 4294901760, %v12755_v50  ;;  %v8846_v22 = vpack.c.bf16 %v1233_v31, %v1221_v35  ;;  %v8848_v16 = vpack.c.bf16 %v2592_v15, %v2580_v57  ;;  %v12768_v31 = vld [vmem:[#allocation32_spill] sm:$0xff] }
  0xb1   :  { %v8850_v56 = vpack.c.bf16 %v1251_v26, %v1239_v52  ;;  %v12001_v49 = vand.u32 4294901760, %v12762_v5  ;;  %v8853_v6 = vpack.c.bf16 %v2610_v24, %v2598_v4  ;;  %v8855_v13 = vpack.c.bf16 %v1257_v40, %v1245_v32  ;;  %v12771_v4 = vld [vmem:[#allocation33_spill] sm:$0xff]  ;;  %v12773_v52 = vld [vmem:[#allocation36_spill] sm:$0xff]  ;;  %v12774_v32 = vld [vmem:[#allocation38_spill] sm:$0xff] }
  0xb2   :  { %v2639_v53 = vsub.f32 %v12755_v50, %v12758_v23  ;;  %12759 = vst [vmem:[#allocation201_spill] sm:$0xff] %v8846_v22  ;;  %12760 = vst [vmem:[#allocation202_spill] sm:$0xff] %v8848_v16  ;;  %v8857_v37 = vpack.c.bf16 %v2616_v44, %v2604_v61  ;;  %v12006_v58 = vand.u32 4294901760, %v12766_v11  ;;  %v8860_v51 = vpack.c.bf16 %v1275_v47, %v1263_v62  ;;  %v12772_v62 = vld [vmem:[#allocation35_spill] sm:$0xff]  ;;  %v12778_v44 = vld [vmem:[#allocation45_spill] sm:$0xff] }
  0xb3   :  { %12761 = vst [vmem:[#allocation203_spill] sm:$0xff] %v8850_v56  ;;  %12763 = vst [vmem:[#allocation204_spill] sm:$0xff] %v8853_v6  ;;  %v2628_v41 = vand.u32 4294901760, %v8840_v21  ;;  %v1286_v57 = vsub.f32 %v12757_v8, %v12000_v38  ;;  %v12008_v26 = vand.u32 4294901760, %v12768_v31  ;;  %v8867_v35 = vpack.c.bf16 %v2634_v9, %v2622_v46  ;;  %v12775_v9 = vld [vmem:[#allocation39_spill] sm:$0xff]  ;;  %v12780_v8 = vld [vmem:[#allocation48_spill] sm:$0xff] }
  0xb4   :  { %12764 = vst [vmem:[#allocation205_spill] sm:$0xff] %v8855_v13  ;;  %12765 = vst [vmem:[#allocation206_spill] sm:$0xff] %v8857_v37  ;;  %v8869_v24 = vpack.c.bf16 %v1281_v59, %v1269_v12  ;;  %v2640_v40 = vand.u32 4294901760, %v2639_v53  ;;  %v1298_v47 = vsub.f32 %v12762_v5, %v12001_v49  ;;  %v2645_v46 = vsub.f32 %v12766_v11, %v12006_v58  ;;  %v12776_v59 = vld [vmem:[#allocation43_spill] sm:$0xff]  ;;  %v12777_v53 = vld [vmem:[#allocation44_spill] sm:$0xff] }
  0xb5   :  { %12767 = vst [vmem:[#allocation207_spill] sm:$0xff] %v8860_v51  ;;  %12769 = vst [vmem:[#allocation208_spill] sm:$0xff] %v8867_v35  ;;  %v2657_v49 = vsub.f32 %v12768_v31, %v12008_v26  ;;  %v12779_v5 = vld [vmem:[#allocation47_spill] sm:$0xff]  ;;  %v1287_v50 = vand.u32 4294901760, %v1286_v57  ;;  %v12781_v1 = vand.u32 4294901760, %v12771_v4  ;;  %v12782_v12 = vld [vmem:[#allocation50_spill] sm:$0xff] }
  0xb6   :  { %12770 = vst [vmem:[#allocation209_spill] sm:$0xff] %v8869_v24  ;;  %v12783_v23 = vld [vmem:[#allocation51_spill] sm:$0xff]  ;;  %v1299_v38 = vand.u32 4294901760, %v1298_v47  ;;  %v12784_v35 = vand.u32 4294901760, %v12772_v62  ;;  %v12785_v61 = vand.u32 4294901760, %v12773_v52  ;;  %v12786_v21 = vand.u32 4294901760, %v12774_v32 }
  0xb7   :  { %v1292_v58 = vsub.f32 %v12771_v4, %v12781_v1  ;;  %v2646_v31 = vand.u32 4294901760, %v2645_v46  ;;  %v12787_v1 = vand.u32 4294901760, %v12775_v9  ;;  %v12788_v24 = vand.u32 4294901760, %v12776_v59  ;;  %v12796_v13 = vld [vmem:[#allocation54_spill] sm:$0xff] }
  0xb8   :  { %v1304_v26 = vsub.f32 %v12772_v62, %v12784_v35  ;;  %v2651_v15 = vsub.f32 %v12773_v52, %v12785_v61  ;;  %v2663_v57 = vsub.f32 %v12774_v32, %v12786_v21  ;;  %v12789_v4 = vand.u32 4294901760, %v12777_v53 }
  0xb9   :  { %v1310_v11 = vsub.f32 %v12775_v9, %v12787_v1  ;;  %v1322_v47 = vsub.f32 %v12776_v59, %v12788_v24  ;;  %v2658_v62 = vand.u32 4294901760, %v2657_v49  ;;  %v12790_v61 = vand.u32 4294901760, %v12778_v44 }
  0xba   :  { %v2669_v35 = vsub.f32 %v12777_v53, %v12789_v4  ;;  %v12791_v21 = vand.u32 4294901760, %v12779_v5  ;;  %v12792_v32 = vand.u32 4294901760, %v12780_v8  ;;  %v1293_v9 = vand.u32 4294901760, %v1292_v58  ;;  %v12795_v53 = vld [vmem:[#allocation52_spill] sm:$0xff] }
  0xbb   :  { %v2681_v52 = vsub.f32 %v12778_v44, %v12790_v61  ;;  %v12793_v24 = vand.u32 4294901760, %v12782_v12  ;;  %v12794_v4 = vand.u32 4294901760, %v12783_v23  ;;  %v12027_v51 = vand.u32 4294901760, %v12795_v53 }
  0xbc   :  { %v1316_v46 = vsub.f32 %v12779_v5, %v12791_v21  ;;  %v1328_v1 = vsub.f32 %v12780_v8, %v12792_v32  ;;  %v1305_v61 = vand.u32 4294901760, %v1304_v26  ;;  %v2652_v44 = vand.u32 4294901760, %v2651_v15  ;;  %v12797_v32 = vld [vmem:[#allocation55_spill] sm:$0xff] }
  0xbd   :  { %v2675_v59 = vsub.f32 %v12782_v12, %v12793_v24  ;;  %v2687_v49 = vsub.f32 %v12783_v23, %v12794_v4  ;;  %v2664_v37 = vand.u32 4294901760, %v2663_v57  ;;  %v12026_v21 = vand.u32 4294901760, %v12796_v13  ;;  %v12798_v24 = vld [vmem:[#allocation57_spill] sm:$0xff]  ;;  %v12802_v57 = vld [vmem:[#allocation58_spill] sm:$0xff] }
  0xbe   :  { %v1311_v5 = vand.u32 4294901760, %v1310_v11  ;;  %v1323_v6 = vand.u32 4294901760, %v1322_v47  ;;  %v2670_v56 = vand.u32 4294901760, %v2669_v35  ;;  %v12025_v58 = vand.u32 4294901760, %v12797_v32 }
  0xbf   :  { %v2682_v8 = vand.u32 4294901760, %v2681_v52  ;;  %v1317_v16 = vand.u32 4294901760, %v1316_v46  ;;  %v1329_v22 = vand.u32 4294901760, %v1328_v1  ;;  %v12023_v12 = vand.u32 4294901760, %v12798_v24  ;;  %v12811_v1 = vld [vmem:[#allocation64_spill] sm:$0xff] }
  0xc0   :  { %v8932_v36 = vpack.c.bf16 %v2640_v40, %v2628_v41  ;;  %v2676_v4 = vand.u32 4294901760, %v2675_v59  ;;  %v2688_v23 = vand.u32 4294901760, %v2687_v49  ;;  %v8937_v26 = vsub.f32 %v12795_v53, %v12027_v51 }
  0xc1   :  { %v8939_v15 = vpack.c.bf16 %v1299_v38, %v1287_v50  ;;  %v8941_v11 = vpack.c.bf16 %v2658_v62, %v2646_v31  ;;  %v8946_v52 = vsub.f32 %v12796_v13, %v12026_v21  ;;  %v12024_v47 = vand.u32 4294901760, %v12802_v57  ;;  %v12812_v21 = vld [vmem:[#allocation116_spill] sm:$0xff] }
  0xc2   :  { %12799 = vst [vmem:[#allocation210_spill] sm:$0xff] %v8932_v36  ;;  %v8949_v41 = vpack.c.bf16 %v1305_v61, %v1293_v9  ;;  %v8951_v40 = vpack.c.bf16 %v2664_v37, %v2652_v44  ;;  %v8953_v59 = vpack.c.bf16 %v1323_v6, %v1311_v5  ;;  %v8958_v38 = vsub.f32 %v12797_v32, %v12025_v58  ;;  %v12808_v9 = vld [vmem:[#allocation60_spill] sm:$0xff] }
  0xc3   :  { %12800 = vst [vmem:[#allocation211_spill] sm:$0xff] %v8939_v15  ;;  %12801 = vst [vmem:[#allocation212_spill] sm:$0xff] %v8941_v11  ;;  %v8960_v50 = vpack.c.bf16 %v2682_v8, %v2670_v56  ;;  %v8962_v31 = vpack.c.bf16 %v1329_v22, %v1317_v16  ;;  %v8967_v62 = vsub.f32 %v12798_v24, %v12023_v12  ;;  %v12031_v35 = vand.u32 4294901760, %v12808_v9  ;;  %v12810_v16 = vld [vmem:[#allocation63_spill] sm:$0xff]  ;;  %v12814_v8 = vld [vmem:[#allocation118_spill] sm:$0xff] }
  0xc4   :  { %12803 = vst [vmem:[#allocation213_spill] sm:$0xff] %v8949_v41  ;;  %12804 = vst [vmem:[#allocation214_spill] sm:$0xff] %v8951_v40  ;;  %v8970_v37 = vpack.c.bf16 %v2688_v23, %v2676_v4  ;;  %v12028_v6 = vand.u32 4294901760, %v8090_v10  ;;  %v12029_v44 = vand.u32 4294901760, %v8095_v42  ;;  %v8979_v22 = vsub.f32 %v12802_v57, %v12024_v47  ;;  %v12826_v11 = vld [vmem:[#allocation42_spill] sm:$0xff] }
  0xc5   :  { %12805 = vst [vmem:[#allocation215_spill] sm:$0xff] %v8953_v59  ;;  %12806 = vst [vmem:[#allocation216_spill] sm:$0xff] %v8960_v50  ;;  %v12035_v46 = vand.u32 4294901760, %v8135_v19  ;;  %v8995_v47 = vsub.f32 %v12808_v9, %v12031_v35  ;;  %v12037_v51 = vand.u32 4294901760, %v12812_v21  ;;  %v12040_v5 = vand.u32 4294901760, %v12814_v8  ;;  %v12816_v9 = vld [vmem:[#allocation119_spill] sm:$0xff] }
  0xc6   :  { %12807 = vst [vmem:[#allocation217_spill] sm:$0xff] %v8962_v31  ;;  %12809 = vst [vmem:[#allocation218_spill] sm:$0xff] %v8970_v37  ;;  %v2795_v61 = vsub.f32 %v8090_v10, %v12028_v6  ;;  %v2807_v4 = vsub.f32 %v8095_v42, %v12029_v44  ;;  %v12813_v6 = vld [vmem:[#allocation117_spill] sm:$0xff]  ;;  %v12041_v24 = vand.u32 4294901760, %v12816_v9  ;;  %v12820_v37 = vld [vmem:[#allocation122_spill] sm:$0xff]  ;;  %v12049_v15 = vand.u32 4294901760, %v12826_v11 }
  0xc7   :  { %v1454_v58 = vsub.f32 %v8135_v19, %v12035_v46  ;;  %v12039_v56 = vand.u32 4294901760, %v12813_v6  ;;  %v12815_v44 = vld [vmem:[#allocation65_spill] sm:$0xff]  ;;  %v1466_v35 = vsub.f32 %v12812_v21, %v12037_v51  ;;  %v12818_v46 = vld [vmem:[#allocation120_spill] sm:$0xff]  ;;  %v12821_v31 = vld [vmem:[#allocation123_spill] sm:$0xff] }
  0xc8   :  { %v2796_v23 = vand.u32 4294901760, %v2795_v61  ;;  %v2808_v49 = vand.u32 4294901760, %v2807_v4  ;;  %v2825_v4 = vsub.f32 %v12814_v8, %v12040_v5  ;;  %v12042_v13 = vand.u32 4294901760, %v12818_v46  ;;  %v12819_v51 = vld [vmem:[#allocation121_spill] sm:$0xff] }
  0xc9   :  { %v1455_v12 = vand.u32 4294901760, %v1454_v58  ;;  %v2813_v61 = vsub.f32 %v12813_v6, %v12039_v56  ;;  %v1467_v57 = vand.u32 4294901760, %v1466_v35  ;;  %v1460_v58 = vsub.f32 %v12816_v9, %v12041_v24 }
  0xca   :  { %v9008_v32 = vpack.c.bf16 %v2808_v49, %v2796_v23  ;;  %v12043_v53 = vand.u32 4294901760, %v12819_v51  ;;  %v12044_v23 = vand.u32 4294901760, %v12820_v37  ;;  %v1472_v56 = vsub.f32 %v12818_v46, %v12042_v13  ;;  %v12824_v13 = vld [vmem:[#allocation124_spill] sm:$0xff] }
  0xcb   :  { %v2814_v49 = vand.u32 4294901760, %v2813_v61  ;;  %v12045_v50 = vand.u32 4294901760, %v12821_v31  ;;  %v9026_v5 = vpack.c.bf16 %v1467_v57, %v1455_v12  ;;  %v1461_v59 = vand.u32 4294901760, %v1460_v58  ;;  %v12825_v58 = vld [vmem:[#allocation125_spill] sm:$0xff] }
  0xcc   :  { %12817 = vst [vmem:[#allocation219_spill] sm:$0xff] %v9008_v32  ;;  %v2826_v32 = vand.u32 4294901760, %v2825_v4  ;;  %v2819_v35 = vsub.f32 %v12819_v51, %v12043_v53  ;;  %v2831_v24 = vsub.f32 %v12820_v37, %v12044_v23  ;;  %v1473_v61 = vand.u32 4294901760, %v1472_v56  ;;  %v12828_v56 = vld [vmem:[#allocation126_spill] sm:$0xff] }
  0xcd   :  { %12822 = vst [vmem:[#allocation220_spill] sm:$0xff] %v9026_v5  ;;  %v1478_v4 = vsub.f32 %v12821_v31, %v12045_v50  ;;  %v12046_v41 = vand.u32 4294901760, %v12824_v13  ;;  %v12047_v5 = vand.u32 4294901760, %v12825_v58  ;;  %v12830_v50 = vld [vmem:[#allocation128_spill] sm:$0xff] }
  0xce   :  { %v9034_v40 = vpack.c.bf16 %v2826_v32, %v2814_v49  ;;  %v2820_v12 = vand.u32 4294901760, %v2819_v35  ;;  %v2832_v57 = vand.u32 4294901760, %v2831_v24  ;;  %v9042_v53 = vpack.c.bf16 %v1473_v61, %v1461_v59 }
  0xcf   :  { %v1479_v36 = vand.u32 4294901760, %v1478_v4  ;;  %v1490_v32 = vsub.f32 %v12824_v13, %v12046_v41  ;;  %v12051_v49 = vand.u32 4294901760, %v12828_v56  ;;  %v2837_v35 = vsub.f32 %v12825_v58, %v12047_v5  ;;  %v12831_v41 = vld [vmem:[#allocation129_spill] sm:$0xff] }
  0xd0   :  { %12823 = vst [vmem:[#allocation221_spill] sm:$0xff] %v9034_v40  ;;  %12827 = vst [vmem:[#allocation222_spill] sm:$0xff] %v9042_v53  ;;  %v9048_v23 = vpack.c.bf16 %v2832_v57, %v2820_v12  ;;  %v2849_v24 = vsub.f32 %v12826_v11, %v12049_v15  ;;  %v12053_v59 = vand.u32 4294901760, %v12830_v50  ;;  %v12054_v53 = vand.u32 4294901760, %v12831_v41  ;;  %v12832_v40 = vld [vmem:[#allocation130_spill] sm:$0xff] }
  0xd1   :  { %v1491_v61 = vand.u32 4294901760, %v1490_v32  ;;  %v1484_v4 = vsub.f32 %v12828_v56, %v12051_v49  ;;  %v12059_v12 = vand.u32 4294901760, %v12832_v40  ;;  %v2838_v57 = vand.u32 4294901760, %v2837_v35 }
  0xd2   :  { %12829 = vst [vmem:[#allocation223_spill] sm:$0xff] %v9048_v23  ;;  %v2850_v23 = vand.u32 4294901760, %v2849_v24  ;;  %v1496_v5 = vsub.f32 %v12830_v50, %v12053_v59  ;;  %v12057_v58 = vand.u32 4294901760, %v8591_v33  ;;  %v2843_v32 = vsub.f32 %v12831_v41, %v12054_v53 }
  0xd3   :  { %v9066_v15 = vpack.c.bf16 %v1491_v61, %v1479_v36  ;;  %v1485_v11 = vand.u32 4294901760, %v1484_v4  ;;  %v2855_v49 = vsub.f32 %v12832_v40, %v12059_v12  ;;  %v12056_v59 = vand.u32 4294901760, %v8596_v54 }
  0xd4   :  { %v9074_v56 = vpack.c.bf16 %v2850_v23, %v2838_v57  ;;  %v1497_v35 = vand.u32 4294901760, %v1496_v5  ;;  %v1502_v24 = vsub.f32 %v8591_v33, %v12057_v58  ;;  %v2844_v36 = vand.u32 4294901760, %v2843_v32  ;;  %v12926_v33 = vld [vmem:[#allocation209_spill] sm:$0xff] }
  0xd5   :  { %12833 = vst [vmem:[#allocation224_spill] sm:$0xff] %v9066_v15  ;;  %v2856_v61 = vand.u32 4294901760, %v2855_v49  ;;  %v12058_v4 = vand.u32 4294901760, %v8601_v60  ;;  %v12060_v15 = vand.u32 4294901760, %v8606_v0  ;;  %v1514_v23 = vsub.f32 %v8596_v54, %v12056_v59 }
  0xd6   :  { %12834 = vst [vmem:[#allocation225_spill] sm:$0xff] %v9074_v56  ;;  %v9082_v53 = vpack.c.bf16 %v1497_v35, %v1485_v11  ;;  %v1503_v41 = vand.u32 4294901760, %v1502_v24  ;;  %v12061_v5 = vand.u32 4294901760, %v8612_v63  ;;  %v12062_v11 = vand.u32 4294901760, %v8617_v20 }
  0xd7   :  { %v9088_v57 = vpack.c.bf16 %v2856_v61, %v2844_v36  ;;  %v2861_v32 = vsub.f32 %v8601_v60, %v12058_v4  ;;  %v2873_v49 = vsub.f32 %v8606_v0, %v12060_v15  ;;  %v1515_v35 = vand.u32 4294901760, %v1514_v23  ;;  %v12948_v0 = vld [vmem:[#allocation94_spill] sm:$0xff] }
  0xd8   :  { %12835 = vst [vmem:[#allocation226_spill] sm:$0xff] %v9082_v53  ;;  %v1508_v24 = vsub.f32 %v8612_v63, %v12061_v5  ;;  %v12063_v59 = vand.u32 4294901760, %v8622_v2  ;;  %v12067_v36 = vand.u32 4294901760, %v8627_v48  ;;  %v1520_v4 = vsub.f32 %v8617_v20, %v12062_v11  ;;  %v12965_v60 = vld [vmem:[#allocation102_spill] sm:$0xff] }
  0xd9   :  { %12836 = vst [vmem:[#allocation227_spill] sm:$0xff] %v9088_v57  ;;  %v2862_v61 = vand.u32 4294901760, %v2861_v32  ;;  %v2874_v58 = vand.u32 4294901760, %v2873_v49  ;;  %v12065_v12 = vand.u32 4294901760, %v8633_v25  ;;  %v9106_v15 = vpack.c.bf16 %v1515_v35, %v1503_v41 }
  0xda   :  { %v1509_v57 = vand.u32 4294901760, %v1508_v24  ;;  %v2867_v23 = vsub.f32 %v8622_v2, %v12063_v59  ;;  %v2879_v5 = vsub.f32 %v8627_v48, %v12067_v36  ;;  %v1521_v32 = vand.u32 4294901760, %v1520_v4  ;;  %v12945_v48 = vld [vmem:[#allocation92_spill] sm:$0xff] }
  0xdb   :  { %12837 = vst [vmem:[#allocation228_spill] sm:$0xff] %v9106_v15  ;;  %v9114_v53 = vpack.c.bf16 %v2874_v58, %v2862_v61  ;;  %v1526_v49 = vsub.f32 %v8633_v25, %v12065_v12  ;;  %v12064_v11 = vand.u32 4294901760, %v8638_v55  ;;  %v12066_v24 = vand.u32 4294901760, %v8643_v3 }
  0xdc   :  { %v2868_v41 = vand.u32 4294901760, %v2867_v23  ;;  %v2880_v35 = vand.u32 4294901760, %v2879_v5  ;;  %v12068_v15 = vand.u32 4294901760, %v8648_v34  ;;  %v9122_v59 = vpack.c.bf16 %v1521_v32, %v1509_v57 }
  0xdd   :  { %12838 = vst [vmem:[#allocation229_spill] sm:$0xff] %v9114_v53  ;;  %v1527_v56 = vand.u32 4294901760, %v1526_v49  ;;  %v1538_v58 = vsub.f32 %v8638_v55, %v12064_v11  ;;  %v12069_v4 = vand.u32 4294901760, %v8653_v7  ;;  %v2885_v23 = vsub.f32 %v8643_v3, %v12066_v24  ;;  %v12964_v55 = vld [vmem:[#allocation101_spill] sm:$0xff] }
  0xde   :  { %12839 = vst [vmem:[#allocation230_spill] sm:$0xff] %v9122_v59  ;;  %v9128_v61 = vpack.c.bf16 %v2880_v35, %v2868_v41  ;;  %v2897_v5 = vsub.f32 %v8648_v34, %v12068_v15  ;;  %v12070_v57 = vand.u32 4294901760, %v8658_v45  ;;  %v12071_v11 = vand.u32 4294901760, %v8663_v43  ;;  %v12935_v34 = vld [vmem:[#allocation211_spill] sm:$0xff] }
  0xdf   :  { %v1539_v32 = vand.u32 4294901760, %v1538_v58  ;;  %v1532_v49 = vsub.f32 %v8653_v7, %v12069_v4  ;;  %v12074_v41 = vand.u32 4294901760, %v8668_v30  ;;  %v2886_v35 = vand.u32 4294901760, %v2885_v23  ;;  %v12951_v7 = vld [vmem:[#allocation214_spill] sm:$0xff] }
  0xe0   :  { %12840 = vst [vmem:[#allocation231_spill] sm:$0xff] %v9128_v61  ;;  %v2898_v12 = vand.u32 4294901760, %v2897_v5  ;;  %v1544_v24 = vsub.f32 %v8658_v45, %v12070_v57  ;;  %v12073_v36 = vand.u32 4294901760, %v8671_v39  ;;  %v2891_v58 = vsub.f32 %v8663_v43, %v12071_v11  ;;  %v12950_v45 = vld [vmem:[#allocation213_spill] sm:$0xff] }
  0xe1   :  { %v9146_v15 = vpack.c.bf16 %v1539_v32, %v1527_v56  ;;  %v1533_v61 = vand.u32 4294901760, %v1532_v49  ;;  %v2903_v4 = vsub.f32 %v8668_v30, %v12074_v41  ;;  %v12072_v57 = vand.u32 4294901760, %v8674_v17 }
  0xe2   :  { %v9154_v59 = vpack.c.bf16 %v2898_v12, %v2886_v35  ;;  %v1545_v23 = vand.u32 4294901760, %v1544_v24  ;;  %v1550_v5 = vsub.f32 %v8671_v39, %v12073_v36  ;;  %v2892_v56 = vand.u32 4294901760, %v2891_v58  ;;  %v12845_v36 = vld [vmem:[#allocation183_spill] sm:$0xff] }
  0xe3   :  { %12841 = vst [vmem:[#allocation232_spill] sm:$0xff] %v9146_v15  ;;  %v2904_v32 = vand.u32 4294901760, %v2903_v4  ;;  %v12075_v49 = vand.u32 4294901760, %v8677_v27  ;;  %v12076_v15 = vand.u32 4294901760, %v8680_v29  ;;  %v1562_v12 = vsub.f32 %v8674_v17, %v12072_v57 }
  0xe4   :  { %12842 = vst [vmem:[#allocation233_spill] sm:$0xff] %v9154_v59  ;;  %v9162_v11 = vpack.c.bf16 %v1545_v23, %v1533_v61  ;;  %v1551_v53 = vand.u32 4294901760, %v1550_v5  ;;  %v12077_v24 = vand.u32 4294901760, %v8682_v14  ;;  %v12080_v61 = vand.u32 4294901760, %v8684_v28 }
  0xe5   :  { %v9168_v35 = vpack.c.bf16 %v2904_v32, %v2892_v56  ;;  %v2909_v58 = vsub.f32 %v8677_v27, %v12075_v49  ;;  %v2921_v4 = vsub.f32 %v8680_v29, %v12076_v15  ;;  %v1563_v23 = vand.u32 4294901760, %v1562_v12  ;;  %v12851_v29 = vld [vmem:[#allocation188_spill] sm:$0xff] }
  0xe6   :  { %12843 = vst [vmem:[#allocation234_spill] sm:$0xff] %v9162_v11  ;;  %v1556_v5 = vsub.f32 %v8682_v14, %v12077_v24  ;;  %v12087_v57 = vand.u32 4294901760, %v8686_v18  ;;  %v12090_v56 = vand.u32 4294901760, %v12845_v36  ;;  %v1568_v49 = vsub.f32 %v8684_v28, %v12080_v61  ;;  %v12849_v61 = vld [vmem:[#allocation185_spill] sm:$0xff] }
  0xe7   :  { %12844 = vst [vmem:[#allocation235_spill] sm:$0xff] %v9168_v35  ;;  %v2910_v32 = vand.u32 4294901760, %v2909_v58  ;;  %v2922_v41 = vand.u32 4294901760, %v2921_v4  ;;  %v12846_v35 = vld [vmem:[#allocation184_spill] sm:$0xff]  ;;  %v9186_v15 = vpack.c.bf16 %v1563_v23, %v1551_v53  ;;  %v12092_v28 = vand.u32 4294901760, %v12849_v61 }
  0xe8   :  { %v12091_v11 = vand.u32 4294901760, %v12846_v35  ;;  %v1557_v59 = vand.u32 4294901760, %v1556_v5  ;;  %v2915_v12 = vsub.f32 %v8686_v18, %v12087_v57  ;;  %v2927_v24 = vsub.f32 %v12845_v36, %v12090_v56  ;;  %v12850_v5 = vld [vmem:[#allocation187_spill] sm:$0xff]  ;;  %v12864_v36 = vld [vmem:[#allocation198_spill] sm:$0xff] }
  0xe9   :  { %12847 = vst [vmem:[#allocation236_spill] sm:$0xff] %v9186_v15  ;;  %v9194_v14 = vpack.c.bf16 %v2922_v41, %v2910_v32  ;;  %v1569_v58 = vand.u32 4294901760, %v1568_v49  ;;  %v12094_v15 = vand.u32 4294901760, %v12850_v5  ;;  %v12096_v27 = vand.u32 4294901760, %v12851_v29  ;;  %v12853_v49 = vld [vmem:[#allocation190_spill] sm:$0xff] }
  0xea   :  { %v1574_v4 = vsub.f32 %v12846_v35, %v12091_v11  ;;  %v2916_v53 = vand.u32 4294901760, %v2915_v12  ;;  %v2928_v23 = vand.u32 4294901760, %v2927_v24  ;;  %v1586_v41 = vsub.f32 %v12849_v61, %v12092_v28  ;;  %v12855_v11 = vld [vmem:[#allocation191_spill] sm:$0xff]  ;;  %v12856_v28 = vld [vmem:[#allocation193_spill] sm:$0xff]  ;;  %v12861_v35 = vld [vmem:[#allocation196_spill] sm:$0xff] }
  0xeb   :  { %12848 = vst [vmem:[#allocation237_spill] sm:$0xff] %v9194_v14  ;;  %v9202_v57 = vpack.c.bf16 %v1569_v58, %v1557_v59  ;;  %v12099_v32 = vand.u32 4294901760, %v12853_v49  ;;  %v2933_v12 = vsub.f32 %v12850_v5, %v12094_v15  ;;  %v2945_v24 = vsub.f32 %v12851_v29, %v12096_v27  ;;  %v12857_v14 = vld [vmem:[#allocation194_spill] sm:$0xff] }
  0xec   :  { %v1575_v18 = vand.u32 4294901760, %v1574_v4  ;;  %v9208_v56 = vpack.c.bf16 %v2928_v23, %v2916_v53  ;;  %v12108_v59 = vand.u32 4294901760, %v12855_v11  ;;  %v1587_v58 = vand.u32 4294901760, %v1586_v41 }
  0xed   :  { %12852 = vst [vmem:[#allocation238_spill] sm:$0xff] %v9202_v57  ;;  %v1580_v4 = vsub.f32 %v12853_v49, %v12099_v32  ;;  %v12858_v61 = vand.u32 4294901760, %v8937_v26  ;;  %v12859_v15 = vand.u32 4294901760, %v8946_v52  ;;  %v2934_v27 = vand.u32 4294901760, %v2933_v12  ;;  %v12862_v32 = vld [vmem:[#allocation197_spill] sm:$0xff]  ;;  %v12867_v52 = vld [vmem:[#allocation199_spill] sm:$0xff] }
  0xee   :  { %12854 = vst [vmem:[#allocation239_spill] sm:$0xff] %v9208_v56  ;;  %v2946_v29 = vand.u32 4294901760, %v2945_v24  ;;  %v1592_v41 = vsub.f32 %v12855_v11, %v12108_v59  ;;  %v12863_v49 = vrot.slane %v12861_v35, %v12862_v32  ;;  %v12865_v53 = vrot.slane %v12864_v36, %v12862_v32  ;;  %v12869_v24 = vld [vmem:[#allocation200_spill] sm:$0xff] }
  0xef   :  { %v9226_v5 = vpack.c.bf16 %v12859_v15, %v12858_v61  ;;  %v9237_v30 = vpack.c.bf16 %v1587_v58, %v1575_v18  ;;  %v1581_v15 = vand.u32 4294901760, %v1580_v4  ;;  %v12868_v61 = vrot.slane %v12867_v52, %v12862_v32 }
  0xf0   :  { %v12870_v59 = vrot.slane %v12869_v24, %v12862_v32  ;;  %v9245_v11 = vpack.c.bf16 %v2946_v29, %v2934_v27  ;;  %v1593_v35 = vand.u32 4294901760, %v1592_v41  ;;  %v12872_v36 = vand.u32 4294901760, %v12856_v28 }
  0xf1   :  { %12860 = vst [vmem:[#allocation240_spill] sm:$0xff] %v9226_v5  ;;  %12866 = vst [vmem:[#allocation196_spill] sm:$0xff] %v9237_v30  ;;  %v12873_v18 = vand.u32 4294901760, %v12857_v14  ;;  %v1341_v52 = vand.u32 4294901760, %v8979_v22  ;;  %v1353_v24 = vand.u32 4294901760, %v8995_v47  ;;  %v12886_v22 = vand.u32 4294901760, %v12815_v44 }
  0xf2   :  { %12871 = vst [vmem:[#allocation197_spill] sm:$0xff] %v9245_v11  ;;  %v12895_v11 = vld [vmem:[#allocation77_spill] sm:$0xff] }
  0xf3   :  { %v2951_v58 = vsub.f32 %v12857_v14, %v12873_v18  ;;  %v9288_v18 = vsub.f32 %v12815_v44, %v12886_v22  ;;  %v12891_v44 = vld [vmem:[#allocation74_spill] sm:$0xff] }
  0xf8   :  { %v12966_v63 = vld [vmem:[#allocation240_spill] sm:$0xff] }
 0x11b   :  { %v520_v23 = vpop.f32.mrb[0].mxu0 }
 0x11c   :  { %v985_v56 = vpop.f32.mrb[0].mxu1  ;;  %v7116_v57 = vadd.f32 %v520_v23, %v12863_v49  ;;  %v522_v39 = vpop.f32.mrb[1].mxu0 }
 0x11d   :  { %v7118_v17 = vadd.f32 %v985_v56, %v12865_v53  ;;  %v987_v26 = vpop.f32.mrb[1].mxu1  ;;  %v7117_v12 = vadd.f32 %v522_v39, %v12868_v61  ;;  %v2939_v56 = vsub.f32 %v12856_v28, %v12872_v36  ;;  %v12874_v39 = vand.u32 4294901760, %v12810_v16  ;;  %v12962_v28 = vld [vmem:[#allocation217_spill] sm:$0xff] }
 0x11e   :  { %v7119_v5 = vadd.f32 %v987_v26, %v12870_v59  ;;  %v990_v49 = vmax.f32 %v7116_v57, 0.0  ;;  %v9256_v59 = vpack.c.bf16 %v1593_v35, %v1581_v15  ;;  %v2952_v57 = vand.u32 4294901760, %v2951_v58 }
 0x11f   :  { %v992_v23 = vmax.f32 %v7118_v17, 0.0  ;;  %v991_v4 = vmax.f32 %v7117_v12, 0.0  ;;  %v2699_v32 = vsub.f32 %v12810_v16, %v12874_v39  ;;  %v2940_v17 = vand.u32 4294901760, %v2939_v56  ;;  %v12890_v16 = vld [vmem:[#allocation71_spill] sm:$0xff] }
 0x120   :  { %v993_v53 = vmax.f32 %v7119_v5, 0.0  ;;  %12875 = vst [vmem:[#allocation198_spill] sm:$0xff] %v9256_v59  ;;  %v9258_v27 = vand.u32 4294901760, %v990_v49  ;;  %v12880_v5 = vand.u32 4294901760, %v12811_v1 }
 0x121   :  { %v9260_v29 = vand.u32 4294901760, %v992_v23  ;;  %v9262_v41 = vand.u32 4294901760, %v991_v4  ;;  %v9277_v35 = vpack.c.bf16 %v2952_v57, %v2940_v17  ;;  %v2700_v47 = vand.u32 4294901760, %v2699_v32  ;;  %v12888_v17 = vld [vmem:[#allocation69_spill] sm:$0xff] }
 0x122   :  { %12876 = vst [vmem:[#allocation199_spill] sm:$0xff] %v9258_v27  ;;  %v9264_v26 = vand.u32 4294901760, %v993_v53  ;;  %v2711_v61 = vsub.f32 %v12811_v1, %v12880_v5  ;;  %v9271_v12 = vsub.f32 %v990_v49, %v9258_v27  ;;  %v12887_v49 = vld [vmem:[#allocation68_spill] sm:$0xff]  ;;  %v12892_v27 = vld [vmem:[#allocation75_spill] sm:$0xff]  ;;  %v12897_v57 = vand.u32 4294901760, %v12888_v17 }
 0x123   :  { %12877 = vst [vmem:[#allocation200_spill] sm:$0xff] %v9260_v29  ;;  %12878 = vst [vmem:[#allocation241_spill] sm:$0xff] %v9262_v41  ;;  %v9274_v15 = vsub.f32 %v992_v23, %v9260_v29  ;;  %v9280_v36 = vsub.f32 %v991_v4, %v9262_v41 }
 0x124   :  { %12879 = vst [vmem:[#allocation242_spill] sm:$0xff] %v9264_v26  ;;  %12881 = vst [vmem:[#allocation243_spill] sm:$0xff] %v9271_v12  ;;  %v9283_v56 = vsub.f32 %v993_v53, %v9264_v26  ;;  %v12117_v23 = vand.u32 4294901760, %v9271_v12  ;;  %v12889_v53 = vld [vmem:[#allocation70_spill] sm:$0xff]  ;;  %v2712_v30 = vand.u32 4294901760, %v2711_v61 }
 0x125   :  { %12882 = vst [vmem:[#allocation244_spill] sm:$0xff] %v9274_v15  ;;  %12883 = vst [vmem:[#allocation245_spill] sm:$0xff] %v9277_v35  ;;  %v12120_v39 = vand.u32 4294901760, %v9274_v15  ;;  %v12123_v4 = vand.u32 4294901760, %v9280_v36  ;;  %v12894_v35 = vld [vmem:[#allocation76_spill] sm:$0xff] }
 0x126   :  { %12884 = vst [vmem:[#allocation246_spill] sm:$0xff] %v9280_v36  ;;  %12885 = vst [vmem:[#allocation247_spill] sm:$0xff] %v9283_v56  ;;  %v1203_v22 = vsub.f32 %v9271_v12, %v12117_v23  ;;  %v12893_v1 = vand.u32 4294901760, %v9283_v56 }
 0x127   :  { %v2562_v58 = vsub.f32 %v9274_v15, %v12120_v39  ;;  %v1197_v5 = vsub.f32 %v9280_v36, %v12123_v4  ;;  %v12896_v39 = vand.u32 4294901760, %v12887_v49  ;;  %v9322_v15 = vsub.f32 %v12888_v17, %v12897_v57 }
 0x128   :  { %v2556_v29 = vsub.f32 %v9283_v56, %v12893_v1  ;;  %v1204_v12 = vand.u32 4294901760, %v1203_v22  ;;  %v12898_v1 = vand.u32 4294901760, %v12889_v53  ;;  %v12899_v22 = vand.u32 4294901760, %v12890_v16 }
 0x129   :  { %v9317_v32 = vsub.f32 %v12887_v49, %v12896_v39  ;;  %v1198_v4 = vand.u32 4294901760, %v1197_v5  ;;  %v2563_v23 = vand.u32 4294901760, %v2562_v58  ;;  %v12900_v39 = vand.u32 4294901760, %v12891_v44  ;;  %v12902_v5 = vld [vmem:[#allocation81_spill] sm:$0xff] }
 0x12a   :  { %v2557_v36 = vand.u32 4294901760, %v2556_v29  ;;  %v9327_v59 = vsub.f32 %v12889_v53, %v12898_v1  ;;  %v9332_v61 = vsub.f32 %v12890_v16, %v12899_v22  ;;  %v12901_v57 = vand.u32 4294901760, %v12892_v27  ;;  %v12906_v53 = vld [vmem:[#allocation83_spill] sm:$0xff] }
 0x12b   :  { %v9337_v49 = vsub.f32 %v12891_v44, %v12900_v39  ;;  %1199 = vmatprep.mubr.f32.mxu0 %v1198_v4  ;;  %v12903_v1 = vand.u32 4294901760, %v12894_v35  ;;  %v12904_v58 = vand.u32 4294901760, %v12895_v11  ;;  %v12905_v39 = vld [vmem:[#allocation82_spill] sm:$0xff]  ;;  %v12137_v56 = vand.u32 4294901760, %v12906_v53 }
 0x12c   :  { %v9342_v29 = vsub.f32 %v12892_v27, %v12901_v57  ;;  %2558 = vmatprep.mubr.f32.mxu1 %v2557_v36  ;;  %1205 = vmatmul.mubr.f32.vlgmr.msra.gmra.mrb[2].mxu0 %v1204_v12  ;;  %v12907_v57 = vand.u32 4294901760, %v8958_v38  ;;  %v12908_v36 = vand.u32 4294901760, %v8967_v62  ;;  %v9363_v17 = vpack.c.bf16 %v1353_v24, %v1341_v52  ;;  %v12912_v52 = vld [vmem:[#allocation203_spill] sm:$0xff] }
 0x12d   :  { %v9348_v22 = vsub.f32 %v12894_v35, %v12903_v1  ;;  %v9353_v16 = vsub.f32 %v12895_v11, %v12904_v58  ;;  %2564 = vmatmul.mubr.f32.vlgmr.msra.gmra.mrb[2].mxu1 %v2563_v23  ;;  %v1359_v1 = vand.u32 4294901760, %v9288_v18  ;;  %v12909_v35 = vld [vmem:[#allocation86_spill] sm:$0xff]  ;;  %v12910_v58 = vld [vmem:[#allocation201_spill] sm:$0xff]  ;;  %v9369_v44 = vpack.c.bf16 %v2712_v30, %v2700_v47  ;;  %v12914_v47 = vld [vmem:[#allocation204_spill] sm:$0xff]  ;;  %1596 = vmatprep.mubr.f32.mxu0 %v9262_v41 }
 0x12e   :  { %v9361_v4 = vpack.c.bf16 %v12908_v36, %v12907_v57  ;;  %v12136_v27 = vand.u32 4294901760, %v12909_v35  ;;  %6031 = vmatpush1.bf16.msra.mxu0 %v12910_v58  ;;  %v12911_v11 = vld [vmem:[#allocation202_spill] sm:$0xff]  ;;  %v1371_v12 = vand.u32 4294901760, %v9317_v32  ;;  %v2718_v38 = vand.u32 4294901760, %v9322_v15  ;;  %2955 = vmatprep.mubr.f32.mxu1 %v9264_v26  ;;  %v12916_v36 = vld [vmem:[#allocation205_spill] sm:$0xff] }
 0x12f   :  { %6415 = vmatpush1.bf16.msra.mxu1 %v12911_v11  ;;  %v2730_v62 = vand.u32 4294901760, %v9327_v59  ;;  %6033 = vmatprep.subr.bf16.mxu0 %v12912_v52  ;;  %v1365_v24 = vand.u32 4294901760, %v9332_v61  ;;  %v1377_v18 = vand.u32 4294901760, %v9337_v49  ;;  %v2724_v23 = vand.u32 4294901760, %v9342_v29  ;;  %v12917_v58 = vld [vmem:[#allocation206_spill] sm:$0xff]  ;;  %v12918_v52 = vld [vmem:[#allocation87_spill] sm:$0xff] }
 0x130   :  { %v12913_v11 = vand.u32 4294901760, %v12902_v5  ;;  %6417 = vmatprep.subr.bf16.mxu1 %v12914_v47  ;;  %v2736_v15 = vand.u32 4294901760, %v9348_v22  ;;  %v1383_v59 = vand.u32 4294901760, %v9353_v16  ;;  %v12915_v32 = vand.u32 4294901760, %v12905_v39  ;;  %v12920_v29 = vld [vmem:[#allocation208_spill] sm:$0xff]  ;;  %v12937_v26 = vld [vmem:[#allocation89_spill] sm:$0xff] }
 0x131   :  { %v9393_v49 = vsub.f32 %v12906_v53, %v12137_v56  ;;  %v9399_v61 = vsub.f32 %v12909_v35, %v12136_v27  ;;  %v12919_v56 = vld [vmem:[#allocation207_spill] sm:$0xff]  ;;  %v12927_v27 = vld [vmem:[#allocation210_spill] sm:$0xff]  ;;  %v12936_v47 = vld [vmem:[#allocation212_spill] sm:$0xff]  ;;  %v6052_v43 = vpack.c.bf16 %v1371_v12, %v1359_v1  ;;  %v6054_v20 = vpack.c.bf16 %v1377_v18, %v1365_v24 }
 0x132   :  { %v1394_v30 = vsub.f32 %v12902_v5, %v12913_v11  ;;  %v9388_v57 = vsub.f32 %v12905_v39, %v12915_v32  ;;  %6035 = vmatpush1.bf16.msra.mxu0 %v12916_v36  ;;  %v6436_v11 = vpack.c.bf16 %v2730_v62, %v2718_v38  ;;  %v12954_v1 = vld [vmem:[#allocation216_spill] sm:$0xff]  ;;  %v6438_v12 = vpack.c.bf16 %v2736_v15, %v2724_v23 }
 0x133   :  { %6419 = vmatpush1.bf16.msra.mxu1 %v12917_v58  ;;  %6037 = vmatprep.subr.bf16.mxu0 %v12919_v56  ;;  %v12928_v56 = vld [vmem:[#allocation88_spill] sm:$0xff]  ;;  %v1389_v62 = vand.u32 4294901760, %v9399_v61  ;;  %v12956_v24 = vand.u32 4294901760, %v12937_v26  ;;  %v12177_v15 = vand.u32 4294901760, %v12964_v55 }
 0x134   :  { %6421 = vmatprep.subr.bf16.mxu1 %v12920_v29  ;;  %v1395_v22 = vand.u32 4294901760, %v1394_v30  ;;  %v12944_v30 = vld [vmem:[#allocation90_spill] sm:$0xff]  ;;  %v2742_v25 = vand.u32 4294901760, %v9388_v57  ;;  %v2754_v29 = vand.u32 4294901760, %v9393_v49  ;;  %v12959_v23 = vld [vmem:[#allocation96_spill] sm:$0xff] }
 0x135   :  { %v2759_v18 = vsub.f32 %v12937_v26, %v12956_v24  ;;  %v12957_v57 = vand.u32 4294901760, %v12944_v30  ;;  %v12969_v24 = vld [vmem:[#allocation108_spill] sm:$0xff] }
 0x136   :  { %6039 = vmatpush1.bf16.msra.mxu0 %v12926_v33  ;;  %v12949_v33 = vld [vmem:[#allocation95_spill] sm:$0xff]  ;;  %v6056_v38 = vpack.c.bf16 %v1395_v22, %v1383_v59  ;;  %v6440_v14 = vpack.c.bf16 %v2754_v29, %v2742_v25  ;;  %v12182_v40 = vand.u32 4294901760, %v12969_v24  ;;  %v12970_v25 = vand.u32 4294901760, %v12959_v23 }
 0x137   :  { %6423 = vmatpush1.bf16.msra.mxu1 %v12927_v27  ;;  %6041 = vmatprep.subr.bf16.mxu0 %v12935_v34  ;;  %v12172_v27 = vand.u32 4294901760, %v12948_v0  ;;  %v12173_v32 = vand.u32 4294901760, %v12949_v33  ;;  %v12952_v34 = vand.u32 4294901760, %v12918_v52  ;;  %v1406_v49 = vsub.f32 %v12944_v30, %v12957_v57  ;;  %v12960_v22 = vld [vmem:[#allocation99_spill] sm:$0xff]  ;;  %v12963_v57 = vld [vmem:[#allocation218_spill] sm:$0xff] }
 0x138   :  { %6425 = vmatprep.subr.bf16.mxu1 %v12936_v47  ;;  %v12953_v47 = vld [vmem:[#allocation215_spill] sm:$0xff] }
 0x139   :  { %v1400_v3 = vsub.f32 %v12918_v52, %v12952_v34  ;;  %v12958_v34 = vand.u32 4294901760, %v12945_v48  ;;  %v2765_v59 = vsub.f32 %v12948_v0, %v12172_v27  ;;  %v2777_v61 = vsub.f32 %v12949_v33, %v12173_v32  ;;  %v12967_v32 = vld [vmem:[#allocation104_spill] sm:$0xff] }
 0x13a   :  { %6043 = vmatpush1.bf16.msra.mxu0 %v12950_v45  ;;  %v12955_v45 = vand.u32 4294901760, %v12928_v56  ;;  %v1407_v58 = vand.u32 4294901760, %v1406_v49  ;;  %v12973_v49 = vand.u32 4294901760, %v12965_v60 }
 0x13b   :  { %6427 = vmatpush1.bf16.msra.mxu1 %v12951_v7  ;;  %6045 = vmatprep.subr.bf16.mxu0 %v12953_v47  ;;  %v1418_v47 = vsub.f32 %v12945_v48, %v12958_v34  ;;  %v1401_v34 = vand.u32 4294901760, %v1400_v3  ;;  %v1412_v3 = vsub.f32 %v12959_v23, %v12970_v25  ;;  %v2766_v29 = vand.u32 4294901760, %v2765_v59  ;;  %v12974_v59 = vld [vmem:[#allocation109_spill] sm:$0xff]  ;;  %v12975_v25 = vld [vmem:[#allocation111_spill] sm:$0xff] }
 0x13c   :  { %6429 = vmatprep.subr.bf16.mxu1 %v12954_v1  ;;  %v2747_v7 = vsub.f32 %v12928_v56, %v12955_v45  ;;  %v12961_v45 = vld [vmem:[#allocation100_spill] sm:$0xff]  ;;  %v12968_v1 = vld [vmem:[#allocation105_spill] sm:$0xff]  ;;  %v2778_v2 = vand.u32 4294901760, %v2777_v61 }
 0x13d   :  { %v12180_v41 = vand.u32 4294901760, %v12968_v1  ;;  %v6058_v50 = vpack.c.bf16 %v1401_v34, %v1389_v62  ;;  %v1413_v36 = vand.u32 4294901760, %v1412_v3 }
 0x13e   :  { %6047 = vmatpush1.bf16.msra.mxu0 %v12962_v28  ;;  %v2748_v27 = vand.u32 4294901760, %v2747_v7  ;;  %v2760_v28 = vand.u32 4294901760, %v2759_v18  ;;  %v12972_v7 = vand.u32 4294901760, %v12961_v45  ;;  %v2783_v18 = vsub.f32 %v12964_v55, %v12177_v15 }
 0x13f   :  { %6431 = vmatpush1.bf16.msra.mxu1 %v12963_v57  ;;  %6049 = vmatprep.subr.bf16.mxu0 %v12966_v63  ;;  %v1419_v57 = vand.u32 4294901760, %v1418_v47  ;;  %v12971_v63 = vand.u32 4294901760, %v12960_v22  ;;  %v1430_v47 = vsub.f32 %v12965_v60, %v12973_v49  ;;  %v2801_v15 = vsub.f32 %v12969_v24, %v12182_v40  ;;  %v13029_v40 = vld [vmem:[#allocation26_spill] sm:$0xff] }
 0x140   :  { %6433 = vmatprep.subr.bf16.mxu1 %v9361_v4  ;;  %v2771_v54 = vsub.f32 %v12961_v45, %v12972_v7  ;;  %v12976_v7 = vand.u32 4294901760, %v12967_v32  ;;  %v6442_v49 = vpack.c.bf16 %v2760_v28, %v2748_v27  ;;  %v6444_v61 = vpack.c.bf16 %v2778_v2, %v2766_v29  ;;  %v12988_v29 = vld [vmem:[#allocation228_spill] sm:$0xff] }
 0x141   :  { %v1424_v4 = vsub.f32 %v12960_v22, %v12971_v63  ;;  %v6060_v16 = vpack.c.bf16 %v1419_v57, %v1407_v58  ;;  %v1431_v62 = vand.u32 4294901760, %v1430_v47  ;;  %v2802_v2 = vand.u32 4294901760, %v2801_v15  ;;  %v12987_v15 = vld [vmem:[#allocation227_spill] sm:$0xff] }
 0x142   :  { %6051 = vmatpush1.bf16.msra.mxu0 %v9363_v17  ;;  %v1442_v17 = vsub.f32 %v12967_v32, %v12976_v7  ;;  %v12977_v7 = vand.u32 4294901760, %v12974_v59  ;;  %v12991_v47 = vld [vmem:[#allocation231_spill] sm:$0xff] }
 0x143   :  { %6435 = vmatpush1.bf16.msra.mxu1 %v9369_v44  ;;  %6053 = vmatprep.subr.bf16.mxu0 %v6052_v43  ;;  %v2789_v44 = vsub.f32 %v12968_v1, %v12180_v41  ;;  %v1425_v63 = vand.u32 4294901760, %v1424_v4  ;;  %v2772_v43 = vand.u32 4294901760, %v2771_v54  ;;  %v12978_v41 = vand.u32 4294901760, %v12975_v25  ;;  %v12989_v4 = vld [vmem:[#allocation229_spill] sm:$0xff] }
 0x144   :  { %6437 = vmatprep.subr.bf16.mxu1 %v6436_v11  ;;  %v2784_v11 = vand.u32 4294901760, %v2783_v18  ;;  %v1436_v31 = vsub.f32 %v12974_v59, %v12977_v7  ;;  %v1443_v27 = vand.u32 4294901760, %v1442_v17  ;;  %v12990_v18 = vld [vmem:[#allocation230_spill] sm:$0xff]  ;;  %v12999_v7 = vld [vmem:[#allocation239_spill] sm:$0xff] }
 0x145   :  { %v1448_v13 = vsub.f32 %v12975_v25, %v12978_v41  ;;  %v2790_v58 = vand.u32 4294901760, %v2789_v44  ;;  %v12980_v41 = vld [vmem:[#allocation220_spill] sm:$0xff]  ;;  %v12994_v17 = vld [vmem:[#allocation234_spill] sm:$0xff]  ;;  %v12995_v44 = vld [vmem:[#allocation235_spill] sm:$0xff] }
 0x146   :  { %6055 = vmatpush1.bf16.msra.mxu0 %v6054_v20  ;;  %v6062_v20 = vpack.c.bf16 %v1425_v63, %v1413_v36  ;;  %v1437_v54 = vand.u32 4294901760, %v1436_v31  ;;  %v6064_v28 = vpack.c.bf16 %v1443_v27, %v1431_v62  ;;  %v12982_v36 = vld [vmem:[#allocation222_spill] sm:$0xff]  ;;  %v12983_v31 = vld [vmem:[#allocation223_spill] sm:$0xff]  ;;  %v12993_v63 = vld [vmem:[#allocation233_spill] sm:$0xff] }
 0x147   :  { %6439 = vmatpush1.bf16.msra.mxu1 %v6438_v12  ;;  %6057 = vmatprep.subr.bf16.mxu0 %v6056_v38  ;;  %v6446_v12 = vpack.c.bf16 %v2784_v11, %v2772_v43  ;;  %v1449_v34 = vand.u32 4294901760, %v1448_v13  ;;  %v6448_v57 = vpack.c.bf16 %v2802_v2, %v2790_v58  ;;  %v12984_v13 = vld [vmem:[#allocation224_spill] sm:$0xff]  ;;  %v12986_v38 = vld [vmem:[#allocation226_spill] sm:$0xff]  ;;  %v12997_v43 = vld [vmem:[#allocation237_spill] sm:$0xff] }
 0x148   :  { %6441 = vmatprep.subr.bf16.mxu1 %v6440_v14  ;;  %v12979_v14 = vld [vmem:[#allocation219_spill] sm:$0xff]  ;;  %v12998_v11 = vld [vmem:[#allocation238_spill] sm:$0xff]  ;;  %v13000_v62 = vld [vmem:[#allocation196_spill] sm:$0xff] }
 0x149   :  { %v6066_v3 = vpack.c.bf16 %v1449_v34, %v1437_v54  ;;  %v13001_v27 = vld [vmem:[#allocation197_spill] sm:$0xff]  ;;  %v13003_v2 = vld [vmem:[#allocation6_spill] sm:$0xff]  ;;  %v13005_v54 = vld [vmem:[#allocation8_spill] sm:$0xff] }
 0x14a   :  { %6059 = vmatpush1.bf16.msra.mxu0 %v6058_v50  ;;  %v12981_v50 = vld [vmem:[#allocation221_spill] sm:$0xff] }
 0x14b   :  { %6443 = vmatpush1.bf16.msra.mxu1 %v6442_v49  ;;  %6061 = vmatprep.subr.bf16.mxu0 %v6060_v16  ;;  %v12985_v16 = vld [vmem:[#allocation225_spill] sm:$0xff]  ;;  %v12996_v49 = vld [vmem:[#allocation236_spill] sm:$0xff] }
 0x14c   :  { %6445 = vmatprep.subr.bf16.mxu1 %v6444_v61  ;;  %v12992_v61 = vld [vmem:[#allocation232_spill] sm:$0xff]  ;;  %v13002_v58 = vld [vmem:[#allocation5_spill] sm:$0xff] }
 0x14e   :  { %6063 = vmatpush1.bf16.msra.mxu0 %v6062_v20  ;;  %v6092_v20 = vpack.c.bf16 %v13003_v2, %v13002_v58 }
 0x14f   :  { %6447 = vmatpush1.bf16.msra.mxu1 %v6446_v12  ;;  %6065 = vmatprep.subr.bf16.mxu0 %v6064_v28  ;;  %v13004_v12 = vld [vmem:[#allocation7_spill] sm:$0xff]  ;;  %v13006_v28 = vld [vmem:[#allocation198_spill] sm:$0xff] }
 0x150   :  { %6449 = vmatprep.subr.bf16.mxu1 %v6448_v57  ;;  %v6476_v34 = vpack.c.bf16 %v13005_v54, %v13004_v12  ;;  %v13007_v57 = vld [vmem:[#allocation245_spill] sm:$0xff] }
 0x152   :  { %6067 = vmatpush1.bf16.msra.mxu0 %v6066_v3  ;;  %v13008_v3 = vld [vmem:[#allocation9_spill] sm:$0xff] }
 0x153   :  { %6451 = vmatpush1.bf16.msra.mxu1 %v12979_v14  ;;  %6069 = vmatprep.subr.bf16.mxu0 %v12980_v41  ;;  %v13009_v14 = vld [vmem:[#allocation10_spill] sm:$0xff] }
 0x154   :  { %6453 = vmatprep.subr.bf16.mxu1 %v12981_v50  ;;  %v6094_v41 = vpack.c.bf16 %v13009_v14, %v13008_v3  ;;  %v13010_v50 = vld [vmem:[#allocation11_spill] sm:$0xff] }
 0x156   :  { %6071 = vmatpush1.bf16.msra.mxu0 %v12982_v36  ;;  %v13011_v36 = vld [vmem:[#allocation12_spill] sm:$0xff] }
 0x157   :  { %6455 = vmatpush1.bf16.msra.mxu1 %v12983_v31  ;;  %6073 = vmatprep.subr.bf16.mxu0 %v12984_v13  ;;  %v6478_v31 = vpack.c.bf16 %v13011_v36, %v13010_v50  ;;  %v13012_v13 = vld [vmem:[#allocation13_spill] sm:$0xff] }
 0x158   :  { %6457 = vmatprep.subr.bf16.mxu1 %v12985_v16  ;;  %v13013_v16 = vld [vmem:[#allocation14_spill] sm:$0xff] }
 0x15a   :  { %6075 = vmatpush1.bf16.msra.mxu0 %v12986_v38  ;;  %v6096_v38 = vpack.c.bf16 %v13013_v16, %v13012_v13 }
 0x15b   :  { %6459 = vmatpush1.bf16.msra.mxu1 %v12987_v15  ;;  %6077 = vmatprep.subr.bf16.mxu0 %v12988_v29  ;;  %v13014_v15 = vld [vmem:[#allocation15_spill] sm:$0xff]  ;;  %v13015_v29 = vld [vmem:[#allocation16_spill] sm:$0xff] }
 0x15c   :  { %6461 = vmatprep.subr.bf16.mxu1 %v12989_v4  ;;  %v6480_v4 = vpack.c.bf16 %v13015_v29, %v13014_v15  ;;  %v13033_v29 = vld [vmem:[#allocation30_spill] sm:$0xff] }
 0x15e   :  { %6079 = vmatpush1.bf16.msra.mxu0 %v12990_v18  ;;  %v13016_v18 = vld [vmem:[#allocation199_spill] sm:$0xff] }
 0x15f   :  { %6463 = vmatpush1.bf16.msra.mxu1 %v12991_v47  ;;  %6081 = vmatprep.subr.bf16.mxu0 %v12992_v61  ;;  %v13017_v47 = vld [vmem:[#allocation200_spill] sm:$0xff]  ;;  %v13018_v61 = vld [vmem:[#allocation246_spill] sm:$0xff] }
 0x160   :  { %6465 = vmatprep.subr.bf16.mxu1 %v12993_v63  ;;  %v13019_v63 = vld [vmem:[#allocation17_spill] sm:$0xff] }
 0x162   :  { %6083 = vmatpush1.bf16.msra.mxu0 %v12994_v17  ;;  %v13020_v17 = vld [vmem:[#allocation18_spill] sm:$0xff] }
 0x163   :  { %6467 = vmatpush1.bf16.msra.mxu1 %v12995_v44  ;;  %6085 = vmatprep.subr.bf16.mxu0 %v12996_v49  ;;  %v6098_v44 = vpack.c.bf16 %v13020_v17, %v13019_v63  ;;  %v13021_v49 = vld [vmem:[#allocation247_spill] sm:$0xff]  ;;  %v13032_v63 = vld [vmem:[#allocation29_spill] sm:$0xff] }
 0x164   :  { %6469 = vmatprep.subr.bf16.mxu1 %v12997_v43  ;;  %v13022_v43 = vld [vmem:[#allocation19_spill] sm:$0xff] }
 0x166   :  { %6087 = vmatpush1.bf16.msra.mxu0 %v12998_v11  ;;  %v13023_v11 = vld [vmem:[#allocation20_spill] sm:$0xff] }
 0x167   :  { %6471 = vmatpush1.bf16.msra.mxu1 %v12999_v7  ;;  %6089 = vmatprep.subr.bf16.mxu0 %v13000_v62  ;;  %v6482_v7 = vpack.c.bf16 %v13023_v11, %v13022_v43  ;;  %v13024_v62 = vld [vmem:[#allocation21_spill] sm:$0xff]  ;;  %v6104_v11 = vpack.c.bf16 %v13033_v29, %v13032_v63  ;;  %v13034_v43 = vld [vmem:[#allocation31_spill] sm:$0xff]  ;;  %v13045_v63 = vld [vmem:[#allocation48_spill] sm:$0xff] }
 0x168   :  { %6473 = vmatprep.subr.bf16.mxu1 %v13001_v27  ;;  %v13025_v27 = vld [vmem:[#allocation22_spill] sm:$0xff] }
 0x16a   :  { %6091 = vmatpush1.bf16.msra.mxu0 %v13006_v28  ;;  %v13027_v28 = vld [vmem:[#allocation24_spill] sm:$0xff] }
 0x16b   :  { %6475 = vmatpush1.bf16.msra.mxu1 %v13007_v57  ;;  %6093 = vmatprep.subr.bf16.mxu0 %v6092_v20  ;;  %v6100_v20 = vpack.c.bf16 %v13025_v27, %v13024_v62  ;;  %v13035_v27 = vld [vmem:[#allocation32_spill] sm:$0xff]  ;;  %v13037_v62 = vld [vmem:[#allocation35_spill] sm:$0xff] }
 0x16c   :  { %6477 = vmatprep.subr.bf16.mxu1 %v6476_v34  ;;  %v13026_v34 = vld [vmem:[#allocation23_spill] sm:$0xff] }
 0x16d   :  { %1598 = vmatmul.mubr.f32.vlgmr.msra.gmra.mrb[2].mxu0 %v13016_v18  ;;  %v6484_v57 = vpack.c.bf16 %v13027_v28, %v13026_v34  ;;  %v13031_v18 = vld [vmem:[#allocation28_spill] sm:$0xff] }
 0x16e   :  { %2957 = vmatmul.mubr.f32.vlgmr.msra.gmra.mrb[2].mxu1 %v13017_v47  ;;  %6095 = vmatpush1.bf16.msra.mxu0 %v6094_v41  ;;  %v13028_v41 = vld [vmem:[#allocation25_spill] sm:$0xff] }
 0x16f   :  { %1798 = vmatprep.mubr.f32.mxu0 %v13018_v61  ;;  %6479 = vmatpush1.bf16.msra.mxu1 %v6478_v31  ;;  %v6102_v47 = vpack.c.bf16 %v13029_v40, %v13028_v41  ;;  %v13030_v31 = vld [vmem:[#allocation27_spill] sm:$0xff]  ;;  %v13039_v40 = vld [vmem:[#allocation38_spill] sm:$0xff] }
 0x170   :  { %3157 = vmatprep.mubr.f32.mxu1 %v13021_v49  ;;  %6097 = vmatprep.subr.bf16.mxu0 %v6096_v38  ;;  %v6486_v17 = vpack.c.bf16 %v13031_v18, %v13030_v31  ;;  %v6488_v38 = vpack.c.bf16 %v13035_v27, %v13034_v43  ;;  %v13041_v41 = vld [vmem:[#allocation43_spill] sm:$0xff]  ;;  %v13042_v18 = vld [vmem:[#allocation44_spill] sm:$0xff]  ;;  %v13043_v31 = vld [vmem:[#allocation45_spill] sm:$0xff] }
 0x171   :  { %6481 = vmatprep.subr.bf16.mxu1 %v6480_v4  ;;  %v13036_v4 = vld [vmem:[#allocation33_spill] sm:$0xff]  ;;  %v6492_v29 = vpack.c.bf16 %v13043_v31, %v13042_v18 }
 0x172   :  { %6099 = vmatpush1.bf16.msra.mxu0 %v6098_v44  ;;  %v6106_v28 = vpack.c.bf16 %v13037_v62, %v13036_v4  ;;  %v13038_v44 = vld [vmem:[#allocation36_spill] sm:$0xff]  ;;  %v13047_v62 = vld [vmem:[#allocation51_spill] sm:$0xff]  ;;  %v13049_v4 = vld [vmem:[#allocation54_spill] sm:$0xff] }
 0x173   :  { %6483 = vmatpush1.bf16.msra.mxu1 %v6482_v7  ;;  %6101 = vmatprep.subr.bf16.mxu0 %v6100_v20  ;;  %v6490_v7 = vpack.c.bf16 %v13039_v40, %v13038_v44  ;;  %v13040_v20 = vld [vmem:[#allocation39_spill] sm:$0xff]  ;;  %v13051_v44 = vld [vmem:[#allocation57_spill] sm:$0xff] }
 0x174   :  { %6485 = vmatprep.subr.bf16.mxu1 %v6484_v57  ;;  %v6108_v34 = vpack.c.bf16 %v13041_v41, %v13040_v20  ;;  %v13044_v57 = vld [vmem:[#allocation47_spill] sm:$0xff]  ;;  %v13053_v20 = vld [vmem:[#allocation60_spill] sm:$0xff] }
 0x175   :  { %v6110_v27 = vpack.c.bf16 %v13045_v63, %v13044_v57  ;;  %v13050_v40 = vld [vmem:[#allocation55_spill] sm:$0xff]  ;;  %v13055_v63 = vld [vmem:[#allocation64_spill] sm:$0xff] }
 0x176   :  { %6103 = vmatpush1.bf16.msra.mxu0 %v6102_v47  ;;  %v13046_v47 = vld [vmem:[#allocation50_spill] sm:$0xff]  ;;  %v6496_v41 = vpack.c.bf16 %v13051_v44, %v13050_v40  ;;  %v13057_v57 = vld [vmem:[#allocation68_spill] sm:$0xff] }
 0x177   :  { %6487 = vmatpush1.bf16.msra.mxu1 %v6486_v17  ;;  %6105 = vmatprep.subr.bf16.mxu0 %v6104_v11  ;;  %v6494_v17 = vpack.c.bf16 %v13047_v62, %v13046_v47  ;;  %v13048_v11 = vld [vmem:[#allocation52_spill] sm:$0xff]  ;;  %v13058_v62 = vld [vmem:[#allocation69_spill] sm:$0xff]  ;;  %v13059_v47 = vld [vmem:[#allocation70_spill] sm:$0xff] }
 0x178   :  { %6489 = vmatprep.subr.bf16.mxu1 %v6488_v38  ;;  %v6112_v43 = vpack.c.bf16 %v13049_v4, %v13048_v11  ;;  %v13052_v38 = vld [vmem:[#allocation58_spill] sm:$0xff]  ;;  %v6500_v4 = vpack.c.bf16 %v13059_v47, %v13058_v62 }
 0x179   :  { %v6114_v31 = vpack.c.bf16 %v13053_v20, %v13052_v38  ;;  %v13061_v11 = vld [vmem:[#allocation74_spill] sm:$0xff]  ;;  %v13063_v20 = vld [vmem:[#allocation76_spill] sm:$0xff] }
 0x17a   :  { %6107 = vmatpush1.bf16.msra.mxu0 %v6106_v28  ;;  %v13054_v28 = vld [vmem:[#allocation63_spill] sm:$0xff] }
 0x17b   :  { %6491 = vmatpush1.bf16.msra.mxu1 %v6490_v7  ;;  %6109 = vmatprep.subr.bf16.mxu0 %v6108_v34  ;;  %v6498_v7 = vpack.c.bf16 %v13055_v63, %v13054_v28  ;;  %v13056_v34 = vld [vmem:[#allocation65_spill] sm:$0xff] }
 0x17c   :  { %6493 = vmatprep.subr.bf16.mxu1 %v6492_v29  ;;  %v6116_v18 = vpack.c.bf16 %v13057_v57, %v13056_v34  ;;  %v13060_v29 = vld [vmem:[#allocation71_spill] sm:$0xff]  ;;  %v6504_v57 = vpack.c.bf16 %v12906_v53, %v12905_v39 }
 0x17d   :  { %v6118_v44 = vpack.c.bf16 %v13061_v11, %v13060_v29 }
 0x17e   :  { %6111 = vmatpush1.bf16.msra.mxu0 %v6110_v27  ;;  %v13062_v27 = vld [vmem:[#allocation75_spill] sm:$0xff] }
 0x17f   :  { %6495 = vmatpush1.bf16.msra.mxu1 %v6494_v17  ;;  %6113 = vmatprep.subr.bf16.mxu0 %v6112_v43  ;;  %v6502_v17 = vpack.c.bf16 %v13063_v20, %v13062_v27  ;;  %v13064_v43 = vld [vmem:[#allocation77_spill] sm:$0xff] }
 0x180   :  { %6497 = vmatprep.subr.bf16.mxu1 %v6496_v41  ;;  %v6120_v38 = vpack.c.bf16 %v12902_v5, %v13064_v43  ;;  %v6122_v41 = vpack.c.bf16 %v12918_v52, %v12909_v35 }
 0x182   :  { %6115 = vmatpush1.bf16.msra.mxu0 %v6114_v31  ;;  %v6506_v31 = vpack.c.bf16 %v12937_v26, %v12928_v56 }
 0x183   :  { %6499 = vmatpush1.bf16.msra.mxu1 %v6498_v7  ;;  %6117 = vmatprep.subr.bf16.mxu0 %v6116_v18  ;;  %v6124_v18 = vpack.c.bf16 %v12945_v48, %v12944_v30  ;;  %v6508_v7 = vpack.c.bf16 %v12949_v33, %v12948_v0 }
 0x184   :  { %6501 = vmatprep.subr.bf16.mxu1 %v6500_v4  ;;  %v6126_v4 = vpack.c.bf16 %v12960_v22, %v12959_v23 }
 0x186   :  { %6119 = vmatpush1.bf16.msra.mxu0 %v6118_v44  ;;  %v6510_v44 = vpack.c.bf16 %v12964_v55, %v12961_v45 }
 0x187   :  { %6503 = vmatpush1.bf16.msra.mxu1 %v6502_v17  ;;  %6121 = vmatprep.subr.bf16.mxu0 %v6120_v38  ;;  %v6128_v38 = vpack.c.bf16 %v12967_v32, %v12965_v60  ;;  %v6512_v17 = vpack.c.bf16 %v12969_v24, %v12968_v1 }
 0x188   :  { %6505 = vmatprep.subr.bf16.mxu1 %v6504_v57  ;;  %v6130_v57 = vpack.c.bf16 %v12975_v25, %v12974_v59 }
 0x18a   :  { %6123 = vmatpush1.bf16.msra.mxu0 %v6122_v41  ;;  %v13065_v41 = vpack.c.bf16 %v8095_v42, %v8090_v10 }
 0x18b   :  { %6507 = vmatpush1.bf16.msra.mxu1 %v6506_v31  ;;  %6125 = vmatprep.subr.bf16.mxu0 %v6124_v18  ;;  %v13066_v31 = vpack.c.bf16 %v12812_v21, %v8135_v19  ;;  %v13067_v18 = vpack.c.bf16 %v12814_v8, %v12813_v6  ;;  %v13077_v19 = vld [vmem:[#allocation126_spill] sm:$0xff]  ;;  %v13080_v6 = vld [vmem:[#allocation129_spill] sm:$0xff] }
 0x18c   :  { %6509 = vmatprep.subr.bf16.mxu1 %v6508_v7  ;;  %v13068_v7 = vpack.c.bf16 %v12818_v46, %v12816_v9  ;;  %v13083_v9 = vld [vmem:[#allocation160_spill] sm:$0xff] }
 0x18e   :  { %6127 = vmatpush1.bf16.msra.mxu0 %v6126_v4  ;;  %v13069_v4 = vpack.c.bf16 %v12820_v37, %v12819_v51  ;;  %v13086_v51 = vld [vmem:[#allocation162_spill] sm:$0xff] }
 0x18f   :  { %6511 = vmatpush1.bf16.msra.mxu1 %v6510_v44  ;;  %6129 = vmatprep.subr.bf16.mxu0 %v6128_v38  ;;  %v13070_v44 = vld [vmem:[#allocation124_spill] sm:$0xff]  ;;  %v13071_v38 = vld [vmem:[#allocation123_spill] sm:$0xff] }
 0x190   :  { %6513 = vmatprep.subr.bf16.mxu1 %v6512_v17  ;;  %v13072_v17 = vpack.c.bf16 %v13070_v44, %v13071_v38  ;;  %v13089_v38 = vld [vmem:[#allocation164_spill] sm:$0xff] }
 0x192   :  { %6131 = vmatpush1.bf16.msra.mxu0 %v6130_v57  ;;  %v13073_v57 = vld [vmem:[#allocation42_spill] sm:$0xff] }
 0x193   :  { %6515 = vmatpush1.bf16.msra.mxu1 %v13065_v41  ;;  %6133 = vmatprep.subr.bf16.mxu0 %v13066_v31  ;;  %v13074_v41 = vld [vmem:[#allocation125_spill] sm:$0xff]  ;;  %v13076_v31 = vld [vmem:[#allocation128_spill] sm:$0xff] }
 0x194   :  { %6517 = vmatprep.subr.bf16.mxu1 %v13067_v18  ;;  %v13075_v21 = vpack.c.bf16 %v13073_v57, %v13074_v41  ;;  %v13078_v8 = vpack.c.bf16 %v13076_v31, %v13077_v19  ;;  %v13079_v18 = vld [vmem:[#allocation130_spill] sm:$0xff]  ;;  %v13095_v19 = vld [vmem:[#allocation168_spill] sm:$0xff] }
 0x195   :  { %v13081_v46 = vpack.c.bf16 %v13079_v18, %v13080_v6  ;;  %v13092_v41 = vld [vmem:[#allocation166_spill] sm:$0xff] }
 0x196   :  { %6135 = vmatpush1.bf16.msra.mxu0 %v13068_v7  ;;  %v13082_v7 = vld [vmem:[#allocation161_spill] sm:$0xff]  ;;  %v13098_v6 = vld [vmem:[#allocation170_spill] sm:$0xff] }
 0x197   :  { %6519 = vmatpush1.bf16.msra.mxu1 %v13069_v4  ;;  %6137 = vmatprep.subr.bf16.mxu0 %v13072_v17  ;;  %v13084_v37 = vpack.c.bf16 %v13082_v7, %v13083_v9  ;;  %v13085_v4 = vld [vmem:[#allocation163_spill] sm:$0xff]  ;;  %v13088_v17 = vld [vmem:[#allocation165_spill] sm:$0xff]  ;;  %v13101_v9 = vld [vmem:[#allocation172_spill] sm:$0xff] }
 0x198   :  { %6521 = vmatprep.subr.bf16.mxu1 %v13075_v21  ;;  %v13087_v44 = vpack.c.bf16 %v13085_v4, %v13086_v51  ;;  %v13090_v57 = vpack.c.bf16 %v13088_v17, %v13089_v38  ;;  %v13091_v21 = vld [vmem:[#allocation167_spill] sm:$0xff]  ;;  %v13104_v51 = vld [vmem:[#allocation174_spill] sm:$0xff]  ;;  %v13107_v38 = vld [vmem:[#allocation176_spill] sm:$0xff] }
 0x199   :  { %v13093_v31 = vpack.c.bf16 %v13091_v21, %v13092_v41  ;;  %v13110_v41 = vld [vmem:[#allocation178_spill] sm:$0xff] }
 0x19a   :  { %6139 = vmatpush1.bf16.msra.mxu0 %v13078_v8  ;;  %v13094_v8 = vld [vmem:[#allocation169_spill] sm:$0xff] }
 0x19b   :  { %6523 = vmatpush1.bf16.msra.mxu1 %v13081_v46  ;;  %6141 = vmatprep.subr.bf16.mxu0 %v13084_v37  ;;  %v13096_v18 = vpack.c.bf16 %v13094_v8, %v13095_v19  ;;  %v13097_v46 = vld [vmem:[#allocation171_spill] sm:$0xff]  ;;  %v13100_v37 = vld [vmem:[#allocation173_spill] sm:$0xff]  ;;  %v13113_v19 = vld [vmem:[#allocation180_spill] sm:$0xff] }
 0x19c   :  { %6525 = vmatprep.subr.bf16.mxu1 %v13087_v44  ;;  %v13099_v7 = vpack.c.bf16 %v13097_v46, %v13098_v6  ;;  %v13102_v4 = vpack.c.bf16 %v13100_v37, %v13101_v9  ;;  %v13103_v44 = vld [vmem:[#allocation175_spill] sm:$0xff]  ;;  %v13116_v6 = vld [vmem:[#allocation182_spill] sm:$0xff]  ;;  %v13119_v9 = vld [vmem:[#allocation184_spill] sm:$0xff] }
 0x19d   :  { %v13105_v17 = vpack.c.bf16 %v13103_v44, %v13104_v51  ;;  %v13122_v51 = vld [vmem:[#allocation187_spill] sm:$0xff] }
 0x19e   :  { %6143 = vmatpush1.bf16.msra.mxu0 %v13090_v57  ;;  %v13106_v57 = vld [vmem:[#allocation177_spill] sm:$0xff] }
 0x19f   :  { %6527 = vmatpush1.bf16.msra.mxu1 %v13093_v31  ;;  %6145 = vmatprep.subr.bf16.mxu0 %v13096_v18  ;;  %v13108_v21 = vpack.c.bf16 %v13106_v57, %v13107_v38  ;;  %v13109_v31 = vld [vmem:[#allocation179_spill] sm:$0xff]  ;;  %v13112_v18 = vld [vmem:[#allocation181_spill] sm:$0xff]  ;;  %v13125_v38 = vld [vmem:[#allocation190_spill] sm:$0xff] }
 0x1a0   :  { %6529 = vmatprep.subr.bf16.mxu1 %v13099_v7  ;;  %v13111_v8 = vpack.c.bf16 %v13109_v31, %v13110_v41  ;;  %v13114_v46 = vpack.c.bf16 %v13112_v18, %v13113_v19  ;;  %v13115_v7 = vld [vmem:[#allocation183_spill] sm:$0xff]  ;;  %v13128_v41 = vld [vmem:[#allocation193_spill] sm:$0xff] }
 0x1a1   :  { %v13117_v37 = vpack.c.bf16 %v13115_v7, %v13116_v6  ;;  %v13131_v7 = vld [vmem:[#allocation73_spill] sm:$0xff] }
 0x1a2   :  { %6147 = vmatpush1.bf16.msra.mxu0 %v13102_v4  ;;  %v13118_v4 = vld [vmem:[#allocation185_spill] sm:$0xff] }
 0x1a3   :  { %6531 = vmatpush1.bf16.msra.mxu1 %v13105_v17  ;;  %6149 = vmatprep.subr.bf16.mxu0 %v13108_v21  ;;  %v13120_v44 = vpack.c.bf16 %v13118_v4, %v13119_v9  ;;  %v13121_v17 = vld [vmem:[#allocation188_spill] sm:$0xff]  ;;  %v13124_v21 = vld [vmem:[#allocation191_spill] sm:$0xff] }
 0x1a4   :  { %6533 = vmatprep.subr.bf16.mxu1 %v13111_v8  ;;  %v13123_v57 = vpack.c.bf16 %v13121_v17, %v13122_v51  ;;  %v13126_v31 = vpack.c.bf16 %v13124_v21, %v13125_v38  ;;  %v13127_v8 = vld [vmem:[#allocation194_spill] sm:$0xff]  ;;  %v13133_v4 = vld [vmem:[#allocation244_spill] sm:$0xff]  ;;  %v13136_v17 = vld [vmem:[#allocation79_spill] sm:$0xff] }
 0x1a5   :  { %v13129_v18 = vpack.c.bf16 %v13127_v8, %v13128_v41  ;;  %v13138_v8 = vld [vmem:[#allocation80_spill] sm:$0xff]  ;;  %v13142_v41 = vld [vmem:[#allocation97_spill] sm:$0xff]  ;;  %v13143_v21 = vld [vmem:[#allocation98_spill] sm:$0xff] }
 0x1a6   :  { %6151 = vmatpush1.bf16.msra.mxu0 %v13114_v46  ;;  %v13130_v46 = vld [vmem:[#allocation72_spill] sm:$0xff] }
 0x1a7   :  { %6535 = vmatpush1.bf16.msra.mxu1 %v13117_v37  ;;  %6153 = vmatprep.subr.bf16.mxu0 %v13120_v44  ;;  %v13132_v37 = vld [vmem:[#allocation243_spill] sm:$0xff]  ;;  %v13134_v44 = vld [vmem:[#allocation78_spill] sm:$0xff] }
 0x1a8   :  { %6537 = vmatprep.subr.bf16.mxu1 %v13123_v57  ;;  %v13135_v57 = vand.u32 4294901760, %v13018_v61  ;;  %v13145_v61 = vld [vmem:[#allocation106_spill] sm:$0xff] }
 0x1aa   :  { %6155 = vmatpush1.bf16.msra.mxu0 %v13126_v31  ;;  %v13137_v31 = vand.u32 4294901760, %v13021_v49  ;;  %v13147_v49 = vld [vmem:[#allocation110_spill] sm:$0xff] }
 0x1ab   :  { %6539 = vmatpush1.bf16.msra.mxu1 %v13129_v18  ;;  %6157 = vmatprep.subr.bf16.mxu0 %v13130_v46  ;;  %v13139_v18 = vld [vmem:[#allocation85_spill] sm:$0xff]  ;;  %v13140_v46 = vld [vmem:[#allocation91_spill] sm:$0xff] }
 0x1ac   :  { %6541 = vmatprep.subr.bf16.mxu1 %v13131_v7  ;;  %v13141_v7 = vld [vmem:[#allocation93_spill] sm:$0xff] }
 0x1ad   :  { %1801 = vmatmul.mubr.f32.vlgmr.msra.gmra.mrb[2].mxu0 %v13132_v37 }
 0x1ae   :  { %3160 = vmatmul.mubr.f32.vlgmr.msra.gmra.mrb[2].mxu1 %v13133_v4  ;;  %6159 = vmatpush1.bf16.msra.mxu0 %v13134_v44  ;;  %v13144_v44 = vld [vmem:[#allocation103_spill] sm:$0xff] }
 0x1af   :  { %1938 = vmatprep.mubr.f32.mxu0 %v13135_v57  ;;  %6543 = vmatpush1.bf16.msra.mxu1 %v13136_v17  ;;  %v13146_v57 = vld [vmem:[#allocation107_spill] sm:$0xff]  ;;  %v13200_v17 = vld [vmem:[#allocation189_spill] sm:$0xff] }
 0x1b0   :  { %3297 = vmatprep.mubr.f32.mxu1 %v13137_v31  ;;  %6161 = vmatprep.subr.bf16.mxu0 %v13138_v8  ;;  %v13148_v31 = vld [vmem:[#allocation112_spill] sm:$0xff]  ;;  %v13149_v8 = vld [vmem:[#allocation113_spill] sm:$0xff] }
 0x1b1   :  { %6545 = vmatprep.subr.bf16.mxu1 %v13139_v18  ;;  %v13150_v18 = vld [vmem:[#allocation114_spill] sm:$0xff] }
 0x1b2   :  { %6163 = vmatpush1.bf16.msra.mxu0 %v13140_v46  ;;  %v13151_v46 = vld [vmem:[#allocation34_spill] sm:$0xff] }
 0x1b3   :  { %6547 = vmatpush1.bf16.msra.mxu1 %v13141_v7  ;;  %6165 = vmatprep.subr.bf16.mxu0 %v13142_v41  ;;  %v13152_v7 = vld [vmem:[#allocation37_spill] sm:$0xff]  ;;  %v13153_v41 = vld [vmem:[#allocation40_spill] sm:$0xff] }
 0x1b4   :  { %6549 = vmatprep.subr.bf16.mxu1 %v13143_v21  ;;  %v13154_v21 = vld [vmem:[#allocation41_spill] sm:$0xff] }
 0x1b6   :  { %6167 = vmatpush1.bf16.msra.mxu0 %v13144_v44  ;;  %v13155_v44 = vld [vmem:[#allocation127_spill] sm:$0xff] }
 0x1b7   :  { %6551 = vmatpush1.bf16.msra.mxu1 %v13145_v61  ;;  %6169 = vmatprep.subr.bf16.mxu0 %v13146_v57  ;;  %v13156_v61 = vld [vmem:[#allocation46_spill] sm:$0xff]  ;;  %v13157_v57 = vld [vmem:[#allocation49_spill] sm:$0xff] }
 0x1b8   :  { %6553 = vmatprep.subr.bf16.mxu1 %v13147_v49  ;;  %v13158_v49 = vld [vmem:[#allocation53_spill] sm:$0xff] }
 0x1ba   :  { %6171 = vmatpush1.bf16.msra.mxu0 %v13148_v31  ;;  %v13159_v31 = vld [vmem:[#allocation56_spill] sm:$0xff] }
 0x1bb   :  { %6555 = vmatpush1.bf16.msra.mxu1 %v13149_v8  ;;  %6173 = vmatprep.subr.bf16.mxu0 %v13150_v18  ;;  %v13160_v8 = vld [vmem:[#allocation59_spill] sm:$0xff]  ;;  %v13161_v18 = vld [vmem:[#allocation61_spill] sm:$0xff] }
 0x1bc   :  { %6557 = vmatprep.subr.bf16.mxu1 %v13151_v46  ;;  %v13162_v46 = vld [vmem:[#allocation62_spill] sm:$0xff] }
 0x1be   :  { %6175 = vmatpush1.bf16.msra.mxu0 %v13152_v7  ;;  %v13163_v7 = vld [vmem:[#allocation66_spill] sm:$0xff] }
 0x1bf   :  { %6559 = vmatpush1.bf16.msra.mxu1 %v13153_v41  ;;  %6177 = vmatprep.subr.bf16.mxu0 %v13154_v21  ;;  %v13164_v41 = vld [vmem:[#allocation67_spill] sm:$0xff] }
 0x1c0   :  { %6561 = vmatprep.subr.bf16.mxu1 %v13155_v44  ;;  %v13165_v21 = vld [vmem:[#allocation131_spill] sm:$0xff]  ;;  %v13166_v44 = vld [vmem:[#allocation132_spill] sm:$0xff] }
 0x1c2   :  { %6179 = vmatpush1.bf16.msra.mxu0 %v13156_v61  ;;  %v13167_v61 = vld [vmem:[#allocation133_spill] sm:$0xff] }
 0x1c3   :  { %6563 = vmatpush1.bf16.msra.mxu1 %v13157_v57  ;;  %6181 = vmatprep.subr.bf16.mxu0 %v13158_v49  ;;  %v13168_v57 = vld [vmem:[#allocation84_spill] sm:$0xff]  ;;  %v13169_v49 = vld [vmem:[#allocation134_spill] sm:$0xff] }
 0x1c4   :  { %6565 = vmatprep.subr.bf16.mxu1 %v13159_v31  ;;  %v13170_v31 = vld [vmem:[#allocation135_spill] sm:$0xff] }
 0x1c6   :  { %6183 = vmatpush1.bf16.msra.mxu0 %v13160_v8  ;;  %v13171_v8 = vld [vmem:[#allocation136_spill] sm:$0xff] }
 0x1c7   :  { %6567 = vmatpush1.bf16.msra.mxu1 %v13161_v18  ;;  %6185 = vmatprep.subr.bf16.mxu0 %v13162_v46  ;;  %v13172_v18 = vld [vmem:[#allocation137_spill] sm:$0xff]  ;;  %v13173_v46 = vld [vmem:[#allocation138_spill] sm:$0xff] }
 0x1c8   :  { %6569 = vmatprep.subr.bf16.mxu1 %v13163_v7  ;;  %v13174_v7 = vld [vmem:[#allocation139_spill] sm:$0xff] }
 0x1ca   :  { %6187 = vmatpush1.bf16.msra.mxu0 %v13164_v41  ;;  %v13175_v41 = vld [vmem:[#allocation140_spill] sm:$0xff] }
 0x1cb   :  { %6571 = vmatpush1.bf16.msra.mxu1 %v13165_v21  ;;  %6189 = vmatprep.subr.bf16.mxu0 %v13166_v44  ;;  %v13176_v21 = vld [vmem:[#allocation141_spill] sm:$0xff]  ;;  %v13177_v44 = vld [vmem:[#allocation142_spill] sm:$0xff] }
 0x1cc   :  { %6573 = vmatprep.subr.bf16.mxu1 %v13167_v61  ;;  %v13178_v61 = vld [vmem:[#allocation143_spill] sm:$0xff] }
 0x1ce   :  { %6191 = vmatpush1.bf16.msra.mxu0 %v13168_v57  ;;  %v13179_v57 = vld [vmem:[#allocation144_spill] sm:$0xff] }
 0x1cf   :  { %6575 = vmatpush1.bf16.msra.mxu1 %v13169_v49  ;;  %6193 = vmatprep.subr.bf16.mxu0 %v13170_v31  ;;  %v13180_v49 = vld [vmem:[#allocation145_spill] sm:$0xff]  ;;  %v13181_v31 = vld [vmem:[#allocation146_spill] sm:$0xff] }
 0x1d0   :  { %6577 = vmatprep.subr.bf16.mxu1 %v13171_v8  ;;  %v13182_v8 = vld [vmem:[#allocation147_spill] sm:$0xff] }
 0x1d2   :  { %6195 = vmatpush1.bf16.msra.mxu0 %v13172_v18  ;;  %v13183_v18 = vld [vmem:[#allocation148_spill] sm:$0xff] }
 0x1d3   :  { %6579 = vmatpush1.bf16.msra.mxu1 %v13173_v46  ;;  %6197 = vmatprep.subr.bf16.mxu0 %v13174_v7  ;;  %v13184_v46 = vld [vmem:[#allocation149_spill] sm:$0xff]  ;;  %v13185_v7 = vld [vmem:[#allocation150_spill] sm:$0xff] }
 0x1d4   :  { %6581 = vmatprep.subr.bf16.mxu1 %v13175_v41  ;;  %v13186_v41 = vld [vmem:[#allocation151_spill] sm:$0xff] }
 0x1d6   :  { %6199 = vmatpush1.bf16.msra.mxu0 %v13176_v21  ;;  %v13187_v21 = vld [vmem:[#allocation152_spill] sm:$0xff] }
 0x1d7   :  { %6583 = vmatpush1.bf16.msra.mxu1 %v13177_v44  ;;  %6201 = vmatprep.subr.bf16.mxu0 %v13178_v61  ;;  %v13188_v44 = vld [vmem:[#allocation153_spill] sm:$0xff]  ;;  %v13189_v61 = vld [vmem:[#allocation154_spill] sm:$0xff] }
 0x1d8   :  { %6585 = vmatprep.subr.bf16.mxu1 %v13179_v57  ;;  %v13190_v57 = vld [vmem:[#allocation155_spill] sm:$0xff] }
 0x1da   :  { %6203 = vmatpush1.bf16.msra.mxu0 %v13180_v49  ;;  %v13191_v49 = vld [vmem:[#allocation156_spill] sm:$0xff] }
 0x1db   :  { %6587 = vmatpush1.bf16.msra.mxu1 %v13181_v31  ;;  %6205 = vmatprep.subr.bf16.mxu0 %v13182_v8  ;;  %v13192_v31 = vld [vmem:[#allocation157_spill] sm:$0xff]  ;;  %v13193_v8 = vld [vmem:[#allocation158_spill] sm:$0xff] }
 0x1dc   :  { %6589 = vmatprep.subr.bf16.mxu1 %v13183_v18  ;;  %v13194_v18 = vld [vmem:[#allocation159_spill] sm:$0xff] }
 0x1de   :  { %6207 = vmatpush1.bf16.msra.mxu0 %v13184_v46 }
 0x1df   :  { %6591 = vmatpush1.bf16.msra.mxu1 %v13185_v7  ;;  %6209 = vmatprep.subr.bf16.mxu0 %v13186_v41  ;;  %v13195_v7 = vand.u32 4294901760, %v13002_v58  ;;  %v13196_v41 = vand.u32 4294901760, %v13003_v2  ;;  %v13204_v58 = vand.u32 4294901760, %v13010_v50  ;;  %v13205_v2 = vand.u32 4294901760, %v13011_v36  ;;  %v13213_v50 = vld [vmem:[#allocation17_spill] sm:$0xff] }
 0x1e0   :  { %6593 = vmatprep.subr.bf16.mxu1 %v13187_v21  ;;  %v13197_v21 = vld [vmem:[#allocation186_spill] sm:$0xff]  ;;  %v13214_v36 = vand.u32 4294901760, %v13213_v50  ;;  %v13229_v50 = vld [vmem:[#allocation24_spill] sm:$0xff] }
 0x1e1   :  { %v6220_v46 = vpack.c.bf16 %v13196_v41, %v13195_v7  ;;  %v6606_v41 = vpack.c.bf16 %v13205_v2, %v13204_v58  ;;  %v13217_v58 = vld [vmem:[#allocation241_spill] sm:$0xff]  ;;  %v13220_v2 = vld [vmem:[#allocation20_spill] sm:$0xff] }
 0x1e2   :  { %6211 = vmatpush1.bf16.msra.mxu0 %v13188_v44  ;;  %v13198_v44 = vand.u32 4294901760, %v13004_v12  ;;  %v13206_v12 = vand.u32 4294901760, %v13012_v13 }
 0x1e3   :  { %6595 = vmatpush1.bf16.msra.mxu1 %v13189_v61  ;;  %6213 = vmatprep.subr.bf16.mxu0 %v13190_v57  ;;  %v13199_v61 = vand.u32 4294901760, %v13005_v54  ;;  %v13207_v54 = vand.u32 4294901760, %v13013_v16  ;;  %v13218_v16 = vld [vmem:[#allocation19_spill] sm:$0xff] }
 0x1e4   :  { %6597 = vmatprep.subr.bf16.mxu1 %v13191_v49 }
 0x1e5   :  { %v6604_v57 = vpack.c.bf16 %v13199_v61, %v13198_v44  ;;  %v6224_v7 = vpack.c.bf16 %v13207_v54, %v13206_v12  ;;  %v13208_v44 = vand.u32 4294901760, %v13132_v37  ;;  %v13219_v37 = vand.u32 4294901760, %v13218_v16  ;;  %v13222_v54 = vld [vmem:[#allocation21_spill] sm:$0xff]  ;;  %v13233_v16 = vld [vmem:[#allocation26_spill] sm:$0xff] }
 0x1e6   :  { %6215 = vmatpush1.bf16.msra.mxu0 %v13192_v31  ;;  %v13201_v31 = vand.u32 4294901760, %v13008_v3  ;;  %v13209_v3 = vand.u32 4294901760, %v13014_v15  ;;  %v13221_v12 = vand.u32 4294901760, %v13220_v2  ;;  %v13234_v2 = vand.u32 4294901760, %v13233_v16 }
 0x1e7   :  { %6599 = vmatpush1.bf16.msra.mxu1 %v13193_v8  ;;  %6217 = vmatprep.subr.bf16.mxu0 %v13194_v18  ;;  %v13202_v8 = vand.u32 4294901760, %v13009_v14  ;;  %v13203_v18 = vld [vmem:[#allocation192_spill] sm:$0xff] }
 0x1e8   :  { %6601 = vmatprep.subr.bf16.mxu1 %v13197_v21  ;;  %v13210_v14 = vld [vmem:[#allocation16_spill] sm:$0xff]  ;;  %v6610_v15 = vpack.c.bf16 %v13221_v12, %v13219_v37  ;;  %v13235_v12 = vld [vmem:[#allocation27_spill] sm:$0xff] }
 0x1e9   :  { %v6222_v49 = vpack.c.bf16 %v13202_v8, %v13201_v31  ;;  %v13211_v8 = vand.u32 4294901760, %v13210_v14 }
 0x1ea   :  { %6219 = vmatpush1.bf16.msra.mxu0 %v13200_v17 }
 0x1eb   :  { %6603 = vmatpush1.bf16.msra.mxu1 %v13203_v18  ;;  %6221 = vmatprep.subr.bf16.mxu0 %v6220_v46  ;;  %v6608_v61 = vpack.c.bf16 %v13211_v8, %v13209_v3  ;;  %v13212_v46 = vand.u32 4294901760, %v13133_v4  ;;  %v13224_v3 = vld [vmem:[#allocation22_spill] sm:$0xff] }
 0x1ec   :  { %6605 = vmatprep.subr.bf16.mxu1 %v6604_v57  ;;  %v13215_v57 = vld [vmem:[#allocation18_spill] sm:$0xff]  ;;  %v13225_v14 = vand.u32 4294901760, %v13224_v3 }
 0x1ed   :  { %1942 = vmatmul.mubr.f32.vlgmr.msra.gmra.mrb[2].mxu0 %v13208_v44  ;;  %v13216_v31 = vand.u32 4294901760, %v13215_v57  ;;  %v13223_v44 = vand.u32 4294901760, %v13222_v54  ;;  %v13226_v8 = vld [vmem:[#allocation242_spill] sm:$0xff]  ;;  %v13236_v54 = vand.u32 4294901760, %v13235_v12  ;;  %v13251_v12 = vld [vmem:[#allocation36_spill] sm:$0xff] }
 0x1ee   :  { %3301 = vmatmul.mubr.f32.vlgmr.msra.gmra.mrb[2].mxu1 %v13212_v46  ;;  %6223 = vmatpush1.bf16.msra.mxu0 %v6222_v49  ;;  %v13227_v49 = vld [vmem:[#allocation23_spill] sm:$0xff] }
 0x1ef   :  { %v6226_v13 = vpack.c.bf16 %v13216_v31, %v13214_v36  ;;  %2205 = vmatprep.mubr.f32.mxu0 %v13217_v58  ;;  %6607 = vmatpush1.bf16.msra.mxu1 %v6606_v41  ;;  %v6228_v4 = vpack.c.bf16 %v13225_v14, %v13223_v44  ;;  %v13228_v46 = vand.u32 4294901760, %v13227_v49  ;;  %v13230_v36 = vand.u32 4294901760, %v13229_v50  ;;  %v13231_v41 = vld [vmem:[#allocation25_spill] sm:$0xff]  ;;  %v13237_v44 = vld [vmem:[#allocation28_spill] sm:$0xff]  ;;  %v13241_v49 = vld [vmem:[#allocation30_spill] sm:$0xff] }
 0x1f0   :  { %3564 = vmatprep.mubr.f32.mxu1 %v13226_v8  ;;  %6225 = vmatprep.subr.bf16.mxu0 %v6224_v7  ;;  %v13232_v31 = vand.u32 4294901760, %v13231_v41  ;;  %v13238_v3 = vand.u32 4294901760, %v13237_v44  ;;  %v13239_v7 = vld [vmem:[#allocation29_spill] sm:$0xff]  ;;  %v13242_v17 = vand.u32 4294901760, %v13241_v49  ;;  %v13253_v44 = vld [vmem:[#allocation38_spill] sm:$0xff] }
 0x1f1   :  { %v6612_v57 = vpack.c.bf16 %v13230_v36, %v13228_v46  ;;  %6609 = vmatprep.subr.bf16.mxu1 %v6608_v61  ;;  %v13240_v18 = vand.u32 4294901760, %v13239_v7  ;;  %v13243_v61 = vld [vmem:[#allocation31_spill] sm:$0xff]  ;;  %v13245_v46 = vld [vmem:[#allocation32_spill] sm:$0xff] }
 0x1f2   :  { %6227 = vmatpush1.bf16.msra.mxu0 %v6226_v13  ;;  %v6230_v37 = vpack.c.bf16 %v13234_v2, %v13232_v31  ;;  %v6614_v14 = vpack.c.bf16 %v13238_v3, %v13236_v54  ;;  %v13244_v13 = vand.u32 4294901760, %v13243_v61  ;;  %v13246_v36 = vand.u32 4294901760, %v13245_v46  ;;  %v13247_v31 = vld [vmem:[#allocation33_spill] sm:$0xff] }
 0x1f3   :  { %6611 = vmatpush1.bf16.msra.mxu1 %v6610_v15  ;;  %6229 = vmatprep.subr.bf16.mxu0 %v6228_v4  ;;  %v6232_v50 = vpack.c.bf16 %v13242_v17, %v13240_v18  ;;  %v13248_v15 = vand.u32 4294901760, %v13247_v31  ;;  %v13249_v4 = vld [vmem:[#allocation35_spill] sm:$0xff]  ;;  %v13252_v54 = vand.u32 4294901760, %v13251_v12  ;;  %v13254_v3 = vand.u32 4294901760, %v13253_v44  ;;  %v13261_v46 = vld [vmem:[#allocation45_spill] sm:$0xff]  ;;  %v13267_v12 = vld [vmem:[#allocation50_spill] sm:$0xff] }
 0x1f4   :  { %6613 = vmatprep.subr.bf16.mxu1 %v6612_v57  ;;  %v6616_v41 = vpack.c.bf16 %v13246_v36, %v13244_v13  ;;  %v13250_v16 = vand.u32 4294901760, %v13249_v4  ;;  %v13255_v17 = vld [vmem:[#allocation39_spill] sm:$0xff]  ;;  %v13259_v13 = vld [vmem:[#allocation44_spill] sm:$0xff]  ;;  %v13262_v36 = vand.u32 4294901760, %v13261_v46 }
 0x1f5   :  { %v6618_v7 = vpack.c.bf16 %v13254_v3, %v13252_v54  ;;  %v13256_v18 = vand.u32 4294901760, %v13255_v17  ;;  %v13257_v57 = vld [vmem:[#allocation43_spill] sm:$0xff]  ;;  %v13268_v54 = vand.u32 4294901760, %v13267_v12  ;;  %v13283_v12 = vand.u32 4294901760, %v13055_v63 }
 0x1f6   :  { %6231 = vmatpush1.bf16.msra.mxu0 %v6230_v37  ;;  %v6234_v2 = vpack.c.bf16 %v13250_v16, %v13248_v15  ;;  %v13258_v49 = vand.u32 4294901760, %v13257_v57  ;;  %v13260_v37 = vand.u32 4294901760, %v13259_v13  ;;  %v13263_v15 = vld [vmem:[#allocation47_spill] sm:$0xff]  ;;  %v13273_v57 = vld [vmem:[#allocation54_spill] sm:$0xff]  ;;  %v13291_v63 = vand.u32 4294901760, %v13062_v27 }
 0x1f7   :  { %6615 = vmatpush1.bf16.msra.mxu1 %v6614_v14  ;;  %6233 = vmatprep.subr.bf16.mxu0 %v6232_v50  ;;  %v13264_v14 = vand.u32 4294901760, %v13263_v15  ;;  %v13265_v50 = vld [vmem:[#allocation48_spill] sm:$0xff]  ;;  %v13269_v44 = vld [vmem:[#allocation51_spill] sm:$0xff]  ;;  %v13278_v15 = vld [vmem:[#allocation58_spill] sm:$0xff] }
 0x1f8   :  { %v6236_v61 = vpack.c.bf16 %v13258_v49, %v13256_v18  ;;  %6617 = vmatprep.subr.bf16.mxu1 %v6616_v41  ;;  %v6620_v31 = vpack.c.bf16 %v13262_v36, %v13260_v37  ;;  %v13266_v4 = vand.u32 4294901760, %v13265_v50  ;;  %v13270_v3 = vand.u32 4294901760, %v13269_v44  ;;  %v13271_v18 = vld [vmem:[#allocation52_spill] sm:$0xff]  ;;  %v13276_v37 = vld [vmem:[#allocation57_spill] sm:$0xff] }
 0x1f9   :  { %v13272_v41 = vand.u32 4294901760, %v13271_v18  ;;  %v13274_v49 = vand.u32 4294901760, %v13273_v57  ;;  %v13277_v46 = vand.u32 4294901760, %v13276_v37  ;;  %v13285_v44 = vld [vmem:[#allocation68_spill] sm:$0xff]  ;;  %v13288_v18 = vand.u32 4294901760, %v13059_v47 }
 0x1fa   :  { %6235 = vmatpush1.bf16.msra.mxu0 %v6234_v2  ;;  %v6238_v16 = vpack.c.bf16 %v13266_v4, %v13264_v14  ;;  %v6622_v17 = vpack.c.bf16 %v13270_v3, %v13268_v54  ;;  %v13275_v2 = vand.u32 4294901760, %v13050_v40  ;;  %v13282_v4 = vand.u32 4294901760, %v13054_v28 }
 0x1fb   :  { %6619 = vmatpush1.bf16.msra.mxu1 %v6618_v7  ;;  %6237 = vmatprep.subr.bf16.mxu0 %v6236_v61  ;;  %v6240_v13 = vpack.c.bf16 %v13274_v49, %v13272_v41  ;;  %v13279_v7 = vand.u32 4294901760, %v13278_v15  ;;  %v13280_v61 = vld [vmem:[#allocation60_spill] sm:$0xff]  ;;  %v13286_v40 = vand.u32 4294901760, %v13285_v44  ;;  %v13290_v57 = vand.u32 4294901760, %v13061_v11 }
 0x1fc   :  { %6621 = vmatprep.subr.bf16.mxu1 %v6620_v31  ;;  %v6624_v36 = vpack.c.bf16 %v13277_v46, %v13275_v2  ;;  %v13281_v14 = vand.u32 4294901760, %v13280_v61  ;;  %v6626_v54 = vpack.c.bf16 %v13283_v12, %v13282_v4  ;;  %v13284_v31 = vand.u32 4294901760, %v13056_v34  ;;  %v13319_v44 = vld [vmem:[#allocation116_spill] sm:$0xff] }
 0x1fd   :  { %v13292_v34 = vand.u32 4294901760, %v13063_v20  ;;  %v13295_v47 = vand.u32 4294901760, %v12905_v39  ;;  %v13297_v11 = vand.u32 4294901760, %v12909_v35  ;;  %v13298_v46 = vand.u32 4294901760, %v12918_v52 }
 0x1fe   :  { %6239 = vmatpush1.bf16.msra.mxu0 %v6238_v16  ;;  %v6242_v50 = vpack.c.bf16 %v13281_v14, %v13279_v7  ;;  %v6244_v3 = vpack.c.bf16 %v13286_v40, %v13284_v31  ;;  %v13287_v16 = vand.u32 4294901760, %v13058_v62  ;;  %v13294_v62 = vand.u32 4294901760, %v12902_v5 }
 0x1ff   :  { %6623 = vmatpush1.bf16.msra.mxu1 %v6622_v17  ;;  %6241 = vmatprep.subr.bf16.mxu0 %v6240_v13  ;;  %v13289_v17 = vand.u32 4294901760, %v13060_v29  ;;  %v6630_v49 = vpack.c.bf16 %v13292_v34, %v13291_v63  ;;  %v13293_v13 = vand.u32 4294901760, %v13064_v43  ;;  %v13296_v29 = vand.u32 4294901760, %v12906_v53  ;;  %v13331_v63 = vld [vmem:[#allocation122_spill] sm:$0xff] }
 0x200   :  { %6625 = vmatprep.subr.bf16.mxu1 %v6624_v36  ;;  %v6628_v41 = vpack.c.bf16 %v13288_v18, %v13287_v16  ;;  %v6250_v27 = vpack.c.bf16 %v13298_v46, %v13297_v11  ;;  %v13299_v20 = vand.u32 4294901760, %v12928_v56  ;;  %v13300_v43 = vand.u32 4294901760, %v12937_v26  ;;  %v13323_v16 = vld [vmem:[#allocation118_spill] sm:$0xff] }
 0x201   :  { %v6246_v28 = vpack.c.bf16 %v13290_v57, %v13289_v17  ;;  %v6248_v2 = vpack.c.bf16 %v13294_v62, %v13293_v13  ;;  %v6632_v37 = vpack.c.bf16 %v13296_v29, %v13295_v47  ;;  %v13301_v36 = vand.u32 4294901760, %v12944_v30  ;;  %v13327_v17 = vld [vmem:[#allocation120_spill] sm:$0xff]  ;;  %v13333_v13 = vld [vmem:[#allocation123_spill] sm:$0xff]  ;;  %v13339_v46 = vld [vmem:[#allocation42_spill] sm:$0xff] }
 0x202   :  { %6243 = vmatpush1.bf16.msra.mxu0 %v6242_v50  ;;  %v6634_v5 = vpack.c.bf16 %v13300_v43, %v13299_v20  ;;  %v13302_v39 = vand.u32 4294901760, %v12945_v48  ;;  %v13303_v53 = vand.u32 4294901760, %v12948_v0  ;;  %v13304_v35 = vand.u32 4294901760, %v12949_v33  ;;  %v13341_v43 = vld [vmem:[#allocation126_spill] sm:$0xff] }
 0x203   :  { %6627 = vmatpush1.bf16.msra.mxu1 %v6626_v54  ;;  %6245 = vmatprep.subr.bf16.mxu0 %v6244_v3  ;;  %v13305_v52 = vand.u32 4294901760, %v12959_v23  ;;  %v13306_v61 = vand.u32 4294901760, %v12960_v22  ;;  %v13307_v26 = vand.u32 4294901760, %v12961_v45  ;;  %v13308_v30 = vand.u32 4294901760, %v12964_v55  ;;  %v13317_v54 = vld [vmem:[#allocation115_spill] sm:$0xff] }
 0x204   :  { %6629 = vmatprep.subr.bf16.mxu1 %v6628_v41  ;;  %v6252_v15 = vpack.c.bf16 %v13302_v39, %v13301_v36  ;;  %v6636_v7 = vpack.c.bf16 %v13304_v35, %v13303_v53  ;;  %v13309_v14 = vand.u32 4294901760, %v12965_v60  ;;  %v13310_v0 = vand.u32 4294901760, %v12967_v32  ;;  %v13343_v36 = vld [vmem:[#allocation128_spill] sm:$0xff]  ;;  %v13345_v53 = vld [vmem:[#allocation129_spill] sm:$0xff] }
 0x205   :  { %v6254_v56 = vpack.c.bf16 %v13306_v61, %v13305_v52  ;;  %v6638_v48 = vpack.c.bf16 %v13308_v30, %v13307_v26  ;;  %v13311_v33 = vand.u32 4294901760, %v12968_v1  ;;  %v13312_v23 = vand.u32 4294901760, %v12969_v24  ;;  %v13321_v24 = vld [vmem:[#allocation117_spill] sm:$0xff] }
 0x206   :  { %6247 = vmatpush1.bf16.msra.mxu0 %v6246_v28  ;;  %v6256_v50 = vpack.c.bf16 %v13310_v0, %v13309_v14  ;;  %v13313_v22 = vand.u32 4294901760, %v12974_v59  ;;  %v13314_v12 = vand.u32 4294901760, %v12975_v25  ;;  %v13315_v55 = vand.u32 4294901760, %v8090_v10  ;;  %v13325_v25 = vld [vmem:[#allocation119_spill] sm:$0xff]  ;;  %v13351_v30 = vld [vmem:[#allocation161_spill] sm:$0xff]  ;;  %v13353_v0 = vld [vmem:[#allocation162_spill] sm:$0xff] }
 0x207   :  { %6631 = vmatpush1.bf16.msra.mxu1 %v6630_v49  ;;  %6249 = vmatprep.subr.bf16.mxu0 %v6248_v2  ;;  %v6640_v4 = vpack.c.bf16 %v13312_v23, %v13311_v33  ;;  %v13316_v60 = vand.u32 4294901760, %v8095_v42  ;;  %v13318_v31 = vand.u32 4294901760, %v13317_v54  ;;  %v13320_v1 = vand.u32 4294901760, %v13319_v44  ;;  %v13329_v42 = vld [vmem:[#allocation121_spill] sm:$0xff]  ;;  %v13335_v2 = vld [vmem:[#allocation124_spill] sm:$0xff]  ;;  %v13355_v33 = vld [vmem:[#allocation163_spill] sm:$0xff] }
 0x208   :  { %6633 = vmatprep.subr.bf16.mxu1 %v6632_v37  ;;  %v6258_v45 = vpack.c.bf16 %v13314_v12, %v13313_v22  ;;  %v13322_v3 = vand.u32 4294901760, %v13321_v24  ;;  %v13324_v59 = vand.u32 4294901760, %v13323_v16  ;;  %v13326_v41 = vand.u32 4294901760, %v13325_v25  ;;  %v13337_v37 = vld [vmem:[#allocation125_spill] sm:$0xff]  ;;  %v13357_v22 = vld [vmem:[#allocation164_spill] sm:$0xff] }
 0x209   :  { %v6642_v32 = vpack.c.bf16 %v13316_v60, %v13315_v55  ;;  %v6260_v40 = vpack.c.bf16 %v13320_v1, %v13318_v31  ;;  %v13328_v57 = vand.u32 4294901760, %v13327_v17  ;;  %v13330_v28 = vand.u32 4294901760, %v13329_v42  ;;  %v13363_v31 = vld [vmem:[#allocation167_spill] sm:$0xff] }
 0x20a   :  { %6251 = vmatpush1.bf16.msra.mxu0 %v6250_v27  ;;  %v6644_v18 = vpack.c.bf16 %v13324_v59, %v13322_v3  ;;  %v13332_v34 = vand.u32 4294901760, %v13331_v63  ;;  %v13334_v62 = vand.u32 4294901760, %v13333_v13  ;;  %v13336_v47 = vand.u32 4294901760, %v13335_v2  ;;  %v13367_v3 = vld [vmem:[#allocation169_spill] sm:$0xff] }
 0x20b   :  { %6635 = vmatpush1.bf16.msra.mxu1 %v6634_v5  ;;  %6253 = vmatprep.subr.bf16.mxu0 %v6252_v15  ;;  %v6262_v10 = vpack.c.bf16 %v13328_v57, %v13326_v41  ;;  %v13338_v11 = vand.u32 4294901760, %v13337_v37  ;;  %v13340_v27 = vand.u32 4294901760, %v13339_v46  ;;  %v13342_v5 = vand.u32 4294901760, %v13341_v43  ;;  %v13371_v41 = vld [vmem:[#allocation171_spill] sm:$0xff] }
 0x20c   :  { %6637 = vmatprep.subr.bf16.mxu1 %v6636_v7  ;;  %v6646_v49 = vpack.c.bf16 %v13332_v34, %v13330_v28  ;;  %v6264_v29 = vpack.c.bf16 %v13336_v47, %v13334_v62  ;;  %v13344_v39 = vand.u32 4294901760, %v13343_v36  ;;  %v13346_v35 = vand.u32 4294901760, %v13345_v53  ;;  %v13347_v7 = vld [vmem:[#allocation130_spill] sm:$0xff]  ;;  %v13375_v28 = vld [vmem:[#allocation173_spill] sm:$0xff]  ;;  %v13379_v62 = vld [vmem:[#allocation175_spill] sm:$0xff] }
 0x20d   :  { %v6648_v20 = vpack.c.bf16 %v13340_v27, %v13338_v11  ;;  %v13348_v52 = vand.u32 4294901760, %v13347_v7  ;;  %v13356_v23 = vand.u32 4294901760, %v13355_v33  ;;  %v13358_v12 = vand.u32 4294901760, %v13357_v22  ;;  %v13383_v11 = vld [vmem:[#allocation177_spill] sm:$0xff]  ;;  %v13399_v33 = vld [vmem:[#allocation188_spill] sm:$0xff]  ;;  %v13402_v22 = vld [vmem:[#allocation191_spill] sm:$0xff] }
 0x20e   :  { %6255 = vmatpush1.bf16.msra.mxu0 %v6254_v56  ;;  %v6266_v15 = vpack.c.bf16 %v13344_v39, %v13342_v5  ;;  %v13349_v56 = vld [vmem:[#allocation160_spill] sm:$0xff]  ;;  %v13364_v44 = vand.u32 4294901760, %v13363_v31  ;;  %v13368_v16 = vand.u32 4294901760, %v13367_v3  ;;  %v13372_v17 = vand.u32 4294901760, %v13371_v41  ;;  %v13387_v5 = vld [vmem:[#allocation179_spill] sm:$0xff]  ;;  %v13390_v53 = vld [vmem:[#allocation181_spill] sm:$0xff] }
 0x20f   :  { %6639 = vmatpush1.bf16.msra.mxu1 %v6638_v48  ;;  %6257 = vmatprep.subr.bf16.mxu0 %v6256_v50  ;;  %v6650_v61 = vpack.c.bf16 %v13348_v52, %v13346_v35  ;;  %v13350_v26 = vand.u32 4294901760, %v13349_v56  ;;  %v13352_v48 = vand.u32 4294901760, %v13351_v30  ;;  %v13354_v50 = vand.u32 4294901760, %v13353_v0  ;;  %v13410_v31 = vld [vmem:[#allocation199_spill] sm:$0xff]  ;;  %v13421_v41 = vld [vmem:[#allocation106_spill] sm:$0xff] }
 0x210   :  { %6641 = vmatprep.subr.bf16.mxu1 %v6640_v4  ;;  %v13376_v63 = vand.u32 4294901760, %v13375_v28  ;;  %v13380_v2 = vand.u32 4294901760, %v13379_v62  ;;  %v13384_v46 = vand.u32 4294901760, %v13383_v11  ;;  %v13388_v36 = vand.u32 4294901760, %v13387_v5  ;;  %v13416_v3 = vld [vmem:[#allocation91_spill] sm:$0xff]  ;;  %v13428_v28 = vld [vmem:[#allocation37_spill] sm:$0xff] }
 0x211   :  { %v6268_v14 = vpack.c.bf16 %v13352_v48, %v13350_v26  ;;  %v6652_v4 = vpack.c.bf16 %v13356_v23, %v13354_v50  ;;  %v13391_v35 = vand.u32 4294901760, %v13390_v53  ;;  %v13392_v52 = vand.u32 4294901760, %v13116_v6  ;;  %v13396_v48 = vld [vmem:[#allocation185_spill] sm:$0xff]  ;;  %v13438_v11 = vld [vmem:[#allocation62_spill] sm:$0xff]  ;;  %v13441_v5 = vld [vmem:[#allocation131_spill] sm:$0xff] }
 0x212   :  { %6259 = vmatpush1.bf16.msra.mxu0 %v6258_v45  ;;  %v13359_v45 = vld [vmem:[#allocation165_spill] sm:$0xff]  ;;  %v13395_v30 = vand.u32 4294901760, %v13119_v9  ;;  %v13398_v50 = vand.u32 4294901760, %v13122_v51  ;;  %v13406_v9 = vld [vmem:[#allocation194_spill] sm:$0xff]  ;;  %v13408_v51 = vld [vmem:[#allocation72_spill] sm:$0xff] }
 0x213   :  { %6643 = vmatpush1.bf16.msra.mxu1 %v6642_v32  ;;  %6261 = vmatprep.subr.bf16.mxu0 %v6260_v40  ;;  %v13360_v55 = vand.u32 4294901760, %v13359_v45  ;;  %v13361_v32 = vld [vmem:[#allocation166_spill] sm:$0xff]  ;;  %v13365_v40 = vld [vmem:[#allocation168_spill] sm:$0xff]  ;;  %v13404_v45 = vld [vmem:[#allocation193_spill] sm:$0xff] }
 0x214   :  { %6645 = vmatprep.subr.bf16.mxu1 %v6644_v18  ;;  %v13362_v54 = vand.u32 4294901760, %v13361_v32  ;;  %v13366_v24 = vand.u32 4294901760, %v13365_v40  ;;  %v13369_v18 = vld [vmem:[#allocation170_spill] sm:$0xff]  ;;  %v13414_v40 = vld [vmem:[#allocation80_spill] sm:$0xff]  ;;  %v13433_v62 = vld [vmem:[#allocation49_spill] sm:$0xff] }
 0x215   :  { %v6270_v60 = vpack.c.bf16 %v13360_v55, %v13358_v12  ;;  %v13370_v25 = vand.u32 4294901760, %v13369_v18  ;;  %v13403_v12 = vand.u32 4294901760, %v13402_v22  ;;  %v13405_v55 = vand.u32 4294901760, %v13404_v45  ;;  %v13419_v18 = vld [vmem:[#allocation98_spill] sm:$0xff]  ;;  %v13448_v45 = vld [vmem:[#allocation137_spill] sm:$0xff] }
 0x216   :  { %6263 = vmatpush1.bf16.msra.mxu0 %v6262_v10  ;;  %v6654_v1 = vpack.c.bf16 %v13364_v44, %v13362_v54  ;;  %v6272_v59 = vpack.c.bf16 %v13368_v16, %v13366_v24  ;;  %v13373_v10 = vld [vmem:[#allocation172_spill] sm:$0xff]  ;;  %v13409_v54 = vld [vmem:[#allocation73_spill] sm:$0xff]  ;;  %v13412_v44 = vld [vmem:[#allocation78_spill] sm:$0xff] }
 0x217   :  { %6647 = vmatpush1.bf16.msra.mxu1 %v6646_v49  ;;  %6265 = vmatprep.subr.bf16.mxu0 %v6264_v29  ;;  %v6656_v57 = vpack.c.bf16 %v13372_v17, %v13370_v25  ;;  %v13374_v42 = vand.u32 4294901760, %v13373_v10  ;;  %v13377_v49 = vld [vmem:[#allocation174_spill] sm:$0xff]  ;;  %v13381_v29 = vld [vmem:[#allocation176_spill] sm:$0xff]  ;;  %v13415_v24 = vld [vmem:[#allocation85_spill] sm:$0xff] }
 0x218   :  { %6649 = vmatprep.subr.bf16.mxu1 %v6648_v20  ;;  %v13378_v13 = vand.u32 4294901760, %v13377_v49  ;;  %v13382_v37 = vand.u32 4294901760, %v13381_v29  ;;  %v13385_v20 = vld [vmem:[#allocation178_spill] sm:$0xff]  ;;  %v13417_v16 = vld [vmem:[#allocation93_spill] sm:$0xff]  ;;  %v13420_v25 = vld [vmem:[#allocation103_spill] sm:$0xff] }
 0x219   :  { %v6274_v34 = vpack.c.bf16 %v13376_v63, %v13374_v42  ;;  %v13386_v43 = vand.u32 4294901760, %v13385_v20  ;;  %v13423_v17 = vld [vmem:[#allocation110_spill] sm:$0xff]  ;;  %v13429_v63 = vld [vmem:[#allocation40_spill] sm:$0xff]  ;;  %v13431_v49 = vld [vmem:[#allocation127_spill] sm:$0xff] }
 0x21a   :  { %6267 = vmatpush1.bf16.msra.mxu0 %v6266_v15  ;;  %v6658_v47 = vpack.c.bf16 %v13380_v2, %v13378_v13  ;;  %v6276_v27 = vpack.c.bf16 %v13384_v46, %v13382_v37  ;;  %v13389_v15 = vand.u32 4294901760, %v13113_v19  ;;  %v13400_v19 = vand.u32 4294901760, %v13399_v33  ;;  %v13426_v10 = vld [vmem:[#allocation114_spill] sm:$0xff]  ;;  %v13434_v2 = vld [vmem:[#allocation53_spill] sm:$0xff]  ;;  %v13436_v29 = vld [vmem:[#allocation59_spill] sm:$0xff] }
 0x21b   :  { %6651 = vmatpush1.bf16.msra.mxu1 %v6650_v61  ;;  %6269 = vmatprep.subr.bf16.mxu0 %v6268_v14  ;;  %v6660_v39 = vpack.c.bf16 %v13388_v36, %v13386_v43  ;;  %v13393_v61 = vld [vmem:[#allocation183_spill] sm:$0xff]  ;;  %v13397_v14 = vand.u32 4294901760, %v13396_v48  ;;  %v13427_v42 = vld [vmem:[#allocation34_spill] sm:$0xff]  ;;  %v13437_v37 = vld [vmem:[#allocation61_spill] sm:$0xff] }
 0x21c   :  { %6653 = vmatprep.subr.bf16.mxu1 %v6652_v4  ;;  %v6278_v7 = vpack.c.bf16 %v13391_v35, %v13389_v15  ;;  %v13394_v56 = vand.u32 4294901760, %v13393_v61  ;;  %v6664_v23 = vpack.c.bf16 %v13400_v19, %v13398_v50  ;;  %v13401_v4 = vand.u32 4294901760, %v13125_v38  ;;  %v13411_v38 = vld [vmem:[#allocation200_spill] sm:$0xff]  ;;  %v13432_v13 = vld [vmem:[#allocation46_spill] sm:$0xff]  ;;  %v13440_v43 = vld [vmem:[#allocation67_spill] sm:$0xff] }
 0x21d   :  { %v6280_v0 = vpack.c.bf16 %v13397_v14, %v13395_v30  ;;  %v13439_v46 = vld [vmem:[#allocation66_spill] sm:$0xff]  ;;  %v13442_v36 = vld [vmem:[#allocation132_spill] sm:$0xff]  ;;  %v13443_v15 = vld [vmem:[#allocation133_spill] sm:$0xff] }
 0x21e   :  { %6271 = vmatpush1.bf16.msra.mxu0 %v6270_v60  ;;  %v6662_v26 = vpack.c.bf16 %v13394_v56, %v13392_v52  ;;  %v6282_v6 = vpack.c.bf16 %v13403_v12, %v13401_v4  ;;  %v13407_v60 = vand.u32 4294901760, %v13406_v9  ;;  %v10096_v20 = vld [vmem:[%s11664_s3 + $0x188] sm:$0xff]  ;;  %v10117_v52 = vld [vmem:[%s11664_s3 + $0x190] sm:$0xff]  ;;  %v10122_v61 = vld [vmem:[%s11664_s3 + $0x198] sm:$0xff] }
 0x21f   :  { %6655 = vmatpush1.bf16.msra.mxu1 %v6654_v1  ;;  %6273 = vmatprep.subr.bf16.mxu0 %v6272_v59  ;;  %v13413_v1 = vld [vmem:[#allocation79_spill] sm:$0xff]  ;;  %v13418_v59 = vld [vmem:[#allocation97_spill] sm:$0xff]  ;;  %v3827_v35 = vand.u32 4294901760, %v10096_v20  ;;  %v13444_v30 = vld [vmem:[#allocation84_spill] sm:$0xff]  ;;  %v3830_v33 = vand.u32 4294901760, %v10117_v52  ;;  %v3833_v19 = vand.u32 4294901760, %v10122_v61 }
 0x220   :  { %6657 = vmatprep.subr.bf16.mxu1 %v6656_v57  ;;  %v6666_v32 = vpack.c.bf16 %v13407_v60, %v13405_v55  ;;  %v13425_v57 = vld [vmem:[#allocation113_spill] sm:$0xff]  ;;  %v10127_v56 = vld [vmem:[%s11664_s3 + $0x110] sm:$0xff]  ;;  %v13445_v14 = vld [vmem:[#allocation134_spill] sm:$0xff] }
 0x221   :  { %v10150_v22 = vsub.f32 %v10096_v20, %v3827_v35  ;;  %v3782_v12 = vand.u32 4294901760, %v10127_v56  ;;  %v13449_v9 = vld [vmem:[#allocation138_spill] sm:$0xff]  ;;  %v13450_v60 = vld [vmem:[#allocation139_spill] sm:$0xff] }
 0x222   :  { %6275 = vmatpush1.bf16.msra.mxu0 %v6274_v34  ;;  %v13430_v34 = vld [vmem:[#allocation41_spill] sm:$0xff]  ;;  %v10356_v20 = vld [vmem:[%s11664_s3 + $0x148] sm:$0xff] }
 0x223   :  { %6659 = vmatpush1.bf16.msra.mxu1 %v6658_v47  ;;  %6277 = vmatprep.subr.bf16.mxu0 %v6276_v27  ;;  %v13435_v47 = vld [vmem:[#allocation56_spill] sm:$0xff]  ;;  %v10091_v27 = vld [vmem:[%s11664_s3 + $0x180] sm:$0xff] }
 0x224   :  { %6661 = vmatprep.subr.bf16.mxu1 %v6660_v39  ;;  %v10104_v39 = vld [vmem:[%s11664_s3 + $0x100] sm:$0xff]  ;;  %v3824_v53 = vand.u32 4294901760, %v10091_v27 }
 0x225   :  { %v3776_v48 = vand.u32 4294901760, %v10104_v39 }
 0x226   :  { %6279 = vmatpush1.bf16.msra.mxu0 %v6278_v7  ;;  %v10112_v7 = vld [vmem:[%s11664_s3 + $0x108] sm:$0xff]  ;;  %v10145_v4 = vsub.f32 %v10091_v27, %v3824_v53  ;;  %v10351_v27 = vld [vmem:[%s11664_s3 + $0x140] sm:$0xff] }
 0x227   :  { %6663 = vmatpush1.bf16.msra.mxu1 %v6662_v26  ;;  %6281 = vmatprep.subr.bf16.mxu0 %v6280_v0  ;;  %v10132_v26 = vld [vmem:[%s11664_s3 + $0x118] sm:$0xff]  ;;  %v13446_v0 = vld [vmem:[#allocation135_spill] sm:$0xff]  ;;  %v3779_v50 = vand.u32 4294901760, %v10112_v7  ;;  %v10158_v55 = vsub.f32 %v10104_v39, %v3776_v48 }
 0x228   :  { %6665 = vmatprep.subr.bf16.mxu1 %v6664_v23  ;;  %v13447_v23 = vld [vmem:[#allocation136_spill] sm:$0xff] }
 0x22a   :  { %6283 = vmatpush1.bf16.msra.mxu0 %v6282_v6  ;;  %v3785_v6 = vand.u32 4294901760, %v10132_v26 }
 0x22b   :  { %6667 = vmatpush1.bf16.msra.mxu1 %v6666_v32  ;;  %6285 = vmatprep.subr.bf16.mxu0 %v13408_v51  ;;  %v10165_v32 = vsub.f32 %v10112_v7, %v3779_v50  ;;  %v10170_v51 = vsub.f32 %v10117_v52, %v3830_v33 }
 0x22c   :  { %6669 = vmatprep.subr.bf16.mxu1 %v13409_v54  ;;  %v10175_v54 = vsub.f32 %v10122_v61, %v3833_v19 }
 0x22d   :  { %2207 = vmatmul.mubr.f32.vlgmr.msra.gmra.mrb[2].mxu0 %v13410_v31 }
 0x22e   :  { %3566 = vmatmul.mubr.f32.vlgmr.msra.gmra.mrb[2].mxu1 %v13411_v38  ;;  %6287 = vmatpush1.bf16.msra.mxu0 %v13412_v44  ;;  %v13451_v44 = vld [vmem:[#allocation140_spill] sm:$0xff] }
 0x22f   :  { %2342 = vmatprep.mubr.f32.mxu0 %v13217_v58  ;;  %6671 = vmatpush1.bf16.msra.mxu1 %v13413_v1  ;;  %v13422_v58 = vld [vmem:[#allocation107_spill] sm:$0xff]  ;;  %v12198_v1 = vand.u32 4294901760, %v10145_v4 }
 0x230   :  { %3701 = vmatprep.mubr.f32.mxu1 %v13226_v8  ;;  %6289 = vmatprep.subr.bf16.mxu0 %v13414_v40  ;;  %v13424_v8 = vld [vmem:[#allocation112_spill] sm:$0xff]  ;;  %v12197_v40 = vand.u32 4294901760, %v10150_v22 }
 0x231   :  { %6673 = vmatprep.subr.bf16.mxu1 %v13415_v24  ;;  %v10183_v24 = vsub.f32 %v10127_v56, %v3782_v12 }
 0x232   :  { %6291 = vmatpush1.bf16.msra.mxu0 %v13416_v3  ;;  %v10188_v3 = vsub.f32 %v10132_v26, %v3785_v6 }
 0x233   :  { %6675 = vmatpush1.bf16.msra.mxu1 %v13417_v16  ;;  %6293 = vmatprep.subr.bf16.mxu0 %v13418_v59  ;;  %v13452_v16 = vld [vmem:[#allocation141_spill] sm:$0xff]  ;;  %v12196_v59 = vand.u32 4294901760, %v10158_v55 }
 0x234   :  { %6677 = vmatprep.subr.bf16.mxu1 %v13419_v18  ;;  %v10195_v18 = vld [vmem:[%s11664_s3 + $0x1a0] sm:$0xff] }
 0x236   :  { %6295 = vmatpush1.bf16.msra.mxu0 %v13420_v25  ;;  %v13453_v25 = vld [vmem:[#allocation142_spill] sm:$0xff] }
 0x237   :  { %6679 = vmatpush1.bf16.msra.mxu1 %v13421_v41  ;;  %6297 = vmatprep.subr.bf16.mxu0 %v13422_v58  ;;  %v13454_v41 = vld [vmem:[#allocation143_spill] sm:$0xff]  ;;  %v12195_v58 = vand.u32 4294901760, %v10165_v32 }
 0x238   :  { %6681 = vmatprep.subr.bf16.mxu1 %v13423_v17  ;;  %v12194_v17 = vand.u32 4294901760, %v10170_v51 }
 0x23a   :  { %6299 = vmatpush1.bf16.msra.mxu0 %v13424_v8  ;;  %v12193_v8 = vand.u32 4294901760, %v10175_v54 }
 0x23b   :  { %6683 = vmatpush1.bf16.msra.mxu1 %v13425_v57  ;;  %6301 = vmatprep.subr.bf16.mxu0 %v13426_v10  ;;  %v10205_v57 = vld [vmem:[%s11664_s3 + $0x1a8] sm:$0xff]  ;;  %v13455_v10 = vld [vmem:[#allocation144_spill] sm:$0xff] }
 0x23c   :  { %6685 = vmatprep.subr.bf16.mxu1 %v13427_v42  ;;  %v4003_v42 = vsub.f32 %v10145_v4, %v12198_v1 }
 0x23e   :  { %6303 = vmatpush1.bf16.msra.mxu0 %v13428_v28  ;;  %v4010_v28 = vsub.f32 %v10150_v22, %v12197_v40  ;;  %v13466_v40 = vld [vmem:[#allocation155_spill] sm:$0xff] }
 0x23f   :  { %6687 = vmatpush1.bf16.msra.mxu1 %v13429_v63  ;;  %6305 = vmatprep.subr.bf16.mxu0 %v13430_v34  ;;  %v12192_v63 = vand.u32 4294901760, %v10183_v24  ;;  %v12191_v34 = vand.u32 4294901760, %v10188_v3 }
 0x240   :  { %6689 = vmatprep.subr.bf16.mxu1 %v13431_v49  ;;  %v3836_v49 = vand.u32 4294901760, %v10195_v18 }
 0x242   :  { %6307 = vmatpush1.bf16.msra.mxu0 %v13432_v13  ;;  %v13456_v13 = vld [vmem:[#allocation145_spill] sm:$0xff] }
 0x243   :  { %6691 = vmatpush1.bf16.msra.mxu1 %v13433_v62  ;;  %6309 = vmatprep.subr.bf16.mxu0 %v13434_v2  ;;  %v3891_v62 = vsub.f32 %v10158_v55, %v12196_v59  ;;  %v3839_v2 = vand.u32 4294901760, %v10205_v57 }
 0x244   :  { %6693 = vmatprep.subr.bf16.mxu1 %v13435_v47  ;;  %v10225_v47 = vld [vmem:[%s11664_s3 + $0x120] sm:$0xff] }
 0x246   :  { %6311 = vmatpush1.bf16.msra.mxu0 %v13436_v29  ;;  %v10230_v29 = vld [vmem:[%s11664_s3 + $0x128] sm:$0xff] }
 0x247   :  { %6695 = vmatpush1.bf16.msra.mxu1 %v13437_v37  ;;  %6313 = vmatprep.subr.bf16.mxu0 %v13438_v11  ;;  %v13457_v37 = vld [vmem:[#allocation146_spill] sm:$0xff]  ;;  %v13458_v11 = vld [vmem:[#allocation147_spill] sm:$0xff] }
 0x248   :  { %6697 = vmatprep.subr.bf16.mxu1 %v13439_v46  ;;  %v3898_v46 = vsub.f32 %v10165_v32, %v12195_v58 }
 0x24a   :  { %6315 = vmatpush1.bf16.msra.mxu0 %v13440_v43  ;;  %v4017_v43 = vsub.f32 %v10170_v51, %v12194_v17 }
 0x24b   :  { %6699 = vmatpush1.bf16.msra.mxu1 %v13441_v5  ;;  %6317 = vmatprep.subr.bf16.mxu0 %v13442_v36  ;;  %v4024_v5 = vsub.f32 %v10175_v54, %v12193_v8  ;;  %v10246_v36 = vld [vmem:[%s11664_s3 + $0x1b0] sm:$0xff] }
 0x24c   :  { %6701 = vmatprep.subr.bf16.mxu1 %v13443_v15  ;;  %v10251_v15 = vld [vmem:[%s11664_s3 + $0x1b8] sm:$0xff] }
 0x24e   :  { %6319 = vmatpush1.bf16.msra.mxu0 %v13444_v30  ;;  %v13459_v30 = vld [vmem:[#allocation148_spill] sm:$0xff] }
 0x24f   :  { %6703 = vmatpush1.bf16.msra.mxu1 %v13445_v14  ;;  %6321 = vmatprep.subr.bf16.mxu0 %v13446_v0  ;;  %v4004_v14 = vand.u32 4294901760, %v4003_v42  ;;  %v4011_v0 = vand.u32 4294901760, %v4010_v28  ;;  %v10278_v42 = vld [vmem:[%s11664_s3 + $0x130] sm:$0xff]  ;;  %v13461_v28 = vld [vmem:[#allocation150_spill] sm:$0xff] }
 0x250   :  { %6705 = vmatprep.subr.bf16.mxu1 %v13447_v23  ;;  %v3905_v23 = vsub.f32 %v10183_v24, %v12192_v63  ;;  %v13463_v63 = vld [vmem:[#allocation152_spill] sm:$0xff] }
 0x251   :  { %v10288_v8 = vpack.c.bf16 %v4011_v0, %v4004_v14  ;;  %v13464_v14 = vld [vmem:[#allocation153_spill] sm:$0xff] }
 0x252   :  { %6323 = vmatpush1.bf16.msra.mxu0 %v13448_v45  ;;  %v3912_v45 = vsub.f32 %v10188_v3, %v12191_v34  ;;  %v10285_v34 = vld [vmem:[%s11664_s3 + $0x138] sm:$0xff]  ;;  %v3906_v17 = vand.u32 4294901760, %v3905_v23 }
 0x253   :  { %6707 = vmatpush1.bf16.msra.mxu1 %v13449_v9  ;;  %6325 = vmatprep.subr.bf16.mxu0 %v13450_v60  ;;  %v10263_v9 = vsub.f32 %v10195_v18, %v3836_v49  ;;  %v12208_v60 = vand.u32 4294901760, %v10225_v47 }
 0x254   :  { %6709 = vmatprep.subr.bf16.mxu1 %v13451_v44  ;;  %v12200_v44 = vand.u32 4294901760, %v10230_v29  ;;  %v3913_v58 = vand.u32 4294901760, %v3912_v45 }
 0x255   :  { %v12202_v59 = vand.u32 4294901760, %v10263_v9 }
 0x256   :  { %6327 = vmatpush1.bf16.msra.mxu0 %v13452_v16  ;;  %v13460_v16 = vld [vmem:[#allocation149_spill] sm:$0xff] }
 0x257   :  { %6711 = vmatpush1.bf16.msra.mxu1 %v13453_v25  ;;  %6329 = vmatprep.subr.bf16.mxu0 %v13454_v41  ;;  %v10271_v25 = vsub.f32 %v10205_v57, %v3839_v2  ;;  %v12199_v41 = vand.u32 4294901760, %v10246_v36  ;;  %v4031_v39 = vsub.f32 %v10263_v9, %v12202_v59  ;;  %v13470_v59 = vld [vmem:[#allocation159_spill] sm:$0xff]  ;;  %v13486_v57 = vand.u32 4294901760, %v10230_v29 }
 0x258   :  { %6713 = vmatprep.subr.bf16.mxu1 %v13455_v10  ;;  %v12201_v10 = vand.u32 4294901760, %v10251_v15 }
 0x259   :  { %v12203_v0 = vand.u32 4294901760, %v10271_v25  ;;  %v10317_v23 = vsub.f32 %v10246_v36, %v12199_v41  ;;  %v10335_v41 = vpack.c.bf16 %v3827_v35, %v3824_v53 }
 0x25a   :  { %6331 = vmatpush1.bf16.msra.mxu0 %v13456_v13  ;;  %v13462_v13 = vld [vmem:[#allocation151_spill] sm:$0xff]  ;;  %v10322_v45 = vsub.f32 %v10251_v15, %v12201_v10  ;;  %v10338_v10 = vpack.c.bf16 %v3913_v58, %v3906_v17  ;;  %v13468_v58 = vld [vmem:[#allocation157_spill] sm:$0xff] }
 0x25b   :  { %6715 = vmatpush1.bf16.msra.mxu1 %v13457_v37  ;;  %6333 = vmatprep.subr.bf16.mxu0 %v13458_v11  ;;  %v3892_v37 = vand.u32 4294901760, %v3891_v62  ;;  %v3899_v11 = vand.u32 4294901760, %v3898_v46  ;;  %v10294_v62 = vsub.f32 %v10225_v47, %v12208_v60  ;;  %v10299_v46 = vsub.f32 %v10230_v29, %v12200_v44  ;;  %v13467_v44 = vld [vmem:[#allocation156_spill] sm:$0xff] }
 0x25c   :  { %6717 = vmatprep.subr.bf16.mxu1 %v13459_v30  ;;  %v4018_v30 = vand.u32 4294901760, %v4017_v43  ;;  %v12204_v43 = vand.u32 4294901760, %v10278_v42  ;;  %v4038_v17 = vsub.f32 %v10271_v25, %v12203_v0  ;;  %v10401_v0 = vpack.c.bf16 %v3785_v6, %v3782_v12 }
 0x25d   :  { %v10327_v1 = vpack.c.bf16 %v3899_v11, %v3892_v37  ;;  %v12209_v53 = vand.u32 4294901760, %v10294_v62  ;;  %v12210_v35 = vand.u32 4294901760, %v10299_v46  ;;  %v12211_v11 = vand.u32 4294901760, %v10322_v45 }
 0x25e   :  { %6335 = vmatpush1.bf16.msra.mxu0 %v13460_v16  ;;  %v4025_v16 = vand.u32 4294901760, %v4024_v5  ;;  %v10310_v5 = vld [vmem:[%s11664_s3 + $0x1c8] sm:$0xff]  ;;  %v10366_v7 = vsub.f32 %v10278_v42, %v12204_v43  ;;  %v12213_v43 = vand.u32 4294901760, %v10351_v27 }
 0x25f   :  { %6719 = vmatpush1.bf16.msra.mxu1 %v13461_v28  ;;  %6337 = vmatprep.subr.bf16.mxu0 %v13462_v13  ;;  %v12205_v28 = vand.u32 4294901760, %v10285_v34  ;;  %v13465_v13 = vld [vmem:[#allocation154_spill] sm:$0xff]  ;;  %v12206_v37 = vand.u32 4294901760, %v10310_v5  ;;  %v3919_v12 = vsub.f32 %v10294_v62, %v12209_v53  ;;  %v3926_v6 = vsub.f32 %v10299_v46, %v12210_v35  ;;  %v13474_v53 = vld [vmem:[#allocation192_spill] sm:$0xff] }
 0x260   :  { %6721 = vmatprep.subr.bf16.mxu1 %v13463_v63  ;;  %v10305_v63 = vld [vmem:[%s11664_s3 + $0x1c0] sm:$0xff]  ;;  %v10448_v35 = vsub.f32 %v10351_v27, %v12213_v43 }
 0x261   :  { %v10414_v61 = vsub.f32 %v10310_v5, %v12206_v37  ;;  %v4039_v37 = vand.u32 4294901760, %v4038_v17 }
 0x262   :  { %6339 = vmatpush1.bf16.msra.mxu0 %v13464_v14  ;;  %v10329_v14 = vpack.c.bf16 %v4025_v16, %v4018_v30  ;;  %v10387_v30 = vsub.f32 %v10285_v34, %v12205_v28  ;;  %v13469_v16 = vld [vmem:[#allocation158_spill] sm:$0xff]  ;;  %v12214_v28 = vand.u32 4294901760, %v10356_v20  ;;  %13475 = vst [vmem:[#allocation83_spill] sm:$0xff] %v10448_v35 }
 0x263   :  { %6723 = vmatpush1.bf16.msra.mxu1 %v13465_v13  ;;  %6341 = vmatprep.subr.bf16.mxu0 %v13466_v40  ;;  %v10344_v13 = vpack.c.bf16 %v3779_v50, %v3776_v48  ;;  %v12207_v40 = vand.u32 4294901760, %v10305_v63  ;;  %v10371_v48 = vld [vmem:[%s11664_s3 + $0x1d0] sm:$0xff]  ;;  %v10376_v50 = vld [vmem:[%s11664_s3 + $0x1d8] sm:$0xff]  ;;  %13472 = vst [vmem:[#allocation82_spill] sm:$0xff] %v10414_v61 }
 0x264   :  { %6725 = vmatprep.subr.bf16.mxu1 %v13467_v44  ;;  %v12212_v44 = vand.u32 4294901760, %v10317_v23  ;;  %v12215_v56 = vand.u32 4294901760, %v10371_v48  ;;  %v12216_v26 = vand.u32 4294901760, %v10376_v50  ;;  %v12217_v60 = vand.u32 4294901760, %v10387_v30 }
 0x265   :  { %v10409_v52 = vsub.f32 %v10305_v63, %v12207_v40  ;;  %v10453_v17 = vsub.f32 %v10356_v20, %v12214_v28 }
 0x266   :  { %6343 = vmatpush1.bf16.msra.mxu0 %v13468_v58  ;;  %v10395_v58 = vpack.c.bf16 %v3833_v19, %v3830_v33  ;;  %v10421_v33 = vld [vmem:[%s11664_s3 + $0x150] sm:$0xff]  ;;  %v4032_v19 = vand.u32 4294901760, %v4031_v39  ;;  %v4045_v40 = vsub.f32 %v10317_v23, %v12212_v44  ;;  %v4052_v39 = vsub.f32 %v10322_v45, %v12211_v11 }
 0x267   :  { %6727 = vmatpush1.bf16.msra.mxu1 %v13469_v16  ;;  %6345 = vmatprep.subr.bf16.mxu0 %v13470_v59  ;;  %13471 = vst [vmem:[#allocation81_spill] sm:$0xff] %v10409_v52  ;;  %v12218_v59 = vand.u32 4294901760, %v10366_v7  ;;  %v13473_v16 = vld [vmem:[#allocation189_spill] sm:$0xff]  ;;  %13476 = vst [vmem:[#allocation86_spill] sm:$0xff] %v10453_v17  ;;  %v10463_v43 = vsub.f32 %v10371_v48, %v12215_v56  ;;  %v10468_v28 = vsub.f32 %v10376_v50, %v12216_v26 }
 0x268   :  { %6729 = vmatprep.subr.bf16.mxu1 %v13197_v21  ;;  %v10426_v21 = vld [vmem:[%s11664_s3 + $0x158] sm:$0xff]  ;;  %v3927_v11 = vand.u32 4294901760, %v3926_v6  ;;  %v10478_v44 = vpack.c.bf16 %v3839_v2, %v3836_v49  ;;  %v6772_v56 = vpack.c.bf16 %v4039_v37, %v4032_v19  ;;  %v4046_v26 = vand.u32 4294901760, %v4045_v40 }
 0x269   :  { %13477 = vst [vmem:[#allocation201_spill] sm:$0xff] %v10463_v43  ;;  %13478 = vst [vmem:[#allocation202_spill] sm:$0xff] %v10468_v28  ;;  %v13479_v49 = vand.u32 4294901760, %v10421_v33  ;;  %v13481_v2 = vand.u32 4294901760, %v10426_v21  ;;  %v13484_v19 = vand.u32 4294901760, %v10414_v61  ;;  %v12224_v6 = vand.u32 4294901760, %v10463_v43 }
 0x26a   :  { %6347 = vmatpush1.bf16.msra.mxu0 %v13473_v16  ;;  %v3920_v16 = vand.u32 4294901760, %v3919_v12 }
 0x26b   :  { %6731 = vmatpush1.bf16.msra.mxu1 %v13474_v53  ;;  %6733 = vmatprep.subr.bf16.mxu0 %v10335_v41  ;;  %v4053_v53 = vand.u32 4294901760, %v4052_v39  ;;  %v10497_v40 = vsub.f32 %v10426_v21, %v13481_v2  ;;  %v4066_v12 = vsub.f32 %v10414_v61, %v13484_v19  ;;  %v12223_v39 = vand.u32 4294901760, %v10468_v28 }
 0x26c   :  { %6765 = vmatprep.subr.bf16.mxu1 %v10288_v8  ;;  %v3933_v8 = vsub.f32 %v10366_v7, %v12218_v59  ;;  %v13488_v19 = vand.u32 4294901760, %v10251_v15 }
 0x26d   :  { %2344 = vmatmul.mubr.f32.vlgmr.msra.gmra.mrb[2].mxu0 %v13410_v31  ;;  %v3940_v31 = vsub.f32 %v10387_v30, %v12217_v60  ;;  %13482 = vst [vmem:[#allocation204_spill] sm:$0xff] %v10497_v40  ;;  %v6776_v59 = vpack.c.bf16 %v4053_v53, %v4046_v26  ;;  %v4067_v53 = vand.u32 4294901760, %v4066_v12 }
 0x26e   :  { %3703 = vmatmul.mubr.f32.vlgmr.msra.gmra.mrb[2].mxu1 %v13411_v38  ;;  %6735 = vmatpush3.bf16.msra.mxu0 %v10344_v13  ;;  %v10492_v38 = vsub.f32 %v10421_v33, %v13479_v49  ;;  %v6774_v49 = vpack.c.bf16 %v3927_v11, %v3920_v16  ;;  %v3934_v60 = vand.u32 4294901760, %v3933_v8  ;;  %v13489_v11 = vand.u32 4294901760, %v10448_v35 }
 0x26f   :  { %6767 = vmatpush3.bf16.msra.mxu1 %v10327_v1  ;;  %6737 = vmatprep.subr.bf16.mxu0 %v10395_v58  ;;  %v13483_v1 = vand.u32 4294901760, %v10409_v52  ;;  %v3941_v2 = vand.u32 4294901760, %v3940_v31  ;;  %v4080_v8 = vsub.f32 %v10468_v28, %v12223_v39 }
 0x270   :  { %13480 = vst [vmem:[#allocation203_spill] sm:$0xff] %v10492_v38  ;;  %6769 = vmatprep.subr.bf16.mxu1 %v10329_v14  ;;  %v13485_v14 = vand.u32 4294901760, %v10225_v47  ;;  %v3947_v26 = vsub.f32 %v10448_v35, %v13489_v11  ;;  %v13490_v47 = vand.u32 4294901760, %v10453_v17  ;;  %v12222_v16 = vand.u32 4294901760, %v10492_v38 }
 0x271   :  { %v4059_v37 = vsub.f32 %v10409_v52, %v13483_v1  ;;  %v13487_v1 = vand.u32 4294901760, %v10246_v36  ;;  %v12221_v36 = vand.u32 4294901760, %v10497_v40  ;;  %v6778_v31 = vpack.c.bf16 %v3941_v2, %v3934_v60 }
 0x272   :  { %6739 = vmatpush3.bf16.msra.mxu0 %v10401_v0  ;;  %v10513_v18 = vpack.c.bf16 %v13486_v57, %v13485_v14  ;;  %v3954_v29 = vsub.f32 %v10453_v17, %v13490_v47  ;;  %v13491_v57 = vand.u32 4294901760, %v10278_v42  ;;  %v13492_v14 = vand.u32 4294901760, %v10285_v34 }
 0x273   :  { %v10519_v61 = vpack.c.bf16 %v13488_v19, %v13487_v1  ;;  %6771 = vmatpush3.bf16.msra.mxu1 %v10338_v10  ;;  %6741 = vmatprep.subr.bf16.mxu0 %v10478_v44  ;;  %v4060_v15 = vand.u32 4294901760, %v4059_v37  ;;  %v4073_v10 = vsub.f32 %v10463_v43, %v12224_v6  ;;  %v3961_v12 = vsub.f32 %v10492_v38, %v12222_v16 }
 0x274   :  { %6773 = vmatprep.subr.bf16.mxu1 %v6772_v56  ;;  %v10542_v1 = vpack.c.bf16 %v13492_v14, %v13491_v57  ;;  %v3948_v56 = vand.u32 4294901760, %v3947_v26  ;;  %v3955_v37 = vand.u32 4294901760, %v3954_v29  ;;  %v3968_v60 = vsub.f32 %v10497_v40, %v12221_v36  ;;  %v10555_v29 = vld [vmem:[%s11664_s3 + $0x1e0] sm:$0xff] }
 0x275   :  { %v6780_v2 = vpack.c.bf16 %v4067_v53, %v4060_v15  ;;  %v4074_v42 = vand.u32 4294901760, %v4073_v10  ;;  %v4081_v19 = vand.u32 4294901760, %v4080_v8  ;;  %v3860_v15 = vand.u32 4294901760, %v10555_v29  ;;  %v3755_v10 = vld [vmem:[%s11664_s3 + $0x160] sm:$0xff]  ;;  %v3756_v8 = vld [vmem:[%s11664_s3 + $0x168] sm:$0xff] }
 0x276   :  { %6743 = vmatpush3.bf16.msra.mxu0 %v10513_v18  ;;  %13493 = vst [vmem:[#allocation205_spill] sm:$0xff] %v10542_v1  ;;  %v6782_v34 = vpack.c.bf16 %v3955_v37, %v3948_v56  ;;  %v3969_v11 = vand.u32 4294901760, %v3968_v60  ;;  %v3815_v57 = vand.u32 4294901760, %v3756_v8  ;;  %v3773_v60 = vld [vmem:[%s11664_s3 + $0x1f0] sm:$0xff]  ;;  %v13494_v52 = vand.u32 4294901760, %v10305_v63 }
 0x277   :  { %6775 = vmatpush3.bf16.msra.mxu1 %v6774_v49  ;;  %6745 = vmatprep.subr.bf16.mxu0 %v10519_v61  ;;  %v3962_v49 = vand.u32 4294901760, %v3961_v12  ;;  %v6784_v26 = vpack.c.bf16 %v4081_v19, %v4074_v42  ;;  %v10571_v14 = vsub.f32 %v10555_v29, %v3860_v15 }
 0x278   :  { %6777 = vmatprep.subr.bf16.mxu1 %v6776_v59  ;;  %v10560_v59 = vld [vmem:[%s11664_s3 + $0x1e8] sm:$0xff]  ;;  %v10578_v12 = vsub.f32 %v3756_v8, %v3815_v57 }
 0x279   :  { %v6786_v47 = vpack.c.bf16 %v3969_v11, %v3962_v49  ;;  %v3863_v53 = vand.u32 4294901760, %v10560_v59  ;;  %v12231_v42 = vand.u32 4294901760, %v10571_v14  ;;  %v3757_v11 = vld [vmem:[%s11664_s3 + $0x170] sm:$0xff] }
 0x27a   :  { %6747 = vmatpush3.bf16.msra.mxu0 %v10542_v1  ;;  %v12242_v29 = vand.u32 4294901760, %v10578_v12 }
 0x27b   :  { %6779 = vmatpush3.bf16.msra.mxu1 %v6778_v31  ;;  %v3812_v31 = vand.u32 4294901760, %v3755_v10  ;;  %v10574_v56 = vsub.f32 %v10560_v59, %v3863_v53  ;;  %v3818_v59 = vand.u32 4294901760, %v3757_v11  ;;  %v4087_v8 = vsub.f32 %v10571_v14, %v12231_v42 }
 0x27c   :  { %6781 = vmatprep.subr.bf16.mxu1 %v6780_v2  ;;  %v3774_v2 = vld [vmem:[%s11664_s3 + $0x1f8] sm:$0xff]  ;;  %v3982_v40 = vsub.f32 %v10578_v12, %v12242_v29  ;;  %v13495_v29 = vand.u32 4294901760, %v10310_v5 }
 0x27d   :  { %v10576_v37 = vsub.f32 %v3755_v10, %v3812_v31  ;;  %v12234_v19 = vand.u32 4294901760, %v10574_v56  ;;  %v3869_v49 = vand.u32 4294901760, %v3774_v2  ;;  %v10612_v38 = vsub.f32 %v3757_v11, %v3818_v59 }
 0x27e   :  { %v4088_v42 = vand.u32 4294901760, %v4087_v8  ;;  %v3983_v17 = vand.u32 4294901760, %v3982_v40  ;;  %v10624_v11 = vpack.c.bf16 %v13495_v29, %v13494_v52  ;;  %v13497_v40 = vand.u32 4294901760, %v10351_v27 }
 0x27f   :  { %6783 = vmatpush3.bf16.msra.mxu1 %v6782_v34  ;;  %v3866_v34 = vand.u32 4294901760, %v3773_v60  ;;  %v4094_v36 = vsub.f32 %v10574_v56, %v12234_v19  ;;  %v10604_v39 = vsub.f32 %v3774_v2, %v3869_v49  ;;  %v12243_v35 = vand.u32 4294901760, %v10612_v38 }
 0x280   :  { %6785 = vmatprep.subr.bf16.mxu1 %v6784_v26  ;;  %v3758_v26 = vld [vmem:[%s11664_s3 + $0x178] sm:$0xff]  ;;  %13496 = vst [vmem:[#allocation206_spill] sm:$0xff] %v10624_v11  ;;  %v13498_v8 = vand.u32 4294901760, %v10356_v20  ;;  %6749 = vmatprep.subr.bf16.mxu0 %v10624_v11  ;;  %v13501_v29 = vand.u32 4294901760, %v10371_v48  ;;  %v10662_v48 = vpack.c.bf16 %v3815_v57, %v3812_v31  ;;  %v10768_v57 = vld [vmem:[%s11664_s3 + $0x68] sm:$0xff] }
 0x281   :  { %v3821_v10 = vand.u32 4294901760, %v3758_v26  ;;  %v10602_v16 = vsub.f32 %v3773_v60, %v3866_v34  ;;  %v4095_v43 = vand.u32 4294901760, %v4094_v36  ;;  %v12244_v60 = vand.u32 4294901760, %v10604_v39  ;;  %13520 = vst [vmem:[#allocation213_spill] sm:$0xff] %v10768_v57 }
 0x282   :  { %v3989_v5 = vsub.f32 %v10612_v38, %v12243_v35  ;;  %v13518_v35 = vld [vmem:[#allocation82_spill] sm:$0xff] }
 0x283   :  { %6787 = vmatpush3.bf16.msra.mxu1 %v6786_v47  ;;  %v12239_v47 = vand.u32 4294901760, %v10576_v37  ;;  %v10614_v28 = vsub.f32 %v3758_v26, %v3821_v10  ;;  %v12245_v19 = vand.u32 4294901760, %v10602_v16  ;;  %v6788_v26 = vpack.c.bf16 %v4095_v43, %v4088_v42 }
 0x284   :  { %v3990_v42 = vand.u32 4294901760, %v3989_v5  ;;  %v10660_v5 = vpack.c.bf16 %v3863_v53, %v3860_v15  ;;  %v13523_v15 = vld [vmem:[#allocation83_spill] sm:$0xff] }
 0x285   :  { %v3975_v6 = vsub.f32 %v10576_v37, %v12239_v47  ;;  %v4101_v36 = vsub.f32 %v10602_v16, %v12245_v19  ;;  %v10636_v47 = vpack.c.bf16 %v13498_v8, %v13497_v40  ;;  %6789 = vmatprep.subr.bf16.mxu1 %v6788_v26  ;;  %v13500_v27 = vand.u32 4294901760, %v10614_v28  ;;  %v10763_v19 = vld [vmem:[%s11664_s3 + $0x60] sm:$0xff] }
 0x286   :  { %v13504_v8 = vand.u32 4294901760, %v10421_v33  ;;  %v13505_v26 = vand.u32 4294901760, %v10426_v21  ;;  %13507 = vst [vmem:[#allocation209_spill] sm:$0xff] %v10660_v5  ;;  %v10669_v33 = vpack.c.bf16 %v3821_v10, %v3818_v59  ;;  %v6796_v21 = vpack.c.bf16 %v10150_v22, %v10145_v4  ;;  %v7178_v59 = vld [vmem:[%s11662_s1 + $0x30] sm:$0xff]  ;;  %13519 = vst [vmem:[#allocation95_spill] sm:$0xff] %v10763_v19 }
 0x287   :  { %v3976_v2 = vand.u32 4294901760, %v3975_v6  ;;  %v4108_v6 = vsub.f32 %v10604_v39, %v12244_v60  ;;  %13499 = vst [vmem:[#allocation87_spill] sm:$0xff] %v10636_v47  ;;  %v4102_v43 = vand.u32 4294901760, %v4101_v36  ;;  %6751 = vmatpush3.bf16.msra.mxu0 %v10636_v47  ;;  %v3996_v20 = vsub.f32 %v10614_v28, %v13500_v27 }
 0x288   :  { %v10656_v36 = vpack.c.bf16 %v13505_v26, %v13504_v8 }
 0x289   :  { %v6790_v63 = vpack.c.bf16 %v3983_v17, %v3976_v2  ;;  %v4109_v52 = vand.u32 4294901760, %v4108_v6  ;;  %v13502_v17 = vand.u32 4294901760, %v10376_v50  ;;  %v3997_v6 = vand.u32 4294901760, %v3996_v20 }
 0x28a   :  { %13506 = vst [vmem:[#allocation208_spill] sm:$0xff] %v10656_v36  ;;  %v10667_v50 = vpack.c.bf16 %v3869_v49, %v3866_v34  ;;  %v13509_v34 = vld [vmem:[#allocation195_spill] sm:$0xff] }
 0x28b   :  { %6791 = vmatpush3.bf16.msra.mxu1 %v6790_v63  ;;  %v10650_v2 = vpack.c.bf16 %v13502_v17, %v13501_v29  ;;  %v6792_v40 = vpack.c.bf16 %v4109_v52, %v4102_v43  ;;  %v6794_v63 = vpack.c.bf16 %v3997_v6, %v3990_v42  ;;  %v10684_v49 = vsub.s32 1, %v13509_v34  ;;  %v7179_v43 = vld [vmem:[%s11662_s1 + $0x38] sm:$0xff] }
 0x28c   :  { %13508 = vst [vmem:[#allocation210_spill] sm:$0xff] %v10667_v50 }
 0x28d   :  { %13503 = vst [vmem:[#allocation207_spill] sm:$0xff] %v10650_v2  ;;  %6753 = vmatprep.subr.bf16.mxu0 %v10650_v2  ;;  %6793 = vmatprep.subr.bf16.mxu1 %v6792_v40  ;;  %v2420_v10 = vrot.slane %v7178_v59, %v10684_v49  ;;  %v2424_v52 = vrot.slane %v7179_v43, %v10684_v49 }
 0x28e   :  { %6755 = vmatpush3.bf16.msra.mxu0 %v10656_v36 }
 0x28f   :  { %6795 = vmatpush3.bf16.msra.mxu1 %v6794_v63  ;;  %6757 = vmatprep.subr.bf16.mxu0 %v10660_v5 }
 0x290   :  { %6829 = vmatprep.subr.bf16.mxu1 %v10335_v41 }
 0x292   :  { %6759 = vmatpush3.bf16.msra.mxu0 %v10662_v48 }
 0x293   :  { %6761 = vmatprep.subr.bf16.mxu0 %v10667_v50 }
 0x296   :  { %6763 = vmatpush3.bf16.msra.mxu0 %v10669_v33 }
 0x297   :  { %6797 = vmatprep.subr.bf16.mxu0 %v6796_v21 }
 0x340   :  { %v10694_v42 = vpop.f32.mrb[2].mxu0 }
 0x341   :  { %13510 = vst [vmem:[#allocation88_spill] sm:$0xff] %v10694_v42  ;;  %v3704_v27 = vpop.f32.mrb[2].mxu1  ;;  %v10696_v20 = vpop.f32.mrb[3].mxu0 }
 0x342   :  { %13511 = vst [vmem:[#allocation211_spill] sm:$0xff] %v10696_v20  ;;  %v7122_v29 = vadd.f32 %v3704_v27, %v2420_v10  ;;  %v3706_v17 = vpop.f32.mrb[3].mxu1 }
 0x343   :  { %v7123_v40 = vadd.f32 %v3706_v17, %v2424_v52  ;;  %v6798_v17 = vpack.c.bf16 %v10165_v32, %v10158_v55 }
 0x344   :  { %v3709_v8 = vmax.f32 %v7122_v29, 0.0 }
 0x345   :  { %v3710_v26 = vmax.f32 %v7123_v40, 0.0 }
 0x346   :  { %v10698_v6 = vand.u32 4294901760, %v3709_v8 }
 0x347   :  { %v10700_v63 = vand.u32 4294901760, %v3710_v26 }
 0x348   :  { %13512 = vst [vmem:[#allocation212_spill] sm:$0xff] %v10698_v6  ;;  %v10703_v21 = vsub.f32 %v3709_v8, %v10698_v6  ;;  %v6800_v8 = vpack.c.bf16 %v10175_v54, %v10170_v51 }
 0x349   :  { %v3872_v59 = vsub.f32 %v3710_v26, %v10700_v63  ;;  %4112 = vmatprep.mubr.f32.mxu1 %v10700_v63  ;;  %v6802_v26 = vpack.c.bf16 %v10188_v3, %v10183_v24 }
 0x34a   :  { %v12246_v43 = vand.u32 4294901760, %v10703_v21  ;;  %4114 = vmatmul.mubr.f32.vlgmr.msra.gmra.mrb[4].mxu1 %v10698_v6  ;;  %v10798_v6 = vld [vmem:[%s11664_s3 + $0x70] sm:$0xff] }
 0x34b   :  { %6831 = vmatpush3.bf16.msra.mxu1 %v10344_v13  ;;  %v3873_v10 = vand.u32 4294901760, %v3872_v59  ;;  %13529 = vst [vmem:[#allocation99_spill] sm:$0xff] %v10798_v6 }
 0x34c   :  { %v3880_v52 = vsub.f32 %v10703_v21, %v12246_v43  ;;  %6833 = vmatprep.subr.bf16.mxu1 %v10395_v58  ;;  %v10780_v43 = vld [vmem:[%s11664_s3 + $0xf8] sm:$0xff] }
 0x34d   :  { %4356 = vmatprep.mubr.f32.mxu1 %v3873_v10  ;;  %v3874_v27 = vsub.f32 %v3872_v59, %v3873_v10  ;;  %v6804_v10 = vpack.c.bf16 %v10271_v25, %v10263_v9  ;;  %13522 = vst [vmem:[#allocation215_spill] sm:$0xff] %v10780_v43 }
 0x34e   :  { %v3881_v40 = vand.u32 4294901760, %v3880_v52  ;;  %v6806_v52 = vpack.c.bf16 %v10299_v46, %v10294_v62 }
 0x34f   :  { %6835 = vmatpush3.bf16.msra.mxu1 %v10401_v0  ;;  %v3875_v29 = vand.u32 4294901760, %v3874_v27  ;;  %v6808_v27 = vpack.c.bf16 %v10322_v45, %v10317_v23 }
 0x350   :  { %6837 = vmatprep.subr.bf16.mxu1 %v10478_v44 }
 0x351   :  { %3876 = vmatprep.mubr.f32.mxu0 %v3875_v29  ;;  %v10740_v29 = vld [vmem:[%s11664_s3 + $0x58] sm:$0xff] }
 0x352   :  { %3882 = vmatmul.mubr.f32.vlgmr.msra.gmra.mrb[4].mxu0 %v3881_v40  ;;  %13514 = vst [vmem:[#allocation90_spill] sm:$0xff] %v10740_v29  ;;  %v13527_v34 = vand.u32 4294901760, %v10740_v29 }
 0x353   :  { %6799 = vmatpush3.bf16.msra.mxu0 %v6798_v17  ;;  %6839 = vmatpush3.bf16.msra.mxu1 %v10513_v18  ;;  %v6810_v17 = vpack.c.bf16 %v10387_v30, %v10366_v7 }
 0x354   :  { %4249 = vmatprep.mubr.f32.mxu0 %v3872_v59  ;;  %6801 = vmatprep.subr.bf16.mxu0 %v6800_v8  ;;  %v10735_v59 = vld [vmem:[%s11664_s3 + $0x50] sm:$0xff]  ;;  %v13524_v8 = vld [vmem:[#allocation86_spill] sm:$0xff]  ;;  %v10793_v42 = vsub.f32 %v10740_v29, %v13527_v34  ;;  %v13536_v34 = vld [vmem:[#allocation204_spill] sm:$0xff] }
 0x355   :  { %6841 = vmatprep.subr.bf16.mxu1 %v10519_v61  ;;  %13513 = vst [vmem:[#allocation89_spill] sm:$0xff] %v10735_v59  ;;  %v6814_v40 = vpack.c.bf16 %v13524_v8, %v13523_v15  ;;  %v13525_v31 = vand.u32 4294901760, %v10735_v59  ;;  %v13535_v29 = vld [vmem:[#allocation203_spill] sm:$0xff] }
 0x356   :  { %13528 = vst [vmem:[#allocation96_spill] sm:$0xff] %v10793_v42 }
 0x357   :  { %6803 = vmatpush3.bf16.msra.mxu0 %v6802_v26  ;;  %6843 = vmatpush3.bf16.msra.mxu1 %v10542_v1  ;;  %v10750_v26 = vld [vmem:[%s11664_s3 + $0xe0] sm:$0xff]  ;;  %v10788_v53 = vsub.f32 %v10735_v59, %v13525_v31  ;;  %v13532_v59 = vld [vmem:[#allocation202_spill] sm:$0xff]  ;;  %v13538_v1 = vand.u32 4294901760, %v10768_v57 }
 0x358   :  { %6805 = vmatprep.subr.bf16.mxu0 %v6804_v10  ;;  %6845 = vmatprep.subr.bf16.mxu1 %v10624_v11  ;;  %13515 = vst [vmem:[#allocation92_spill] sm:$0xff] %v10750_v26  ;;  %v10755_v10 = vld [vmem:[%s11664_s3 + $0xe8] sm:$0xff]  ;;  %v13531_v31 = vld [vmem:[#allocation201_spill] sm:$0xff]  ;;  %v13533_v11 = vand.u32 4294901760, %v10750_v26 }
 0x359   :  { %13516 = vst [vmem:[#allocation94_spill] sm:$0xff] %v10755_v10  ;;  %13526 = vst [vmem:[#allocation216_spill] sm:$0xff] %v10788_v53 }
 0x35a   :  { %v10815_v20 = vsub.f32 %v10750_v26, %v13533_v11  ;;  %v13540_v26 = vand.u32 4294901760, %v10780_v43 }
 0x35b   :  { %6807 = vmatpush3.bf16.msra.mxu0 %v6806_v52  ;;  %6847 = vmatpush3.bf16.msra.mxu1 %v10636_v47  ;;  %v13517_v52 = vld [vmem:[#allocation81_spill] sm:$0xff]  ;;  %v6818_v47 = vpack.c.bf16 %v13536_v34, %v13535_v29 }
 0x35c   :  { %6809 = vmatprep.subr.bf16.mxu0 %v6808_v27  ;;  %6849 = vmatprep.subr.bf16.mxu1 %v10650_v2  ;;  %v6812_v60 = vpack.c.bf16 %v13518_v35, %v13517_v52  ;;  %v10775_v27 = vld [vmem:[%s11664_s3 + $0xf0] sm:$0xff]  ;;  %v13537_v2 = vand.u32 4294901760, %v10763_v19 }
 0x35d   :  { %13521 = vst [vmem:[#allocation214_spill] sm:$0xff] %v10775_v27  ;;  %v13539_v11 = vand.u32 4294901760, %v10775_v27 }
 0x35f   :  { %6811 = vmatpush3.bf16.msra.mxu0 %v6810_v17  ;;  %6851 = vmatpush3.bf16.msra.mxu1 %v10656_v36  ;;  %v10803_v17 = vld [vmem:[%s11664_s3 + $0x78] sm:$0xff]  ;;  %v6816_v36 = vpack.c.bf16 %v13532_v59, %v13531_v31  ;;  %v10853_v59 = vsub.f32 %v10775_v27, %v13539_v11  ;;  %v10874_v11 = vld [vmem:[%s11664_s3 + $0x8] sm:$0xff]  ;;  %v13549_v27 = vpack.c.bf16 %v10574_v56, %v10571_v14 }
 0x360   :  { %13530 = vst [vmem:[#allocation100_spill] sm:$0xff] %v10803_v17  ;;  %6813 = vmatprep.subr.bf16.mxu0 %v6812_v60  ;;  %6853 = vmatprep.subr.bf16.mxu1 %v10660_v5  ;;  %v13534_v60 = vand.u32 4294901760, %v10755_v10 }
 0x362   :  { %v10820_v5 = vsub.f32 %v10755_v10, %v13534_v60  ;;  %v10833_v60 = vld [vmem:[%s11664_s3 + $0x80] sm:$0xff]  ;;  %v10843_v10 = vsub.f32 %v10768_v57, %v13538_v1  ;;  %v13543_v1 = vand.u32 4294901760, %v10793_v42 }
 0x363   :  { %6815 = vmatpush3.bf16.msra.mxu0 %v6814_v40  ;;  %6855 = vmatpush3.bf16.msra.mxu1 %v10662_v48  ;;  %v10838_v40 = vsub.f32 %v10763_v19, %v13537_v2  ;;  %v10858_v2 = vsub.f32 %v10780_v43, %v13540_v26  ;;  %v13542_v19 = vand.u32 4294901760, %v10788_v53  ;;  %v13545_v43 = vand.u32 4294901760, %v10798_v6 }
 0x364   :  { %6817 = vmatprep.subr.bf16.mxu0 %v6816_v36  ;;  %6857 = vmatprep.subr.bf16.mxu1 %v10667_v50  ;;  %v10848_v36 = vld [vmem:[%s11664_s3 + $0x88] sm:$0xff]  ;;  %v10869_v50 = vld [vmem:[%s11664_s3] sm:$0xff]  ;;  %v13553_v26 = vand.u32 4294901760, %v10703_v21  ;;  %v13555_v53 = vand.u32 4294901760, %v10843_v10 }
 0x365   :  { %13541 = vst [vmem:[#allocation217_spill] sm:$0xff] %v10858_v2  ;;  %v10864_v57 = vpack.c.bf16 %v13543_v1, %v13542_v19  ;;  %v10881_v42 = vsub.f32 %v10798_v6, %v13545_v43  ;;  %v13547_v19 = vand.u32 4294901760, %v10803_v17  ;;  %v10912_v6 = vld [vmem:[%s11664_s3 + $0x90] sm:$0xff]  ;;  %v13560_v43 = vand.u32 4294901760, %v10853_v59 }
 0x367   :  { %13544 = vst [vmem:[#allocation218_spill] sm:$0xff] %v10864_v57  ;;  %13546 = vst [vmem:[#allocation101_spill] sm:$0xff] %v10881_v42  ;;  %v10886_v1 = vsub.f32 %v10803_v17, %v13547_v19  ;;  %6819 = vmatpush3.bf16.msra.mxu0 %v6818_v47  ;;  %6859 = vmatpush3.bf16.msra.mxu1 %v10669_v33  ;;  %v13550_v19 = vand.u32 4294901760, %v10815_v20  ;;  %v13551_v47 = vand.u32 4294901760, %v10820_v5 }
 0x368   :  { %6821 = vmatprep.subr.bf16.mxu0 %v13549_v27  ;;  %6893 = vmatprep.subr.bf16.mxu1 %v10335_v41  ;;  %v13557_v41 = vpack.c.bf16 %v10578_v12, %v10576_v37  ;;  %v13559_v27 = vand.u32 4294901760, %v10150_v22 }
 0x369   :  { %13548 = vst [vmem:[#allocation102_spill] sm:$0xff] %v10886_v1  ;;  %v10901_v17 = vpack.c.bf16 %v13551_v47, %v13550_v19  ;;  %v13554_v47 = vand.u32 4294901760, %v10838_v40  ;;  %v10933_v19 = vld [vmem:[%s11664_s3 + $0x98] sm:$0xff] }
 0x36a   :  { %4360 = vmatmul.mubr.f32.vlgmr.msra.gmra.mrb[6].mxu1 %v13553_v26  ;;  %v13558_v26 = vand.u32 4294901760, %v10145_v4  ;;  %v13564_v4 = vand.u32 4294901760, %v10833_v60 }
 0x36b   :  { %13552 = vst [vmem:[#allocation240_spill] sm:$0xff] %v10901_v17  ;;  %v10920_v57 = vpack.c.bf16 %v13555_v53, %v13554_v47  ;;  %6823 = vmatpush3.bf16.msra.mxu0 %v13557_v41  ;;  %6895 = vmatpush3.bf16.msra.mxu1 %v10344_v13  ;;  %v13561_v53 = vand.u32 4294901760, %v10858_v2  ;;  %v13563_v13 = vpack.c.bf16 %v10604_v39, %v10602_v16 }
 0x36c   :  { %v6860_v17 = vpack.c.bf16 %v13559_v27, %v13558_v26  ;;  %4630 = vmatprep.mubr.f32.mxu1 %v10700_v63  ;;  %v10948_v22 = vsub.f32 %v10833_v60, %v13564_v4  ;;  %v13566_v27 = vand.u32 4294901760, %v10848_v36  ;;  %v13568_v26 = vand.u32 4294901760, %v10881_v42  ;;  %6897 = vmatprep.subr.bf16.mxu1 %v10395_v58 }
 0x36d   :  { %13556 = vst [vmem:[#allocation104_spill] sm:$0xff] %v10920_v57  ;;  %v10939_v47 = vpack.c.bf16 %v13561_v53, %v13560_v43  ;;  %6825 = vmatprep.subr.bf16.mxu0 %v13563_v13  ;;  %v13569_v43 = vand.u32 4294901760, %v10886_v1  ;;  %v13571_v13 = vand.u32 4294901760, %v10869_v50  ;;  %v13573_v4 = vand.u32 4294901760, %v10874_v11  ;;  %v10976_v1 = vld [vmem:[%s11664_s3 + $0x10] sm:$0xff] }
 0x36e   :  { %13565 = vst [vmem:[#allocation108_spill] sm:$0xff] %v10948_v22  ;;  %v10953_v41 = vsub.f32 %v10848_v36, %v13566_v27  ;;  %v13575_v58 = vpack.c.bf16 %v10614_v28, %v10612_v38  ;;  %v13578_v27 = vand.u32 4294901760, %v10170_v51  ;;  %v11005_v51 = vld [vmem:[%s11664_s3 + $0x18] sm:$0xff] }
 0x36f   :  { %13562 = vst [vmem:[#allocation105_spill] sm:$0xff] %v10939_v47  ;;  %v10959_v53 = vpack.c.bf16 %v13569_v43, %v13568_v26  ;;  %v10965_v47 = vsub.f32 %v10869_v50, %v13571_v13  ;;  %v10970_v57 = vsub.f32 %v10874_v11, %v13573_v4  ;;  %6899 = vmatpush3.bf16.msra.mxu1 %v10401_v0  ;;  %v13576_v43 = vand.u32 4294901760, %v10158_v55  ;;  %v11029_v0 = vld [vmem:[%s11664_s3 + $0xa0] sm:$0xff] }
 0x370   :  { %13567 = vst [vmem:[#allocation109_spill] sm:$0xff] %v10953_v41  ;;  %6827 = vmatpush3.bf16.msra.mxu0 %v13575_v58  ;;  %v13577_v13 = vand.u32 4294901760, %v10165_v32  ;;  %6901 = vmatprep.subr.bf16.mxu1 %v10478_v44  ;;  %v12277_v26 = vand.u32 4294901760, %v10948_v22  ;;  %v12276_v2 = vand.u32 4294901760, %v10953_v41  ;;  %v12278_v58 = vand.u32 4294901760, %v10976_v1 }
 0x371   :  { %13570 = vst [vmem:[#allocation111_spill] sm:$0xff] %v10959_v53  ;;  %13572 = vst [vmem:[#allocation219_spill] sm:$0xff] %v10965_v47  ;;  %6861 = vmatprep.subr.bf16.mxu0 %v6860_v17  ;;  %v13579_v53 = vand.u32 4294901760, %v10175_v54  ;;  %v13580_v32 = vand.u32 4294901760, %v10912_v6  ;;  %v13582_v54 = vand.u32 4294901760, %v10933_v19  ;;  %v13587_v55 = vand.u32 4294901760, %v10271_v25 }
 0x372   :  { %13574 = vst [vmem:[#allocation220_spill] sm:$0xff] %v10970_v57  ;;  %v6862_v4 = vpack.c.bf16 %v13577_v13, %v13576_v43  ;;  %v13584_v43 = vand.u32 4294901760, %v10183_v24  ;;  %v13585_v13 = vand.u32 4294901760, %v10188_v3  ;;  %v4865_v24 = vsub.f32 %v10948_v22, %v12277_v26 }
 0x373   :  { %v6864_v42 = vpack.c.bf16 %v13579_v53, %v13578_v27  ;;  %v11000_v17 = vsub.f32 %v10912_v6, %v13580_v32  ;;  %4252 = vmatmul.mubr.f32.vlgmr.msra.gmra.mrb[6].mxu0 %v10703_v21  ;;  %v11011_v44 = vsub.f32 %v10933_v19, %v13582_v54  ;;  %v7180_v53 = vld [vmem:[%s11662_s1 + $0x28] sm:$0xff]  ;;  %v13586_v21 = vand.u32 4294901760, %v10263_v9  ;;  %6903 = vmatpush3.bf16.msra.mxu1 %v10513_v18 }
 0x374   :  { %v1065_v27 = vrot.slane %v7180_v53, %v10684_v49  ;;  %6863 = vmatpush3.bf16.msra.mxu0 %v6862_v4  ;;  %4526 = vmatprep.mubr.f32.mxu0 %v10700_v63  ;;  %v6866_v32 = vpack.c.bf16 %v13585_v13, %v13584_v43  ;;  %v11034_v4 = vld [vmem:[%s11664_s3 + $0xa8] sm:$0xff]  ;;  %v4872_v3 = vsub.f32 %v10953_v41, %v12276_v2  ;;  %v12279_v9 = vand.u32 4294901760, %v11005_v51 }
 0x375   :  { %13581 = vst [vmem:[#allocation221_spill] sm:$0xff] %v11000_v17  ;;  %13583 = vst [vmem:[#allocation222_spill] sm:$0xff] %v11011_v44  ;;  %v6868_v54 = vpack.c.bf16 %v13587_v55, %v13586_v21  ;;  %6865 = vmatprep.subr.bf16.mxu0 %v6864_v42  ;;  %v11047_v25 = vsub.f32 %v10976_v1, %v12278_v58  ;;  %6905 = vmatprep.subr.bf16.mxu1 %v10519_v61  ;;  %v13589_v18 = vand.u32 4294901760, %v10294_v62 }
 0x376   :  { %v13590_v42 = vand.u32 4294901760, %v10299_v46  ;;  %v13591_v55 = vand.u32 4294901760, %v10965_v47  ;;  %v13592_v43 = vand.u32 4294901760, %v10970_v57  ;;  %v13593_v2 = vand.u32 4294901760, %v10317_v23 }
 0x377   :  { %13588 = vst [vmem:[#allocation223_spill] sm:$0xff] %v11047_v25  ;;  %v13594_v26 = vand.u32 4294901760, %v10322_v45  ;;  %v13598_v21 = vand.u32 4294901760, %v13518_v35  ;;  %v13599_v45 = vand.u32 4294901760, %v13523_v15  ;;  %v13601_v46 = vand.u32 4294901760, %v13531_v31  ;;  %v11103_v31 = vld [vmem:[%s11664_s3 + $0x28] sm:$0xff] }
 0x378   :  { %v6870_v63 = vpack.c.bf16 %v13590_v42, %v13589_v18  ;;  %v4753_v53 = vsub.f32 %v10965_v47, %v13591_v55  ;;  %v4760_v13 = vsub.f32 %v10970_v57, %v13592_v43  ;;  %6867 = vmatpush3.bf16.msra.mxu0 %v6866_v32  ;;  %v13595_v42 = vand.u32 4294901760, %v10366_v7  ;;  %v13602_v18 = vld [vmem:[#allocation202_spill] sm:$0xff]  ;;  %v11091_v7 = vld [vmem:[%s11664_s3 + $0x20] sm:$0xff] }
 0x379   :  { %v6872_v61 = vpack.c.bf16 %v13594_v26, %v13593_v2  ;;  %v13596_v55 = vand.u32 4294901760, %v10387_v30  ;;  %v13597_v43 = vand.u32 4294901760, %v13517_v52  ;;  %v13600_v2 = vand.u32 4294901760, %v13524_v8  ;;  %v13604_v30 = vld [vmem:[#allocation205_spill] sm:$0xff]  ;;  %6869 = vmatprep.subr.bf16.mxu0 %v6868_v54  ;;  %v13606_v54 = vld [vmem:[#allocation211_spill] sm:$0xff] }
 0x37a   :  { %v13603_v32 = vand.u32 4294901760, %v13602_v18  ;;  %6907 = vmatpush3.bf16.msra.mxu1 %v13604_v30  ;;  %v4866_v35 = vand.u32 4294901760, %v4865_v24  ;;  %v4873_v15 = vand.u32 4294901760, %v4872_v3  ;;  %v11098_v52 = vsub.f32 %v11005_v51, %v12279_v9  ;;  %v13607_v3 = vld [vmem:[#allocation206_spill] sm:$0xff]  ;;  %v13618_v8 = vld [vmem:[#allocation87_spill] sm:$0xff] }
 0x37b   :  { %v6874_v58 = vpack.c.bf16 %v13596_v55, %v13595_v42  ;;  %v6876_v23 = vpack.c.bf16 %v13598_v21, %v13597_v43  ;;  %v11080_v26 = vpack.c.bf16 %v13600_v2, %v13599_v45  ;;  %v11108_v21 = vld [vmem:[%s11664_s3 + $0xb0] sm:$0xff]  ;;  %v11111_v24 = vadd.f32 %v13606_v54, %v1065_v27  ;;  %6909 = vmatprep.subr.bf16.mxu1 %v13607_v3 }
 0x37c   :  { %v11086_v62 = vpack.c.bf16 %v13603_v32, %v13601_v46  ;;  %13605 = vst [vmem:[#allocation224_spill] sm:$0xff] %v11098_v52  ;;  %v4754_v46 = vand.u32 4294901760, %v4753_v53  ;;  %v4761_v18 = vand.u32 4294901760, %v4760_v13  ;;  %v13608_v42 = vand.u32 4294901760, %v11000_v17  ;;  %v11134_v13 = vld [vmem:[%s11664_s3 + $0xb8] sm:$0xff]  ;;  %6871 = vmatpush3.bf16.msra.mxu0 %v6870_v63 }
 0x37d   :  { %v13609_v43 = vand.u32 4294901760, %v11011_v44  ;;  %v13610_v2 = vand.u32 4294901760, %v11029_v0  ;;  %v13612_v27 = vand.u32 4294901760, %v11034_v4  ;;  %v13614_v54 = vand.u32 4294901760, %v13535_v29  ;;  %6873 = vmatprep.subr.bf16.mxu0 %v6872_v61 }
 0x37e   :  { %v4879_v55 = vsub.f32 %v11000_v17, %v13608_v42  ;;  %v13615_v3 = vand.u32 4294901760, %v13536_v34  ;;  %v12282_v9 = vand.u32 4294901760, %v11103_v31  ;;  %v12281_v53 = vand.u32 4294901760, %v11108_v21  ;;  %6911 = vmatpush3.bf16.msra.mxu1 %v13618_v8 }
 0x37f   :  { %v4886_v45 = vsub.f32 %v11011_v44, %v13609_v43  ;;  %v11123_v32 = vsub.f32 %v11029_v0, %v13610_v2  ;;  %v11128_v30 = vsub.f32 %v11034_v4, %v13612_v27  ;;  %v13616_v43 = vand.u32 4294901760, %v10571_v14 }
 0x380   :  { %v11140_v42 = vpack.c.bf16 %v13615_v3, %v13614_v54  ;;  %v13617_v2 = vand.u32 4294901760, %v10574_v56  ;;  %v11151_v63 = vpack.c.bf16 %v4873_v15, %v4866_v35  ;;  %v13619_v29 = vand.u32 4294901760, %v10576_v37  ;;  %v11178_v15 = vld [vmem:[%s11664_s3 + $0x38] sm:$0xff]  ;;  %6875 = vmatpush3.bf16.msra.mxu0 %v6874_v58 }
 0x381   :  { %13611 = vst [vmem:[#allocation225_spill] sm:$0xff] %v11123_v32  ;;  %13613 = vst [vmem:[#allocation226_spill] sm:$0xff] %v11128_v30  ;;  %v13620_v34 = vand.u32 4294901760, %v10578_v12  ;;  %v13621_v14 = vand.u32 4294901760, %v11047_v25  ;;  %v12280_v3 = vand.u32 4294901760, %v11098_v52  ;;  %v11167_v61 = vpack.c.bf16 %v4761_v18, %v4754_v46  ;;  %v11173_v12 = vld [vmem:[%s11664_s3 + $0x30] sm:$0xff]  ;;  %6877 = vmatprep.subr.bf16.mxu0 %v6876_v23 }
 0x382   :  { %v11146_v27 = vpack.c.bf16 %v13617_v2, %v13616_v43  ;;  %v2351_v43 = vmax.f32 %v11111_v24, 0.0  ;;  %v13622_v2 = vld [vmem:[#allocation207_spill] sm:$0xff]  ;;  %v4880_v35 = vand.u32 4294901760, %v4879_v55  ;;  %v4887_v8 = vand.u32 4294901760, %v4886_v45  ;;  %v11190_v55 = vld [vmem:[%s11664_s3 + $0xc0] sm:$0xff] }
 0x383   :  { %v11157_v54 = vpack.c.bf16 %v13620_v34, %v13619_v29  ;;  %v11162_v56 = vsub.f32 %v11047_v25, %v13621_v14  ;;  %6913 = vmatprep.subr.bf16.mxu1 %v13622_v2  ;;  %v13623_v46 = vand.u32 4294901760, %v11091_v7  ;;  %v11195_v34 = vld [vmem:[%s11664_s3 + $0xc8] sm:$0xff]  ;;  %v13625_v45 = vand.u32 4294901760, %v10602_v16  ;;  %v13631_v16 = vld [vmem:[#allocation208_spill] sm:$0xff] }
 0x384   :  { %v13626_v14 = vand.u32 4294901760, %v10604_v39  ;;  %v13628_v29 = vand.u32 4294901760, %v10614_v28  ;;  %v11212_v37 = vsub.f32 %v11103_v31, %v12282_v9  ;;  %v11217_v58 = vsub.f32 %v11108_v21, %v12281_v53  ;;  %6915 = vmatpush3.bf16.msra.mxu1 %v13631_v16  ;;  %v11249_v9 = vld [vmem:[%s11664_s3 + $0xd0] sm:$0xff]  ;;  %6879 = vmatpush3.bf16.msra.mxu0 %v11080_v26 }
 0x385   :  { %v11185_v18 = vsub.f32 %v11091_v7, %v13623_v46  ;;  %v13627_v46 = vand.u32 4294901760, %v10612_v38  ;;  %v4768_v39 = vand.u32 4294901760, %v11162_v56  ;;  %v4774_v28 = vsub.f32 %v11098_v52, %v12280_v3  ;;  %v13632_v56 = vld [vmem:[#allocation209_spill] sm:$0xff]  ;;  %6881 = vmatprep.subr.bf16.mxu0 %v11086_v62 }
 0x386   :  { %v11201_v2 = vpack.c.bf16 %v13626_v14, %v13625_v45  ;;  %13629 = vst [vmem:[#allocation228_spill] sm:$0xff] %v11212_v37  ;;  %13630 = vst [vmem:[#allocation229_spill] sm:$0xff] %v11217_v58  ;;  %v11229_v45 = vld [vmem:[%s11664_s3 + $0x40] sm:$0xff]  ;;  %v11234_v14 = vld [vmem:[%s11664_s3 + $0x48] sm:$0xff]  ;;  %v11236_v23 = vand.u32 4294901760, %v2351_v43  ;;  %6917 = vmatprep.subr.bf16.mxu1 %v13632_v56  ;;  %v6960_v56 = vpack.c.bf16 %v4887_v8, %v4880_v35  ;;  %v13634_v38 = vand.u32 4294901760, %v11123_v32 }
 0x387   :  { %13624 = vst [vmem:[#allocation227_spill] sm:$0xff] %v11185_v18  ;;  %v11207_v24 = vpack.c.bf16 %v13628_v29, %v13627_v46  ;;  %v13633_v46 = vand.u32 4294901760, %v11134_v13  ;;  %v11254_v29 = vld [vmem:[%s11664_s3 + $0xd8] sm:$0xff]  ;;  %v13635_v52 = vand.u32 4294901760, %v11128_v30  ;;  %v13636_v8 = vand.u32 4294901760, %v11173_v12 }
 0x388   :  { %6919 = vmatpush3.bf16.msra.mxu1 %v10662_v48  ;;  %v11283_v35 = vsub.f32 %v2351_v43, %v11236_v23  ;;  %v13638_v48 = vld [vmem:[#allocation210_spill] sm:$0xff]  ;;  %v13639_v25 = vand.u32 4294901760, %v11190_v55  ;;  %v13640_v53 = vand.u32 4294901760, %v11195_v34  ;;  %v4775_v44 = vand.u32 4294901760, %v4774_v28  ;;  %6883 = vmatpush3.bf16.msra.mxu0 %v11140_v42 }
 0x389   :  { %v11242_v16 = vsub.f32 %v11134_v13, %v13633_v46  ;;  %v4893_v46 = vsub.f32 %v11123_v32, %v13634_v38  ;;  %v4900_v3 = vsub.f32 %v11128_v30, %v13635_v52  ;;  %v11273_v52 = vsub.f32 %v11173_v12, %v13636_v8  ;;  %6921 = vmatprep.subr.bf16.mxu1 %v13638_v48 }
 0x38a   :  { %v13637_v38 = vand.u32 4294901760, %v11178_v15  ;;  %v11290_v8 = vsub.f32 %v11190_v55, %v13639_v25  ;;  %v13641_v43 = vand.u32 4294901760, %v11185_v18  ;;  %v13642_v48 = vand.u32 4294901760, %v11212_v37  ;;  %6885 = vmatprep.subr.bf16.mxu0 %v11146_v27 }
 0x38b   :  { %v4894_v30 = vand.u32 4294901760, %v4893_v46  ;;  %v4901_v17 = vand.u32 4294901760, %v4900_v3  ;;  %v13643_v25 = vand.u32 4294901760, %v11217_v58  ;;  %v13645_v3 = vand.u32 4294901760, %v11234_v14 }
 0x38c   :  { %v11278_v26 = vsub.f32 %v11178_v15, %v13637_v38  ;;  %v11295_v38 = vsub.f32 %v11195_v34, %v13640_v53  ;;  %v4781_v32 = vsub.f32 %v11185_v18, %v13641_v43  ;;  %v4788_v62 = vsub.f32 %v11212_v37, %v13642_v48  ;;  %6923 = vmatpush3.bf16.msra.mxu1 %v10669_v33 }
 0x38d   :  { %v4907_v57 = vsub.f32 %v11217_v58, %v13643_v25  ;;  %v13644_v53 = vand.u32 4294901760, %v11229_v45  ;;  %v11315_v46 = vsub.f32 %v11234_v14, %v13645_v3  ;;  %v13646_v48 = vand.u32 4294901760, %v11249_v9  ;;  %6957 = vmatprep.subr.bf16.mxu1 %v11151_v63  ;;  %v13651_v63 = vld [vmem:[#allocation212_spill] sm:$0xff]  ;;  %6887 = vmatpush3.bf16.msra.mxu0 %v11157_v54 }
 0x38e   :  { %v13648_v27 = vand.u32 4294901760, %v11242_v16  ;;  %v4927_v42 = vand.u32 4294901760, %v11295_v38  ;;  %v6962_v37 = vpack.c.bf16 %v4775_v44, %v4768_v39  ;;  %v13650_v18 = vand.u32 4294901760, %v10848_v36  ;;  %6889 = vmatprep.subr.bf16.mxu0 %v11201_v2 }
 0x38f   :  { %v11310_v28 = vsub.f32 %v11229_v45, %v13644_v53  ;;  %v11324_v25 = vsub.f32 %v11249_v9, %v13646_v48  ;;  %v13647_v53 = vand.u32 4294901760, %v11254_v29  ;;  %v13649_v48 = vand.u32 4294901760, %v10833_v60  ;;  %4632 = vmatmul.mubr.f32.vlgmr.msra.gmra.mrb[8].mxu1 %v13651_v63 }
 0x390   :  { %v4914_v3 = vsub.f32 %v11242_v16, %v13648_v27  ;;  %v4782_v41 = vand.u32 4294901760, %v4781_v32  ;;  %v4789_v33 = vand.u32 4294901760, %v4788_v62  ;;  %v4908_v22 = vand.u32 4294901760, %v4907_v57  ;;  %6959 = vmatpush3.bf16.msra.mxu1 %v11167_v61  ;;  %4974 = vmatprep.mubr.f32.mxu1 %v11236_v23 }
 0x391   :  { %v11329_v58 = vsub.f32 %v11254_v29, %v13647_v53  ;;  %v11342_v47 = vpack.c.bf16 %v13650_v18, %v13649_v48  ;;  %v6964_v53 = vpack.c.bf16 %v4901_v17, %v4894_v30  ;;  %v4808_v27 = vand.u32 4294901760, %v11310_v28  ;;  %6961 = vmatprep.subr.bf16.mxu1 %v6960_v56  ;;  %6891 = vmatpush3.bf16.msra.mxu0 %v11207_v24 }
 0x392   :  { %v4815_v43 = vand.u32 4294901760, %v11315_v46  ;;  %v13652_v60 = vand.u32 4294901760, %v11273_v52  ;;  %v13653_v17 = vand.u32 4294901760, %v11278_v26  ;;  %v4934_v32 = vand.u32 4294901760, %v11324_v25 }
 0x393   :  { %v12309_v57 = vand.u32 4294901760, %v11329_v58  ;;  %v13654_v30 = vand.u32 4294901760, %v11283_v35  ;;  %v4915_v61 = vand.u32 4294901760, %v4914_v3  ;;  %v13655_v18 = vand.u32 4294901760, %v11290_v8  ;;  %6925 = vmatprep.subr.bf16.mxu0 %v11342_v47 }
 0x394   :  { %v4795_v36 = vsub.f32 %v11273_v52, %v13652_v60  ;;  %v4802_v44 = vsub.f32 %v11278_v26, %v13653_v17  ;;  %v4928_v62 = vsub.f32 %v11295_v38, %v4927_v42  ;;  %v13656_v48 = vand.u32 4294901760, %v10869_v50  ;;  %6963 = vmatpush3.bf16.msra.mxu1 %v6962_v37  ;;  %v11397_v37 = vld [vmem:[%s11662_s1 + $0x20] sm:$0xff]  ;;  %4528 = vmatmul.mubr.f32.vlgmr.msra.gmra.mrb[8].mxu0 %v13651_v63  ;;  %s7211_s1 = smov 127  }
 0x395   :  { %v4736_v54 = vsub.f32 %v11283_v35, %v13654_v30  ;;  %v4921_v39 = vsub.f32 %v11290_v8, %v13655_v18  ;;  %v13657_v60 = vand.u32 4294901760, %v10874_v11  ;;  %v6966_v2 = vpack.c.bf16 %v4789_v33, %v4782_v41  ;;  %6965 = vmatprep.subr.bf16.mxu1 %v6964_v53 }
 0x396   :  { %v13658_v56 = vand.u32 4294901760, %v10912_v6  ;;  %v13659_v3 = vand.u32 4294901760, %v10933_v19  ;;  %v4809_v18 = vsub.f32 %v11310_v28, %v4808_v27  ;;  %v4816_v50 = vsub.f32 %v11315_v46, %v4815_v43 }
 0x397   :  { %v11372_v17 = vpack.c.bf16 %v13657_v60, %v13656_v48  ;;  %v4796_v11 = vand.u32 4294901760, %v4795_v36  ;;  %v4803_v24 = vand.u32 4294901760, %v4802_v44  ;;  %v4935_v6 = vsub.f32 %v11324_v25, %v4934_v32 }
 0x398   :  { %v11379_v30 = vpack.c.bf16 %v13659_v3, %v13658_v56  ;;  %v4942_v19 = vsub.f32 %v11329_v58, %v12309_v57  ;;  %v4737_v41 = vand.u32 4294901760, %v4736_v54  ;;  %v6968_v33 = vpack.c.bf16 %v4915_v61, %v4908_v22  ;;  %v13662_v54 = vld [vmem:[#allocation216_spill] sm:$0xff]  ;;  %6967 = vmatpush3.bf16.msra.mxu1 %v6966_v2 }
 0x399   :  { %v4922_v48 = vand.u32 4294901760, %v4921_v39  ;;  %v4929_v60 = vand.u32 4294901760, %v4928_v62  ;;  %v1061_v36 = vrot.slane %v11397_v37, %v10684_v49  ;;  %v13660_v44 = vand.u32 4294901760, %v10976_v1  ;;  %6927 = vmatpush3.bf16.msra.mxu0 %v11372_v17  ;;  %v13664_v62 = vld [vmem:[#allocation96_spill] sm:$0xff] }
 0x39a   :  { %v13661_v56 = vand.u32 4294901760, %v11005_v51  ;;  %4738 = vmatprep.mubr.f32.mxu0 %v4737_v41  ;;  %v4810_v22 = vand.u32 4294901760, %v4809_v18  ;;  %v4817_v53 = vand.u32 4294901760, %v4816_v50  ;;  %v13663_v61 = vand.u32 4294901760, %v13662_v54  ;;  %6929 = vmatprep.subr.bf16.mxu0 %v11379_v30 }
 0x39b   :  { %v13665_v57 = vand.u32 4294901760, %v13664_v62  ;;  %v6970_v1 = vpack.c.bf16 %v4803_v24, %v4796_v11  ;;  %v13666_v51 = vand.u32 4294901760, %v11029_v0  ;;  %v13667_v63 = vand.u32 4294901760, %v11034_v4  ;;  %6969 = vmatprep.subr.bf16.mxu1 %v6968_v33 }
 0x39c   :  { %v11406_v3 = vpack.c.bf16 %v13661_v56, %v13660_v44  ;;  %v4823_v39 = vsub.f32 %v13662_v54, %v13663_v61  ;;  %v4936_v18 = vand.u32 4294901760, %v4935_v6  ;;  %v4943_v50 = vand.u32 4294901760, %v4942_v19 }
 0x39d   :  { %v4830_v49 = vsub.f32 %v13664_v62, %v13665_v57  ;;  %v11420_v44 = vpack.c.bf16 %v13667_v63, %v13666_v51  ;;  %v6972_v41 = vpack.c.bf16 %v4929_v60, %v4922_v48  ;;  %v13668_v56 = vand.u32 4294901760, %v10815_v20  ;;  %6971 = vmatpush3.bf16.msra.mxu1 %v6970_v1 }
 0x39e   :  { %v13669_v57 = vand.u32 4294901760, %v10820_v5  ;;  %v13670_v11 = vand.u32 4294901760, %v11091_v7  ;;  %v13671_v0 = vand.u32 4294901760, %v11103_v31  ;;  %v13672_v4 = vand.u32 4294901760, %v11108_v21  ;;  %6931 = vmatpush3.bf16.msra.mxu0 %v11406_v3  ;;  %v13675_v7 = vld [vmem:[#allocation88_spill] sm:$0xff] }
 0x39f   :  { %v4949_v61 = vsub.f32 %v10815_v20, %v13668_v56  ;;  %v13673_v6 = vand.u32 4294901760, %v11134_v13  ;;  %v6974_v33 = vpack.c.bf16 %v4817_v53, %v4810_v22  ;;  %v4824_v48 = vand.u32 4294901760, %v4823_v39  ;;  %6933 = vmatprep.subr.bf16.mxu0 %v11420_v44  ;;  %6973 = vmatprep.subr.bf16.mxu1 %v6972_v41  ;;  %v13678_v39 = vld [vmem:[#allocation217_spill] sm:$0xff] }
 0x3a0   :  { %v4956_v2 = vsub.f32 %v10820_v5, %v13669_v57  ;;  %v11432_v24 = vpack.c.bf16 %v13671_v0, %v13670_v11  ;;  %v4831_v60 = vand.u32 4294901760, %v4830_v49  ;;  %v13674_v51 = vand.u32 4294901760, %v10838_v40 }
 0x3a1   :  { %v11438_v19 = vpack.c.bf16 %v13673_v6, %v13672_v4  ;;  %v7120_v56 = vadd.f32 %v13675_v7, %v1061_v36  ;;  %v6976_v31 = vpack.c.bf16 %v4943_v50, %v4936_v18  ;;  %v13676_v21 = vand.u32 4294901760, %v10843_v10  ;;  %6975 = vmatpush3.bf16.msra.mxu1 %v6974_v33  ;;  %v13684_v7 = vld [vmem:[#allocation101_spill] sm:$0xff] }
 0x3a2   :  { %v4837_v63 = vsub.f32 %v10838_v40, %v13674_v51  ;;  %v4950_v57 = vand.u32 4294901760, %v4949_v61  ;;  %v4957_v11 = vand.u32 4294901760, %v4956_v2  ;;  %v13677_v22 = vand.u32 4294901760, %v10853_v59  ;;  %6935 = vmatpush3.bf16.msra.mxu0 %v11432_v24 }
 0x3a3   :  { %v4844_v13 = vsub.f32 %v10843_v10, %v13676_v21  ;;  %v13679_v49 = vand.u32 4294901760, %v13678_v39  ;;  %v13680_v36 = vand.u32 4294901760, %v11173_v12  ;;  %v13681_v1 = vand.u32 4294901760, %v11178_v15  ;;  %6937 = vmatprep.subr.bf16.mxu0 %v11438_v19  ;;  %v13686_v15 = vld [vmem:[#allocation102_spill] sm:$0xff]  ;;  %6977 = vmatprep.subr.bf16.mxu1 %v6976_v31 }
 0x3a4   :  { %v4963_v53 = vsub.f32 %v10853_v59, %v13677_v22  ;;  %v6978_v50 = vpack.c.bf16 %v4831_v60, %v4824_v48  ;;  %v13682_v41 = vand.u32 4294901760, %v11190_v55  ;;  %v13683_v61 = vand.u32 4294901760, %v11195_v34 }
 0x3a5   :  { %v4970_v0 = vsub.f32 %v13678_v39, %v13679_v49  ;;  %v11460_v18 = vpack.c.bf16 %v13681_v1, %v13680_v36  ;;  %v4838_v4 = vand.u32 4294901760, %v4837_v63  ;;  %v2350_v6 = vmax.f32 %v7120_v56, 0.0 }
 0x3a6   :  { %v11466_v2 = vpack.c.bf16 %v13683_v61, %v13682_v41  ;;  %v4845_v51 = vand.u32 4294901760, %v4844_v13  ;;  %v13685_v21 = vand.u32 4294901760, %v13684_v7  ;;  %v13687_v22 = vand.u32 4294901760, %v13686_v15  ;;  %6979 = vmatpush3.bf16.msra.mxu1 %v6978_v50  ;;  %v13696_v61 = vld [vmem:[#allocation92_spill] sm:$0xff] }
 0x3a7   :  { %v6980_v55 = vpack.c.bf16 %v4957_v11, %v4950_v57  ;;  %v4964_v60 = vand.u32 4294901760, %v4963_v53  ;;  %v4971_v34 = vand.u32 4294901760, %v4970_v0  ;;  %6939 = vmatpush3.bf16.msra.mxu0 %v11460_v18  ;;  %v13688_v63 = vand.u32 4294901760, %v11229_v45  ;;  %v13694_v0 = vld [vmem:[#allocation90_spill] sm:$0xff] }
 0x3a8   :  { %v4851_v12 = vsub.f32 %v13684_v7, %v13685_v21  ;;  %v4858_v48 = vsub.f32 %v13686_v15, %v13687_v22  ;;  %v13689_v33 = vand.u32 4294901760, %v11234_v14  ;;  %v13690_v13 = vand.u32 4294901760, %v11249_v9  ;;  %6941 = vmatprep.subr.bf16.mxu0 %v11466_v2  ;;  %v13692_v14 = vld [vmem:[#allocation89_spill] sm:$0xff]  ;;  %v13700_v22 = vld [vmem:[#allocation95_spill] sm:$0xff] }
 0x3a9   :  { %v13691_v49 = vand.u32 4294901760, %v11254_v29  ;;  %v11488_v1 = vand.u32 4294901760, %v2350_v6  ;;  %v6982_v31 = vpack.c.bf16 %v4845_v51, %v4838_v4  ;;  %6981 = vmatprep.subr.bf16.mxu1 %v6980_v55  ;;  %v6984_v45 = vpack.c.bf16 %v4971_v34, %v4964_v60  ;;  %v13698_v51 = vld [vmem:[#allocation94_spill] sm:$0xff]  ;;  %v13702_v55 = vld [vmem:[#allocation213_spill] sm:$0xff] }
 0x3aa   :  { %v11480_v56 = vpack.c.bf16 %v13689_v33, %v13688_v63  ;;  %v4852_v57 = vand.u32 4294901760, %v4851_v12  ;;  %v4859_v11 = vand.u32 4294901760, %v4858_v48  ;;  %v13693_v53 = vand.u32 4294901760, %v13692_v14  ;;  %v13704_v63 = vld [vmem:[#allocation214_spill] sm:$0xff] }
 0x3ab   :  { %v11486_v36 = vpack.c.bf16 %v13691_v49, %v13690_v13  ;;  %v13695_v9 = vand.u32 4294901760, %v13694_v0  ;;  %v11499_v29 = vsub.f32 %v2350_v6, %v11488_v1  ;;  %6983 = vmatpush3.bf16.msra.mxu1 %v6982_v31  ;;  %v13697_v4 = vand.u32 4294901760, %v13696_v61  ;;  %v13706_v13 = vld [vmem:[#allocation215_spill] sm:$0xff]  ;;  %v13714_v61 = vld [vmem:[#allocation109_spill] sm:$0xff] }
 0x3ac   :  { %6943 = vmatpush3.bf16.msra.mxu0 %v11480_v56  ;;  %v6986_v50 = vpack.c.bf16 %v4859_v11, %v4852_v57  ;;  %v13699_v21 = vand.u32 4294901760, %v13698_v51  ;;  %6985 = vmatprep.subr.bf16.mxu1 %v6984_v45  ;;  %v13701_v48 = vand.u32 4294901760, %v13700_v22  ;;  %v13703_v60 = vand.u32 4294901760, %v13702_v55  ;;  %v13708_v57 = vld [vmem:[#allocation99_spill] sm:$0xff]  ;;  %v13710_v45 = vld [vmem:[#allocation100_spill] sm:$0xff]  ;;  %v13717_v55 = vld [vmem:[#allocation221_spill] sm:$0xff] }
 0x3ad   :  { %v11496_v41 = vpack.c.bf16 %v13695_v9, %v13693_v53  ;;  %6945 = vmatprep.subr.bf16.mxu0 %v11486_v36  ;;  %v4741_v6 = vand.u32 4294901760, %v11499_v29  ;;  %v13705_v33 = vand.u32 4294901760, %v13704_v63  ;;  %v13707_v49 = vand.u32 4294901760, %v13706_v13  ;;  %v13715_v51 = vld [vmem:[#allocation219_spill] sm:$0xff]  ;;  %v13720_v13 = vld [vmem:[#allocation224_spill] sm:$0xff] }
 0x3ae   :  { %v11506_v12 = vpack.c.bf16 %v13699_v21, %v13697_v4  ;;  %v11513_v34 = vpack.c.bf16 %v13703_v60, %v13701_v48  ;;  %v13709_v11 = vand.u32 4294901760, %v13708_v57  ;;  %v13711_v14 = vand.u32 4294901760, %v13710_v45  ;;  %v13716_v21 = vld [vmem:[#allocation220_spill] sm:$0xff]  ;;  %v13718_v60 = vld [vmem:[#allocation222_spill] sm:$0xff]  ;;  %v13721_v57 = vld [vmem:[#allocation225_spill] sm:$0xff] }
 0x3af   :  { %6987 = vmatpush3.bf16.msra.mxu1 %v6986_v50  ;;  %v11522_v31 = vpack.c.bf16 %v13707_v49, %v13705_v33  ;;  %v4742_v0 = vsub.f32 %v11499_v29, %v4741_v6  ;;  %v13712_v9 = vand.u32 4294901760, %v11283_v35  ;;  %v13713_v50 = vld [vmem:[#allocation108_spill] sm:$0xff]  ;;  %v6990_v22 = vpack.c.bf16 %v13716_v21, %v13715_v51  ;;  %v13719_v33 = vld [vmem:[#allocation223_spill] sm:$0xff] }
 0x3b0   :  { %6947 = vmatpush3.bf16.msra.mxu0 %v11496_v41  ;;  %7021 = vmatprep.subr.bf16.mxu1 %v11342_v47  ;;  %v11530_v53 = vpack.c.bf16 %v13711_v14, %v13709_v11  ;;  %v6988_v4 = vpack.c.bf16 %v13714_v61, %v13713_v50  ;;  %v6992_v63 = vpack.c.bf16 %v13718_v60, %v13717_v55  ;;  %v13722_v11 = vld [vmem:[#allocation226_spill] sm:$0xff]  ;;  %v13723_v14 = vld [vmem:[#allocation227_spill] sm:$0xff] }
 0x3b1   :  { %6949 = vmatprep.subr.bf16.mxu0 %v11506_v12  ;;  %v4743_v48 = vand.u32 4294901760, %v4742_v0  ;;  %v6994_v49 = vpack.c.bf16 %v13720_v13, %v13719_v33  ;;  %v6996_v45 = vpack.c.bf16 %v13722_v11, %v13721_v57  ;;  %v13724_v0 = vld [vmem:[#allocation228_spill] sm:$0xff] }
 0x3b2   :  { %4976 = vmatmul.mubr.f32.vlgmr.msra.gmra.mrb[10].mxu1 %v11488_v1 }
 0x3b3   :  { %7023 = vmatpush3.bf16.msra.mxu1 %v11372_v17  ;;  %5218 = vmatprep.mubr.f32.mxu1 %v13712_v9  ;;  %v6998_v9 = vpack.c.bf16 %v13724_v0, %v13723_v14 }
 0x3b4   :  { %6951 = vmatpush3.bf16.msra.mxu0 %v11513_v34  ;;  %7025 = vmatprep.subr.bf16.mxu1 %v11379_v30 }
 0x3b5   :  { %6953 = vmatprep.subr.bf16.mxu0 %v11522_v31 }
 0x3b7   :  { %7027 = vmatpush3.bf16.msra.mxu1 %v11406_v3 }
 0x3b8   :  { %6955 = vmatpush3.bf16.msra.mxu0 %v11530_v53  ;;  %7029 = vmatprep.subr.bf16.mxu1 %v11420_v44 }
 0x3b9   :  { %6989 = vmatprep.subr.bf16.mxu0 %v6988_v4  ;;  %v13725_v4 = vld [vmem:[#allocation229_spill] sm:$0xff] }
 0x3bb   :  { %4744 = vmatmul.mubr.f32.vlgmr.msra.gmra.mrb[10].mxu0 %v4743_v48  ;;  %7031 = vmatpush3.bf16.msra.mxu1 %v11432_v24  ;;  %v7004_v48 = vpack.c.bf16 %v11295_v38, %v11290_v8  ;;  %v13745_v38 = vld [vmem:[#allocation240_spill] sm:$0xff] }
 0x3bc   :  { %6991 = vmatpush3.bf16.msra.mxu0 %v6990_v22  ;;  %5111 = vmatprep.mubr.f32.mxu0 %v11283_v35  ;;  %v7000_v35 = vpack.c.bf16 %v11242_v16, %v13725_v4  ;;  %v7002_v22 = vpack.c.bf16 %v11278_v26, %v11273_v52 }
 0x3bd   :  { %6993 = vmatprep.subr.bf16.mxu0 %v6992_v63  ;;  %7033 = vmatprep.subr.bf16.mxu1 %v11438_v19  ;;  %v7006_v63 = vpack.c.bf16 %v11315_v46, %v11310_v28  ;;  %v13746_v28 = vld [vmem:[#allocation104_spill] sm:$0xff]  ;;  %v13748_v46 = vld [vmem:[#allocation111_spill] sm:$0xff] }
 0x3bf   :  { %7035 = vmatpush3.bf16.msra.mxu1 %v11460_v18 }
 0x3c0   :  { %6995 = vmatpush3.bf16.msra.mxu0 %v6994_v49  ;;  %7037 = vmatprep.subr.bf16.mxu1 %v11466_v2  ;;  %v7008_v49 = vpack.c.bf16 %v11329_v58, %v11324_v25 }
 0x3c1   :  { %6997 = vmatprep.subr.bf16.mxu0 %v6996_v45  ;;  %v7010_v45 = vpack.c.bf16 %v13664_v62, %v13662_v54  ;;  %v7016_v54 = vpack.c.bf16 %v13678_v39, %v10853_v59  ;;  %v7018_v62 = vpack.c.bf16 %v13686_v15, %v13684_v7  ;;  %v13728_v59 = vand.u32 4294901760, %v13715_v51 }
 0x3c2   :  { %v13731_v39 = vand.u32 4294901760, %v13718_v60  ;;  %v13733_v15 = vand.u32 4294901760, %v13720_v13  ;;  %v13738_v51 = vand.u32 4294901760, %v13725_v4 }
 0x3c3   :  { %7039 = vmatpush3.bf16.msra.mxu1 %v11480_v56 }
 0x3c4   :  { %6999 = vmatpush3.bf16.msra.mxu0 %v6998_v9  ;;  %7041 = vmatprep.subr.bf16.mxu1 %v11486_v36  ;;  %v7012_v9 = vpack.c.bf16 %v10820_v5, %v10815_v20  ;;  %v13726_v5 = vand.u32 4294901760, %v13713_v50  ;;  %v13727_v20 = vand.u32 4294901760, %v13714_v61  ;;  %v13735_v50 = vand.u32 4294901760, %v13722_v11 }
 0x3c5   :  { %7001 = vmatprep.subr.bf16.mxu0 %v7000_v35  ;;  %v7014_v35 = vpack.c.bf16 %v10843_v10, %v10838_v40  ;;  %v13729_v40 = vand.u32 4294901760, %v13716_v21  ;;  %v7210_v11 = vmov 2  }
 0x3c6   :  { %v7052_v10 = vpack.c.bf16 %v13727_v20, %v13726_v5  ;;  %7171 = vset.pattern.permute.xlu0 %v7210_v11 }
 0x3c7   :  { %7043 = vmatpush3.bf16.msra.mxu1 %v11496_v41 }
 0x3c8   :  { %7003 = vmatpush3.bf16.msra.mxu0 %v7002_v22  ;;  %7045 = vmatprep.subr.bf16.mxu1 %v11506_v12 }
 0x3c9   :  { %7005 = vmatprep.subr.bf16.mxu0 %v7004_v48 }
 0x3cb   :  { %7047 = vmatpush3.bf16.msra.mxu1 %v11513_v34 }
 0x3cc   :  { %7007 = vmatpush3.bf16.msra.mxu0 %v7006_v63  ;;  %7049 = vmatprep.subr.bf16.mxu1 %v11522_v31 }
 0x3cd   :  { %7009 = vmatprep.subr.bf16.mxu0 %v7008_v49 }
 0x3cf   :  { %7051 = vmatpush3.bf16.msra.mxu1 %v11530_v53 }
 0x3d0   :  { %7011 = vmatpush3.bf16.msra.mxu0 %v7010_v45  ;;  %7085 = vmatprep.subr.bf16.mxu1 %v11342_v47  ;;  %v7054_v47 = vpack.c.bf16 %v13729_v40, %v13728_v59 }
 0x3d1   :  { %7013 = vmatprep.subr.bf16.mxu0 %v7012_v9 }
 0x3d2   :  { %5222 = vmatmul.mubr.f32.vlgmr.msra.gmra.mrb[12].mxu1 %v4741_v6 }
 0x3d3   :  { %7087 = vmatpush3.bf16.msra.mxu1 %v11372_v17  ;;  %5492 = vmatprep.mubr.f32.mxu1 %v11236_v23  ;;  %v13730_v17 = vand.u32 4294901760, %v13717_v55  ;;  %v13740_v55 = vand.u32 4294901760, %v11273_v52  ;;  %v13743_v52 = vand.u32 4294901760, %v11329_v58  ;;  %v13747_v58 = vld [vmem:[#allocation105_spill] sm:$0xff] }
 0x3d4   :  { %7015 = vmatpush3.bf16.msra.mxu0 %v7014_v35  ;;  %7089 = vmatprep.subr.bf16.mxu1 %v11379_v30  ;;  %v13732_v30 = vand.u32 4294901760, %v13719_v33  ;;  %v13742_v33 = vand.u32 4294901760, %v11290_v8  ;;  %v13744_v8 = vld [vmem:[#allocation218_spill] sm:$0xff] }
 0x3d5   :  { %7017 = vmatprep.subr.bf16.mxu0 %v7016_v54  ;;  %v7056_v7 = vpack.c.bf16 %v13731_v39, %v13730_v17 }
 0x3d6   :  { %v7058_v6 = vpack.c.bf16 %v13733_v15, %v13732_v30 }
 0x3d7   :  { %7091 = vmatpush3.bf16.msra.mxu1 %v11406_v3  ;;  %v13734_v3 = vand.u32 4294901760, %v13721_v57 }
 0x3d8   :  { %7019 = vmatpush3.bf16.msra.mxu0 %v7018_v62  ;;  %7093 = vmatprep.subr.bf16.mxu1 %v11420_v44  ;;  %v13736_v44 = vand.u32 4294901760, %v13723_v14 }
 0x3d9   :  { %7053 = vmatprep.subr.bf16.mxu0 %v7052_v10  ;;  %v7060_v61 = vpack.c.bf16 %v13735_v50, %v13734_v3 }
 0x3db   :  { %5114 = vmatmul.mubr.f32.vlgmr.msra.gmra.mrb[12].mxu0 %v11499_v29  ;;  %7095 = vmatpush3.bf16.msra.mxu1 %v11432_v24  ;;  %v13739_v24 = vand.u32 4294901760, %v11242_v16  ;;  %v7070_v16 = vpack.c.bf16 %v4815_v43, %v4808_v27 }
 0x3dc   :  { %7055 = vmatpush3.bf16.msra.mxu0 %v7054_v47  ;;  %5388 = vmatprep.mubr.f32.mxu0 %v11236_v23  ;;  %v13737_v23 = vand.u32 4294901760, %v13724_v0 }
 0x3dd   :  { %7057 = vmatprep.subr.bf16.mxu0 %v7056_v7  ;;  %7097 = vmatprep.subr.bf16.mxu1 %v11438_v19  ;;  %v7064_v21 = vpack.c.bf16 %v13739_v24, %v13738_v51  ;;  %v13741_v19 = vand.u32 4294901760, %v11278_v26  ;;  %v7072_v26 = vpack.c.bf16 %v13743_v52, %v4934_v32 }
 0x3de   :  { %v7062_v29 = vpack.c.bf16 %v13737_v23, %v13736_v44  ;;  %v13749_v44 = vld [vmem:[#allocation195_spill] sm:$0xff] }
 0x3df   :  { %7099 = vmatpush3.bf16.msra.mxu1 %v11460_v18  ;;  %v7066_v60 = vpack.c.bf16 %v13741_v19, %v13740_v55  ;;  %v7068_v18 = vpack.c.bf16 %v4927_v42, %v13742_v33  ;;  %v5501_v23 = vsub.s32 2, %v13749_v44 }
 0x3e0   :  { %7059 = vmatpush3.bf16.msra.mxu0 %v7058_v6  ;;  %7101 = vmatprep.subr.bf16.mxu1 %v11466_v2 }
 0x3e1   :  { %7061 = vmatprep.subr.bf16.mxu0 %v7060_v61 }
 0x3e3   :  { %7103 = vmatpush3.bf16.msra.mxu1 %v11480_v56 }
 0x3e4   :  { %7063 = vmatpush3.bf16.msra.mxu0 %v7062_v29  ;;  %7105 = vmatprep.subr.bf16.mxu1 %v11486_v36 }
 0x3e5   :  { %7065 = vmatprep.subr.bf16.mxu0 %v7064_v21  ;;  %v5502_v21 = vrot.slane %v11397_v37, %v5501_v23  ;;  %v13750_v37 = vlaneseq }
 0x3e7   :  { %7107 = vmatpush3.bf16.msra.mxu1 %v11496_v41 }
 0x3e8   :  { %7067 = vmatpush3.bf16.msra.mxu0 %v7066_v60  ;;  %7109 = vmatprep.subr.bf16.mxu1 %v11506_v12  ;;  %v7212_v60 = vmov 0  }
 0x3e9   :  { %7069 = vmatprep.subr.bf16.mxu0 %v7068_v18  ;;  %7172 = vset.pattern.permute.xlu1 %v7212_v60 }
 0x3eb   :  { %7111 = vmatpush3.bf16.msra.mxu1 %v11513_v34 }
 0x3ec   :  { %7071 = vmatpush3.bf16.msra.mxu0 %v7070_v16  ;;  %7113 = vmatprep.subr.bf16.mxu1 %v11522_v31 }
 0x3ed   :  { %7073 = vmatprep.subr.bf16.mxu0 %v7072_v26 }
 0x3ef   :  { %7115 = vmatpush3.bf16.msra.mxu1 %v11530_v53 }
 0x3f0   :  { %7075 = vmatpush3.bf16.msra.mxu0 %v13744_v8 }
 0x3f1   :  { %7077 = vmatprep.subr.bf16.mxu0 %v13745_v38 }
 0x3f2   :  { %5494 = vmatmul.mubr.f32.vlgmr.msra.gmra.mrb[14].mxu1 %v11488_v1 }
 0x3f4   :  { %7079 = vmatpush3.bf16.msra.mxu0 %v13746_v28 }
 0x3f5   :  { %7081 = vmatprep.subr.bf16.mxu0 %v13747_v58  ;;  %v5517_v58 = vand.u32 127, %v13750_v37 }
 0x3f7   :  { %vm5520_vm1 = vcmp.eq.s32.totalorder %v5517_v58, 2  ;;  %vm5519_vm2 = vcmp.eq.s32.totalorder %v5517_v58, 1  ;;  %vm5518_vm3 = vcmp.eq.s32.totalorder %v5517_v58, 0 }
 0x3f8   :  { %7083 = vmatpush3.bf16.msra.mxu0 %v13748_v46 }
 0x3fb   :  { %5390 = vmatmul.mubr.f32.vlgmr.msra.gmra.mrb[14].mxu0 %v11488_v1 }
 0x41d   :  { %v5611_v42 = vpop.f32.mrb[4].mxu1 }
 0x41e   :  { %v5612_v43 = vpop.f32.mrb[5].mxu1 }
 0x41f   :  { %v5613_v25 = vadd.f32 %v5612_v43, %v5611_v42 }
 0x425   :  { %v5576_v27 = vpop.f32.mrb[4].mxu0 }
 0x426   :  { %v5577_v32 = vpop.f32.mrb[5].mxu0 }
 0x427   :  { %v5578_v2 = vadd.f32 %v5577_v32, %v5576_v27 }
 0x429   :  { %v4116_v56 = vadd.f32 %v5613_v25, %v5578_v2 }
 0x43d   :  { %v5681_v36 = vpop.f32.mrb[6].mxu1 }
 0x43e   :  { %v5682_v41 = vpop.f32.mrb[7].mxu1 }
 0x43f   :  { %v5683_v12 = vadd.f32 %v5682_v41, %v5681_v36 }
 0x446   :  { %v5646_v34 = vpop.f32.mrb[6].mxu0 }
 0x447   :  { %v5647_v31 = vpop.f32.mrb[7].mxu0 }
 0x448   :  { %v5648_v53 = vadd.f32 %v5647_v31, %v5646_v34 }
 0x44a   :  { %v4254_v13 = vadd.f32 %v5648_v53, %v4116_v56 }
 0x44c   :  { %v4362_v57 = vadd.f32 %v5683_v12, %v4254_v13 }
 0x462   :  { %v5751_v14 = vpop.f32.mrb[8].mxu1 }
 0x463   :  { %v5752_v0 = vpop.f32.mrb[9].mxu1 }
 0x464   :  { %v5753_v1 = vadd.f32 %v5752_v0, %v5751_v14 }
 0x467   :  { %v5716_v4 = vpop.f32.mrb[8].mxu0 }
 0x468   :  { %v5717_v22 = vpop.f32.mrb[9].mxu0 }
 0x469   :  { %v5718_v48 = vadd.f32 %v5717_v22, %v5716_v4 }
 0x46b   :  { %v4530_v63 = vadd.f32 %v5718_v48, %v4362_v57 }
 0x46d   :  { %v4634_v49 = vadd.f32 %v5753_v1, %v4530_v63 }
 0x485   :  { %v5821_v45 = vpop.f32.mrb[10].mxu1 }
 0x486   :  { %v5822_v9 = vpop.f32.mrb[11].mxu1 }
 0x487   :  { %v5823_v35 = vadd.f32 %v5822_v9, %v5821_v45 }
 0x48e   :  { %v5786_v54 = vpop.f32.mrb[10].mxu0 }
 0x48f   :  { %v5787_v62 = vpop.f32.mrb[11].mxu0 }
 0x490   :  { %v5788_v5 = vadd.f32 %v5787_v62, %v5786_v54 }
 0x492   :  { %v4746_v20 = vadd.f32 %v5788_v5, %v4634_v49 }
 0x494   :  { %v4978_v10 = vadd.f32 %v5823_v35, %v4746_v20 }
 0x4a5   :  { %v5891_v59 = vpop.f32.mrb[12].mxu1 }
 0x4a6   :  { %v5892_v40 = vpop.f32.mrb[13].mxu1 }
 0x4a7   :  { %v5893_v47 = vadd.f32 %v5892_v40, %v5891_v59 }
 0x4ae   :  { %v5856_v17 = vpop.f32.mrb[12].mxu0 }
 0x4af   :  { %v5857_v39 = vpop.f32.mrb[13].mxu0 }
 0x4b0   :  { %v5858_v7 = vadd.f32 %v5857_v39, %v5856_v17 }
 0x4b2   :  { %v5116_v30 = vadd.f32 %v5858_v7, %v4978_v10 }
 0x4b4   :  { %v5224_v15 = vadd.f32 %v5893_v47, %v5116_v30 }
 0x4c5   :  { %v5961_v6 = vpop.f32.mrb[14].mxu1 }
 0x4c6   :  { %v5962_v3 = vpop.f32.mrb[15].mxu1 }
 0x4c7   :  { %v5963_v50 = vadd.f32 %v5962_v3, %v5961_v6 }
 0x4ce   :  { %v5926_v61 = vpop.f32.mrb[14].mxu0 }
 0x4cf   :  { %v5927_v29 = vpop.f32.mrb[15].mxu0 }
 0x4d0   :  { %v5928_v51 = vadd.f32 %v5927_v29, %v5926_v61 }
 0x4d2   :  { %v5392_v24 = vadd.f32 %v5928_v51, %v5224_v15 }
 0x4d4   :  { %v5496_v55 = vadd.f32 %v5963_v50, %v5392_v24 }
 0x4d6   :  { %v5503_v19 = vadd.f32 %v5502_v21, %v5496_v55 }
 0x4d8   :  { %5505 = vrot.lane.b32.xlu0 %v5503_v19, %s7211_s1 }
 0x4dc   :  { %5522 = vperm.xlu0 %7171, %v5503_v19  }
 0x4e0   :  { %7173 = vset.pattern.permute.xlu0 %v7212_v60 }
 0x54a   :  { %v5506_v33 = vpop.permute.xlu0 %5505 }
 0x54b   :  { %v5508_v18 = vsub.f32 %v5503_v19, %v5506_v33 }
 0x54d   :  { %v5509_v16 = vsub.f32 0.0, %v5508_v18 }
 0x54f   :  { %v5510_v52 = vmul.f32 1.442695, %v5509_v16 }
 0x551   :  { %7174 = vpow2.f32 %v5510_v52 }
 0x55b   :  { %v7175_v26 = vpop.eup %7174  ;;  %v5523_v46 = vpop.permute.xlu0 %5522 }
 0x55c   :  { %v5512_v8 = vadd.f32 1.0, %v7175_v26  ;;  %v5525_v43 = vsel %vm5520_vm1, %v5523_v46, 0.0 }
 0x55e   :  { %7176 = vrcp.f32 %v5512_v8 }
 0x568   :  { %v7177_v38 = vpop.eup %7176 }
 0x569   :  { %v5515_v28 = vsub.f32 1.0, %v7177_v38 }
 0x56b   :  { %5528 = vperm.xlu1 %7172, %v5515_v28  }
 0x56f   :  { %5534 = vperm.xlu1 %7172, %v7177_v38  }
 0x5ea   :  { %v5529_v42 = vpop.permute.xlu1 %5528 }
 0x5eb   :  { %v5531_v25 = vsel %vm5519_vm2, %v5529_v42, %v5525_v43 }
 0x5ee   :  { %v5535_v27 = vpop.permute.xlu1 %5534 }
 0x5ef   :  { %v5537_v32 = vsel %vm5518_vm3, %v5535_v27, %v5531_v25 }
 0x5f0   :  { %5538 = vst [vmem:[%s11665_s4] sm:$0xff] %v5537_v32 }
 0x5f1   :  { %5543 = vsyncpa [#allocation3], 1 }

</bundles_post_ra>
